<compile_context>
chip_gen: v7x
topology: tpu7x:2x2x1
jax: 0.10.0
libtpu: 0.0.40
codegen_flags: <defaults>
</compile_context>

<pallas_src>
import jax
import jax.numpy as jnp
from jax.experimental import pallas as pl
from jax.experimental.pallas import tpu as pltpu

BN_EPS = 1e-5  # Python float literal -> inlined constant, not a captured array


# ---------------------------------------------------------------------------
# Pallas kernel: embedding -> 4x(GCNConv+BN+ReLU) -> conv_mu / conv_logstd
# ---------------------------------------------------------------------------
def g3median_kernel(x_ref, a_ref, *refs):
    """refs = 4*(w, b, gamma, beta) + (w_mu, b_mu) + (w_ls, b_ls) + (out_ref,)"""
    out_ref = refs[-1]
    p = refs[:-1]

    a = a_ref[...]                      # [N, N]  bf16 normalized adjacency
    h = x_ref[...]                      # [N, C]  bf16 node embeddings

    def gcn(h_bf16, w_ref, b_ref):
        # GCNConv: A_hat @ (X @ W) + b  — both matmuls on the MXU, f32 accum.
        xw = jnp.dot(h_bf16, w_ref[...], preferred_element_type=jnp.float32)
        return jnp.dot(a, xw.astype(jnp.bfloat16),
                       preferred_element_type=jnp.float32) + b_ref[...]

    for l in range(4):                  # convs[l] -> batch_norms[l] -> relu
        w, b, gamma, beta = p[4 * l], p[4 * l + 1], p[4 * l + 2], p[4 * l + 3]
        hh = gcn(h, w, b)                                    # [N, C] f32
        # BatchNorm1d over the node axis, training-mode batch statistics,
        # single pass: var = E[x^2] - mean^2.
        mean = jnp.mean(hh, axis=0, keepdims=True)
        var = jnp.mean(hh * hh, axis=0, keepdims=True) - mean * mean
        bn = (hh - mean) * jax.lax.rsqrt(var + BN_EPS) * gamma[...] + beta[...]
        # TODO(synk): eval-mode BN would use running_mean/var buffers instead.
        h = jnp.maximum(bn, 0.0).astype(jnp.bfloat16)

    w_mu, b_mu, w_ls, b_ls = p[16], p[17], p[18], p[19]
    out_ref[0, :, :] = gcn(h, w_mu, b_mu)                    # conv_mu
    out_ref[1, :, :] = gcn(h, w_ls, b_ls)                    # conv_logstd


# ---------------------------------------------------------------------------
# pallas_call wrapper
# ---------------------------------------------------------------------------
def _full_spec(shape):
    n = len(shape)
    return pl.BlockSpec(shape, lambda i, _n=n: (0,) * _n)


def run_g3median(x_emb_bf16, a_hat_bf16, params):
    n = x_emb_bf16.shape[0]
    c_out = params["conv_mu"][0].shape[1]
    inputs = [x_emb_bf16, a_hat_bf16]
    for layer in params["convs"]:
        inputs.extend(layer)             # (w, b, gamma, beta)
    inputs.extend(params["conv_mu"])     # (w, b)
    inputs.extend(params["conv_logstd"])  # (w, b)
    out = pl.pallas_call(
        g3median_kernel,
        grid=(1,),
        in_specs=[_full_spec(t.shape) for t in inputs],
        out_specs=_full_spec((2, n, c_out)),
        out_shape=jax.ShapeDtypeStruct((2, n, c_out), jnp.float32),
        compiler_params=pltpu.CompilerParams(
            dimension_semantics=("arbitrary",)),
    )(*inputs)
    return out[0], out[1]                # (mu, logstd)


# ---------------------------------------------------------------------------
# Plain-JAX glue: embedding gather, normalized adjacency, parameter init
# ---------------------------------------------------------------------------
def normalized_adjacency(edge_index, num_nodes):
    # Dense D^-1/2 (A + I) D^-1/2.  Duplicate edges accumulate, matching a
    # scatter-add message-passing sum over the given edge list.
    src, dst = edge_index[0], edge_index[1]
    a = jnp.zeros((num_nodes, num_nodes), jnp.float32).at[dst, src].add(1.0)
    a = a + jnp.eye(num_nodes, dtype=jnp.float32)            # add self loops
    deg = jnp.sum(a, axis=1)
    dinv = jnp.where(deg > 0, 1.0 / jnp.sqrt(deg), 0.0)
    return dinv[:, None] * a * dinv[None, :]


def init_params(key, in_channels, out_channels):
    keys = iter(jax.random.split(key, 24))

    def dense(shape, scale, dtype=jnp.float32):
        return (jax.random.normal(next(keys), shape, jnp.float32)
                * scale).astype(dtype)

    emb = dense((10000, in_channels), 0.1)                   # Embedding(10000, C)

    convs = []
    for _ in range(4):                                       # GCNConv(C, C) x 4
        w = dense((in_channels, in_channels), 1.0 / (in_channels ** 0.5),
                  jnp.bfloat16)
        b = dense((1, in_channels), 0.1)
        gamma = jnp.ones((1, in_channels), jnp.float32)      # BatchNorm(C)
        beta = jnp.zeros((1, in_channels), jnp.float32)
        convs.append((w, b, gamma, beta))

    def head():                                              # GCNConv(C, C_out)
        return (dense((in_channels, out_channels), 1.0 / (in_channels ** 0.5),
                      jnp.bfloat16),
                dense((1, out_channels), 0.1))

    return {"emb": emb, "convs": convs,
            "conv_mu": head(), "conv_logstd": head()}


def g3median_forward(x_idx, edge_index, params):
    n = x_idx.shape[0]
    x_emb = params["emb"][x_idx.reshape(n)]                  # node_emb(x.squeeze())
    a_hat = normalized_adjacency(edge_index, n)
    return run_g3median(x_emb.astype(jnp.bfloat16),
                        a_hat.astype(jnp.bfloat16), params)


# ---------------------------------------------------------------------------
if __name__ == "__main__":
    N_NODES = 128
    N_EDGES = 512
    IN_CH, OUT_CH = 128, 64

    key = jax.random.PRNGKey(0)
    k_idx, k_src, k_dst, k_par = jax.random.split(key, 4)

    x_idx = jax.random.randint(k_idx, (N_NODES, 1), 0, 10000, dtype=jnp.int32)
    edge_index = jnp.stack([
        jax.random.randint(k_src, (N_EDGES,), 0, N_NODES, dtype=jnp.int32),
        jax.random.randint(k_dst, (N_EDGES,), 0, N_NODES, dtype=jnp.int32),
    ])

    params = init_params(k_par, IN_CH, OUT_CH)
    mu, logstd = g3median_forward(x_idx, edge_index, params)
    mu, logstd = jax.block_until_ready((mu, logstd))

    assert mu.shape == (N_NODES, OUT_CH), mu.shape
    assert logstd.shape == (N_NODES, OUT_CH), logstd.shape
    assert mu.dtype == jnp.float32 and logstd.dtype == jnp.float32
    assert bool(jnp.all(jnp.isfinite(mu)))
    assert bool(jnp.all(jnp.isfinite(logstd)))
    print("KERNEL_OK")
</pallas_src>

<mosaic_0001>
module attributes {stable_mosaic.version = 11 : i64} {
  func.func @g3median_kernel(%arg0: i32, %arg1: memref<128x128xbf16, #tpu.memory_space<vmem>>, %arg2: memref<128x128xbf16, #tpu.memory_space<vmem>>, %arg3: memref<128x128xbf16, #tpu.memory_space<vmem>>, %arg4: memref<1x128xf32, #tpu.memory_space<vmem>>, %arg5: memref<1x128xf32, #tpu.memory_space<vmem>>, %arg6: memref<1x128xf32, #tpu.memory_space<vmem>>, %arg7: memref<128x128xbf16, #tpu.memory_space<vmem>>, %arg8: memref<1x128xf32, #tpu.memory_space<vmem>>, %arg9: memref<1x128xf32, #tpu.memory_space<vmem>>, %arg10: memref<1x128xf32, #tpu.memory_space<vmem>>, %arg11: memref<128x128xbf16, #tpu.memory_space<vmem>>, %arg12: memref<1x128xf32, #tpu.memory_space<vmem>>, %arg13: memref<1x128xf32, #tpu.memory_space<vmem>>, %arg14: memref<1x128xf32, #tpu.memory_space<vmem>>, %arg15: memref<128x128xbf16, #tpu.memory_space<vmem>>, %arg16: memref<1x128xf32, #tpu.memory_space<vmem>>, %arg17: memref<1x128xf32, #tpu.memory_space<vmem>>, %arg18: memref<1x128xf32, #tpu.memory_space<vmem>>, %arg19: memref<128x64xbf16, #tpu.memory_space<vmem>>, %arg20: memref<1x64xf32, #tpu.memory_space<vmem>>, %arg21: memref<128x64xbf16, #tpu.memory_space<vmem>>, %arg22: memref<1x64xf32, #tpu.memory_space<vmem>>, %arg23: memref<2x128x64xf32, #tpu.memory_space<vmem>>) attributes {dimension_semantics = [#tpu.dimension_semantics<arbitrary>], iteration_bounds = array<i64: 1>, scalar_prefetch = 0 : i64, scratch_operands = 0 : i64, tpu.core_type = #tpu.core_type<tc>, window_params = [{pipeline_mode = #tpu.pipeline_mode<synchronous>, transform_indices = @transform_0, window_bounds = array<i64: 128, 128>}, {pipeline_mode = #tpu.pipeline_mode<synchronous>, transform_indices = @transform_1, window_bounds = array<i64: 128, 128>}, {pipeline_mode = #tpu.pipeline_mode<synchronous>, transform_indices = @transform_2, window_bounds = array<i64: 128, 128>}, {pipeline_mode = #tpu.pipeline_mode<synchronous>, transform_indices = @transform_3, window_bounds = array<i64: 1, 128>}, {pipeline_mode = #tpu.pipeline_mode<synchronous>, transform_indices = @transform_4, window_bounds = array<i64: 1, 128>}, {pipeline_mode = #tpu.pipeline_mode<synchronous>, transform_indices = @transform_5, window_bounds = array<i64: 1, 128>}, {pipeline_mode = #tpu.pipeline_mode<synchronous>, transform_indices = @transform_6, window_bounds = array<i64: 128, 128>}, {pipeline_mode = #tpu.pipeline_mode<synchronous>, transform_indices = @transform_7, window_bounds = array<i64: 1, 128>}, {pipeline_mode = #tpu.pipeline_mode<synchronous>, transform_indices = @transform_8, window_bounds = array<i64: 1, 128>}, {pipeline_mode = #tpu.pipeline_mode<synchronous>, transform_indices = @transform_9, window_bounds = array<i64: 1, 128>}, {pipeline_mode = #tpu.pipeline_mode<synchronous>, transform_indices = @transform_10, window_bounds = array<i64: 128, 128>}, {pipeline_mode = #tpu.pipeline_mode<synchronous>, transform_indices = @transform_11, window_bounds = array<i64: 1, 128>}, {pipeline_mode = #tpu.pipeline_mode<synchronous>, transform_indices = @transform_12, window_bounds = array<i64: 1, 128>}, {pipeline_mode = #tpu.pipeline_mode<synchronous>, transform_indices = @transform_13, window_bounds = array<i64: 1, 128>}, {pipeline_mode = #tpu.pipeline_mode<synchronous>, transform_indices = @transform_14, window_bounds = array<i64: 128, 128>}, {pipeline_mode = #tpu.pipeline_mode<synchronous>, transform_indices = @transform_15, window_bounds = array<i64: 1, 128>}, {pipeline_mode = #tpu.pipeline_mode<synchronous>, transform_indices = @transform_16, window_bounds = array<i64: 1, 128>}, {pipeline_mode = #tpu.pipeline_mode<synchronous>, transform_indices = @transform_17, window_bounds = array<i64: 1, 128>}, {pipeline_mode = #tpu.pipeline_mode<synchronous>, transform_indices = @transform_18, window_bounds = array<i64: 128, 64>}, {pipeline_mode = #tpu.pipeline_mode<synchronous>, transform_indices = @transform_19, window_bounds = array<i64: 1, 64>}, {pipeline_mode = #tpu.pipeline_mode<synchronous>, transform_indices = @transform_20, window_bounds = array<i64: 128, 64>}, {pipeline_mode = #tpu.pipeline_mode<synchronous>, transform_indices = @transform_21, window_bounds = array<i64: 1, 64>}, {pipeline_mode = #tpu.pipeline_mode<synchronous>, transform_indices = @transform_22, window_bounds = array<i64: 2, 128, 64>}]} {
    %c0 = arith.constant 0 : index
    %c0_0 = arith.constant 0 : index
    %0 = vector.load %arg2[%c0, %c0_0] : memref<128x128xbf16, #tpu.memory_space<vmem>>, vector<128x128xbf16>
    %c0_1 = arith.constant 0 : index
    %c0_2 = arith.constant 0 : index
    %1 = vector.load %arg1[%c0_1, %c0_2] : memref<128x128xbf16, #tpu.memory_space<vmem>>, vector<128x128xbf16>
    %c0_3 = arith.constant 0 : index
    %c0_4 = arith.constant 0 : index
    %2 = vector.load %arg3[%c0_3, %c0_4] : memref<128x128xbf16, #tpu.memory_space<vmem>>, vector<128x128xbf16>
    %cst = arith.constant dense<0.000000e+00> : vector<128x128xf32>
    %3 = tpu.matmul %1, %2, %cst {dimension_numbers = #tpu.dot_dimension_numbers<[1], [0], [0], [1], [0, 0, 1, 1], [], []>} : vector<128x128xbf16>, vector<128x128xbf16>, vector<128x128xf32> -> vector<128x128xf32>
    %4 = arith.truncf %3 : vector<128x128xf32> to vector<128x128xbf16>
    %cst_5 = arith.constant dense<0.000000e+00> : vector<128x128xf32>
    %5 = tpu.matmul %0, %4, %cst_5 {dimension_numbers = #tpu.dot_dimension_numbers<[1], [0], [0], [1], [0, 0, 1, 1], [], []>} : vector<128x128xbf16>, vector<128x128xbf16>, vector<128x128xf32> -> vector<128x128xf32>
    %c0_6 = arith.constant 0 : index
    %c0_7 = arith.constant 0 : index
    %6 = vector.load %arg4[%c0_6, %c0_7] : memref<1x128xf32, #tpu.memory_space<vmem>>, vector<1x128xf32>
    %7 = vector.broadcast %6 : vector<1x128xf32> to vector<128x128xf32>
    %8 = arith.addf %5, %7 : vector<128x128xf32>
    %cst_8 = arith.constant dense<0.000000e+00> : vector<128xf32>
    %9 = vector.multi_reduction <add>, %8, %cst_8 [0] : vector<128x128xf32> to vector<128xf32>
    %10 = vector.shape_cast %9 : vector<128xf32> to vector<1x128xf32>
    %cst_9 = arith.constant 1.280000e+02 : f32
    %11 = vector.broadcast %cst_9 : f32 to vector<1x128xf32>
    %12 = arith.divf %10, %11 : vector<1x128xf32>
    %13 = arith.mulf %8, %8 : vector<128x128xf32>
    %cst_10 = arith.constant dense<0.000000e+00> : vector<128xf32>
    %14 = vector.multi_reduction <add>, %13, %cst_10 [0] : vector<128x128xf32> to vector<128xf32>
    %15 = vector.shape_cast %14 : vector<128xf32> to vector<1x128xf32>
    %cst_11 = arith.constant 1.280000e+02 : f32
    %16 = vector.broadcast %cst_11 : f32 to vector<1x128xf32>
    %17 = arith.divf %15, %16 : vector<1x128xf32>
    %18 = arith.mulf %12, %12 : vector<1x128xf32>
    %19 = arith.subf %17, %18 : vector<1x128xf32>
    %20 = vector.broadcast %12 : vector<1x128xf32> to vector<128x128xf32>
    %21 = arith.subf %8, %20 : vector<128x128xf32>
    %cst_12 = arith.constant 9.99999974E-6 : f32
    %22 = vector.broadcast %cst_12 : f32 to vector<1x128xf32>
    %23 = arith.addf %19, %22 : vector<1x128xf32>
    %24 = math.rsqrt %23 : vector<1x128xf32>
    %25 = vector.broadcast %24 : vector<1x128xf32> to vector<128x128xf32>
    %26 = arith.mulf %21, %25 : vector<128x128xf32>
    %c0_13 = arith.constant 0 : index
    %c0_14 = arith.constant 0 : index
    %27 = vector.load %arg5[%c0_13, %c0_14] : memref<1x128xf32, #tpu.memory_space<vmem>>, vector<1x128xf32>
    %28 = vector.broadcast %27 : vector<1x128xf32> to vector<128x128xf32>
    %29 = arith.mulf %26, %28 : vector<128x128xf32>
    %c0_15 = arith.constant 0 : index
    %c0_16 = arith.constant 0 : index
    %30 = vector.load %arg6[%c0_15, %c0_16] : memref<1x128xf32, #tpu.memory_space<vmem>>, vector<1x128xf32>
    %31 = vector.broadcast %30 : vector<1x128xf32> to vector<128x128xf32>
    %32 = arith.addf %29, %31 : vector<128x128xf32>
    %cst_17 = arith.constant 0.000000e+00 : f32
    %33 = vector.broadcast %cst_17 : f32 to vector<128x128xf32>
    %34 = arith.maximumf %32, %33 : vector<128x128xf32>
    %35 = arith.truncf %34 : vector<128x128xf32> to vector<128x128xbf16>
    %c0_18 = arith.constant 0 : index
    %c0_19 = arith.constant 0 : index
    %36 = vector.load %arg7[%c0_18, %c0_19] : memref<128x128xbf16, #tpu.memory_space<vmem>>, vector<128x128xbf16>
    %cst_20 = arith.constant dense<0.000000e+00> : vector<128x128xf32>
    %37 = tpu.matmul %35, %36, %cst_20 {dimension_numbers = #tpu.dot_dimension_numbers<[1], [0], [0], [1], [0, 0, 1, 1], [], []>} : vector<128x128xbf16>, vector<128x128xbf16>, vector<128x128xf32> -> vector<128x128xf32>
    %38 = arith.truncf %37 : vector<128x128xf32> to vector<128x128xbf16>
    %cst_21 = arith.constant dense<0.000000e+00> : vector<128x128xf32>
    %39 = tpu.matmul %0, %38, %cst_21 {dimension_numbers = #tpu.dot_dimension_numbers<[1], [0], [0], [1], [0, 0, 1, 1], [], []>} : vector<128x128xbf16>, vector<128x128xbf16>, vector<128x128xf32> -> vector<128x128xf32>
    %c0_22 = arith.constant 0 : index
    %c0_23 = arith.constant 0 : index
    %40 = vector.load %arg8[%c0_22, %c0_23] : memref<1x128xf32, #tpu.memory_space<vmem>>, vector<1x128xf32>
    %41 = vector.broadcast %40 : vector<1x128xf32> to vector<128x128xf32>
    %42 = arith.addf %39, %41 : vector<128x128xf32>
    %cst_24 = arith.constant dense<0.000000e+00> : vector<128xf32>
    %43 = vector.multi_reduction <add>, %42, %cst_24 [0] : vector<128x128xf32> to vector<128xf32>
    %44 = vector.shape_cast %43 : vector<128xf32> to vector<1x128xf32>
    %cst_25 = arith.constant 1.280000e+02 : f32
    %45 = vector.broadcast %cst_25 : f32 to vector<1x128xf32>
    %46 = arith.divf %44, %45 : vector<1x128xf32>
    %47 = arith.mulf %42, %42 : vector<128x128xf32>
    %cst_26 = arith.constant dense<0.000000e+00> : vector<128xf32>
    %48 = vector.multi_reduction <add>, %47, %cst_26 [0] : vector<128x128xf32> to vector<128xf32>
    %49 = vector.shape_cast %48 : vector<128xf32> to vector<1x128xf32>
    %cst_27 = arith.constant 1.280000e+02 : f32
    %50 = vector.broadcast %cst_27 : f32 to vector<1x128xf32>
    %51 = arith.divf %49, %50 : vector<1x128xf32>
    %52 = arith.mulf %46, %46 : vector<1x128xf32>
    %53 = arith.subf %51, %52 : vector<1x128xf32>
    %54 = vector.broadcast %46 : vector<1x128xf32> to vector<128x128xf32>
    %55 = arith.subf %42, %54 : vector<128x128xf32>
    %cst_28 = arith.constant 9.99999974E-6 : f32
    %56 = vector.broadcast %cst_28 : f32 to vector<1x128xf32>
    %57 = arith.addf %53, %56 : vector<1x128xf32>
    %58 = math.rsqrt %57 : vector<1x128xf32>
    %59 = vector.broadcast %58 : vector<1x128xf32> to vector<128x128xf32>
    %60 = arith.mulf %55, %59 : vector<128x128xf32>
    %c0_29 = arith.constant 0 : index
    %c0_30 = arith.constant 0 : index
    %61 = vector.load %arg9[%c0_29, %c0_30] : memref<1x128xf32, #tpu.memory_space<vmem>>, vector<1x128xf32>
    %62 = vector.broadcast %61 : vector<1x128xf32> to vector<128x128xf32>
    %63 = arith.mulf %60, %62 : vector<128x128xf32>
    %c0_31 = arith.constant 0 : index
    %c0_32 = arith.constant 0 : index
    %64 = vector.load %arg10[%c0_31, %c0_32] : memref<1x128xf32, #tpu.memory_space<vmem>>, vector<1x128xf32>
    %65 = vector.broadcast %64 : vector<1x128xf32> to vector<128x128xf32>
    %66 = arith.addf %63, %65 : vector<128x128xf32>
    %cst_33 = arith.constant 0.000000e+00 : f32
    %67 = vector.broadcast %cst_33 : f32 to vector<128x128xf32>
    %68 = arith.maximumf %66, %67 : vector<128x128xf32>
    %69 = arith.truncf %68 : vector<128x128xf32> to vector<128x128xbf16>
    %c0_34 = arith.constant 0 : index
    %c0_35 = arith.constant 0 : index
    %70 = vector.load %arg11[%c0_34, %c0_35] : memref<128x128xbf16, #tpu.memory_space<vmem>>, vector<128x128xbf16>
    %cst_36 = arith.constant dense<0.000000e+00> : vector<128x128xf32>
    %71 = tpu.matmul %69, %70, %cst_36 {dimension_numbers = #tpu.dot_dimension_numbers<[1], [0], [0], [1], [0, 0, 1, 1], [], []>} : vector<128x128xbf16>, vector<128x128xbf16>, vector<128x128xf32> -> vector<128x128xf32>
    %72 = arith.truncf %71 : vector<128x128xf32> to vector<128x128xbf16>
    %cst_37 = arith.constant dense<0.000000e+00> : vector<128x128xf32>
    %73 = tpu.matmul %0, %72, %cst_37 {dimension_numbers = #tpu.dot_dimension_numbers<[1], [0], [0], [1], [0, 0, 1, 1], [], []>} : vector<128x128xbf16>, vector<128x128xbf16>, vector<128x128xf32> -> vector<128x128xf32>
    %c0_38 = arith.constant 0 : index
    %c0_39 = arith.constant 0 : index
    %74 = vector.load %arg12[%c0_38, %c0_39] : memref<1x128xf32, #tpu.memory_space<vmem>>, vector<1x128xf32>
    %75 = vector.broadcast %74 : vector<1x128xf32> to vector<128x128xf32>
    %76 = arith.addf %73, %75 : vector<128x128xf32>
    %cst_40 = arith.constant dense<0.000000e+00> : vector<128xf32>
    %77 = vector.multi_reduction <add>, %76, %cst_40 [0] : vector<128x128xf32> to vector<128xf32>
    %78 = vector.shape_cast %77 : vector<128xf32> to vector<1x128xf32>
    %cst_41 = arith.constant 1.280000e+02 : f32
    %79 = vector.broadcast %cst_41 : f32 to vector<1x128xf32>
    %80 = arith.divf %78, %79 : vector<1x128xf32>
    %81 = arith.mulf %76, %76 : vector<128x128xf32>
    %cst_42 = arith.constant dense<0.000000e+00> : vector<128xf32>
    %82 = vector.multi_reduction <add>, %81, %cst_42 [0] : vector<128x128xf32> to vector<128xf32>
    %83 = vector.shape_cast %82 : vector<128xf32> to vector<1x128xf32>
    %cst_43 = arith.constant 1.280000e+02 : f32
    %84 = vector.broadcast %cst_43 : f32 to vector<1x128xf32>
    %85 = arith.divf %83, %84 : vector<1x128xf32>
    %86 = arith.mulf %80, %80 : vector<1x128xf32>
    %87 = arith.subf %85, %86 : vector<1x128xf32>
    %88 = vector.broadcast %80 : vector<1x128xf32> to vector<128x128xf32>
    %89 = arith.subf %76, %88 : vector<128x128xf32>
    %cst_44 = arith.constant 9.99999974E-6 : f32
    %90 = vector.broadcast %cst_44 : f32 to vector<1x128xf32>
    %91 = arith.addf %87, %90 : vector<1x128xf32>
    %92 = math.rsqrt %91 : vector<1x128xf32>
    %93 = vector.broadcast %92 : vector<1x128xf32> to vector<128x128xf32>
    %94 = arith.mulf %89, %93 : vector<128x128xf32>
    %c0_45 = arith.constant 0 : index
    %c0_46 = arith.constant 0 : index
    %95 = vector.load %arg13[%c0_45, %c0_46] : memref<1x128xf32, #tpu.memory_space<vmem>>, vector<1x128xf32>
    %96 = vector.broadcast %95 : vector<1x128xf32> to vector<128x128xf32>
    %97 = arith.mulf %94, %96 : vector<128x128xf32>
    %c0_47 = arith.constant 0 : index
    %c0_48 = arith.constant 0 : index
    %98 = vector.load %arg14[%c0_47, %c0_48] : memref<1x128xf32, #tpu.memory_space<vmem>>, vector<1x128xf32>
    %99 = vector.broadcast %98 : vector<1x128xf32> to vector<128x128xf32>
    %100 = arith.addf %97, %99 : vector<128x128xf32>
    %cst_49 = arith.constant 0.000000e+00 : f32
    %101 = vector.broadcast %cst_49 : f32 to vector<128x128xf32>
    %102 = arith.maximumf %100, %101 : vector<128x128xf32>
    %103 = arith.truncf %102 : vector<128x128xf32> to vector<128x128xbf16>
    %c0_50 = arith.constant 0 : index
    %c0_51 = arith.constant 0 : index
    %104 = vector.load %arg15[%c0_50, %c0_51] : memref<128x128xbf16, #tpu.memory_space<vmem>>, vector<128x128xbf16>
    %cst_52 = arith.constant dense<0.000000e+00> : vector<128x128xf32>
    %105 = tpu.matmul %103, %104, %cst_52 {dimension_numbers = #tpu.dot_dimension_numbers<[1], [0], [0], [1], [0, 0, 1, 1], [], []>} : vector<128x128xbf16>, vector<128x128xbf16>, vector<128x128xf32> -> vector<128x128xf32>
    %106 = arith.truncf %105 : vector<128x128xf32> to vector<128x128xbf16>
    %cst_53 = arith.constant dense<0.000000e+00> : vector<128x128xf32>
    %107 = tpu.matmul %0, %106, %cst_53 {dimension_numbers = #tpu.dot_dimension_numbers<[1], [0], [0], [1], [0, 0, 1, 1], [], []>} : vector<128x128xbf16>, vector<128x128xbf16>, vector<128x128xf32> -> vector<128x128xf32>
    %c0_54 = arith.constant 0 : index
    %c0_55 = arith.constant 0 : index
    %108 = vector.load %arg16[%c0_54, %c0_55] : memref<1x128xf32, #tpu.memory_space<vmem>>, vector<1x128xf32>
    %109 = vector.broadcast %108 : vector<1x128xf32> to vector<128x128xf32>
    %110 = arith.addf %107, %109 : vector<128x128xf32>
    %cst_56 = arith.constant dense<0.000000e+00> : vector<128xf32>
    %111 = vector.multi_reduction <add>, %110, %cst_56 [0] : vector<128x128xf32> to vector<128xf32>
    %112 = vector.shape_cast %111 : vector<128xf32> to vector<1x128xf32>
    %cst_57 = arith.constant 1.280000e+02 : f32
    %113 = vector.broadcast %cst_57 : f32 to vector<1x128xf32>
    %114 = arith.divf %112, %113 : vector<1x128xf32>
    %115 = arith.mulf %110, %110 : vector<128x128xf32>
    %cst_58 = arith.constant dense<0.000000e+00> : vector<128xf32>
    %116 = vector.multi_reduction <add>, %115, %cst_58 [0] : vector<128x128xf32> to vector<128xf32>
    %117 = vector.shape_cast %116 : vector<128xf32> to vector<1x128xf32>
    %cst_59 = arith.constant 1.280000e+02 : f32
    %118 = vector.broadcast %cst_59 : f32 to vector<1x128xf32>
    %119 = arith.divf %117, %118 : vector<1x128xf32>
    %120 = arith.mulf %114, %114 : vector<1x128xf32>
    %121 = arith.subf %119, %120 : vector<1x128xf32>
    %122 = vector.broadcast %114 : vector<1x128xf32> to vector<128x128xf32>
    %123 = arith.subf %110, %122 : vector<128x128xf32>
    %cst_60 = arith.constant 9.99999974E-6 : f32
    %124 = vector.broadcast %cst_60 : f32 to vector<1x128xf32>
    %125 = arith.addf %121, %124 : vector<1x128xf32>
    %126 = math.rsqrt %125 : vector<1x128xf32>
    %127 = vector.broadcast %126 : vector<1x128xf32> to vector<128x128xf32>
    %128 = arith.mulf %123, %127 : vector<128x128xf32>
    %c0_61 = arith.constant 0 : index
    %c0_62 = arith.constant 0 : index
    %129 = vector.load %arg17[%c0_61, %c0_62] : memref<1x128xf32, #tpu.memory_space<vmem>>, vector<1x128xf32>
    %130 = vector.broadcast %129 : vector<1x128xf32> to vector<128x128xf32>
    %131 = arith.mulf %128, %130 : vector<128x128xf32>
    %c0_63 = arith.constant 0 : index
    %c0_64 = arith.constant 0 : index
    %132 = vector.load %arg18[%c0_63, %c0_64] : memref<1x128xf32, #tpu.memory_space<vmem>>, vector<1x128xf32>
    %133 = vector.broadcast %132 : vector<1x128xf32> to vector<128x128xf32>
    %134 = arith.addf %131, %133 : vector<128x128xf32>
    %cst_65 = arith.constant 0.000000e+00 : f32
    %135 = vector.broadcast %cst_65 : f32 to vector<128x128xf32>
    %136 = arith.maximumf %134, %135 : vector<128x128xf32>
    %137 = arith.truncf %136 : vector<128x128xf32> to vector<128x128xbf16>
    %c0_66 = arith.constant 0 : index
    %c0_67 = arith.constant 0 : index
    %138 = vector.load %arg19[%c0_66, %c0_67] : memref<128x64xbf16, #tpu.memory_space<vmem>>, vector<128x64xbf16>
    %cst_68 = arith.constant dense<0.000000e+00> : vector<128x64xf32>
    %139 = tpu.matmul %137, %138, %cst_68 {dimension_numbers = #tpu.dot_dimension_numbers<[1], [0], [0], [1], [0, 0, 1, 1], [], []>} : vector<128x128xbf16>, vector<128x64xbf16>, vector<128x64xf32> -> vector<128x64xf32>
    %140 = arith.truncf %139 : vector<128x64xf32> to vector<128x64xbf16>
    %cst_69 = arith.constant dense<0.000000e+00> : vector<128x64xf32>
    %141 = tpu.matmul %0, %140, %cst_69 {dimension_numbers = #tpu.dot_dimension_numbers<[1], [0], [0], [1], [0, 0, 1, 1], [], []>} : vector<128x128xbf16>, vector<128x64xbf16>, vector<128x64xf32> -> vector<128x64xf32>
    %c0_70 = arith.constant 0 : index
    %c0_71 = arith.constant 0 : index
    %142 = vector.load %arg20[%c0_70, %c0_71] : memref<1x64xf32, #tpu.memory_space<vmem>>, vector<1x64xf32>
    %143 = vector.broadcast %142 : vector<1x64xf32> to vector<128x64xf32>
    %144 = arith.addf %141, %143 : vector<128x64xf32>
    %c0_72 = arith.constant 0 : index
    %c0_73 = arith.constant 0 : index
    %c0_74 = arith.constant 0 : index
    %145 = vector.load %arg23[%c0_72, %c0_73, %c0_74] : memref<2x128x64xf32, #tpu.memory_space<vmem>>, vector<1x128x64xf32>
    %146 = vector.shape_cast %145 : vector<1x128x64xf32> to vector<128x64xf32>
    %147 = vector.shape_cast %144 : vector<128x64xf32> to vector<1x128x64xf32>
    tpu.vector_store %arg23[%c0_72, %c0_73, %c0_74], %147 {strides = array<i32>} : memref<2x128x64xf32, #tpu.memory_space<vmem>>, vector<1x128x64xf32>,
    %c0_75 = arith.constant 0 : index
    %c0_76 = arith.constant 0 : index
    %148 = vector.load %arg21[%c0_75, %c0_76] : memref<128x64xbf16, #tpu.memory_space<vmem>>, vector<128x64xbf16>
    %cst_77 = arith.constant dense<0.000000e+00> : vector<128x64xf32>
    %149 = tpu.matmul %137, %148, %cst_77 {dimension_numbers = #tpu.dot_dimension_numbers<[1], [0], [0], [1], [0, 0, 1, 1], [], []>} : vector<128x128xbf16>, vector<128x64xbf16>, vector<128x64xf32> -> vector<128x64xf32>
    %150 = arith.truncf %149 : vector<128x64xf32> to vector<128x64xbf16>
    %cst_78 = arith.constant dense<0.000000e+00> : vector<128x64xf32>
    %151 = tpu.matmul %0, %150, %cst_78 {dimension_numbers = #tpu.dot_dimension_numbers<[1], [0], [0], [1], [0, 0, 1, 1], [], []>} : vector<128x128xbf16>, vector<128x64xbf16>, vector<128x64xf32> -> vector<128x64xf32>
    %c0_79 = arith.constant 0 : index
    %c0_80 = arith.constant 0 : index
    %152 = vector.load %arg22[%c0_79, %c0_80] : memref<1x64xf32, #tpu.memory_space<vmem>>, vector<1x64xf32>
    %153 = vector.broadcast %152 : vector<1x64xf32> to vector<128x64xf32>
    %154 = arith.addf %151, %153 : vector<128x64xf32>
    %c1 = arith.constant 1 : index
    %c0_81 = arith.constant 0 : index
    %c0_82 = arith.constant 0 : index
    %155 = vector.load %arg23[%c1, %c0_81, %c0_82] : memref<2x128x64xf32, #tpu.memory_space<vmem>>, vector<1x128x64xf32>
    %156 = vector.shape_cast %155 : vector<1x128x64xf32> to vector<128x64xf32>
    %157 = vector.shape_cast %154 : vector<128x64xf32> to vector<1x128x64xf32>
    tpu.vector_store %arg23[%c1, %c0_81, %c0_82], %157 {strides = array<i32>} : memref<2x128x64xf32, #tpu.memory_space<vmem>>, vector<1x128x64xf32>,
    return
  }
  func.func @transform_0(%arg0: i32) -> (i32, i32) {
    %c0_i32 = arith.constant 0 : i32
    %c0_i32_0 = arith.constant 0 : i32
    %c0_i32_1 = arith.constant 0 : i32
    return %c0_i32, %c0_i32_0 : i32, i32
  }
  func.func @transform_1(%arg0: i32) -> (i32, i32) {
    %c0_i32 = arith.constant 0 : i32
    %c0_i32_0 = arith.constant 0 : i32
    %c0_i32_1 = arith.constant 0 : i32
    return %c0_i32, %c0_i32_0 : i32, i32
  }
  func.func @transform_2(%arg0: i32) -> (i32, i32) {
    %c0_i32 = arith.constant 0 : i32
    %c0_i32_0 = arith.constant 0 : i32
    %c0_i32_1 = arith.constant 0 : i32
    return %c0_i32, %c0_i32_0 : i32, i32
  }
  func.func @transform_3(%arg0: i32) -> (i32, i32) {
    %c0_i32 = arith.constant 0 : i32
    %c0_i32_0 = arith.constant 0 : i32
    %c0_i32_1 = arith.constant 0 : i32
    return %c0_i32, %c0_i32_0 : i32, i32
  }
  func.func @transform_4(%arg0: i32) -> (i32, i32) {
    %c0_i32 = arith.constant 0 : i32
    %c0_i32_0 = arith.constant 0 : i32
    %c0_i32_1 = arith.constant 0 : i32
    return %c0_i32, %c0_i32_0 : i32, i32
  }
  func.func @transform_5(%arg0: i32) -> (i32, i32) {
    %c0_i32 = arith.constant 0 : i32
    %c0_i32_0 = arith.constant 0 : i32
    %c0_i32_1 = arith.constant 0 : i32
    return %c0_i32, %c0_i32_0 : i32, i32
  }
  func.func @transform_6(%arg0: i32) -> (i32, i32) {
    %c0_i32 = arith.constant 0 : i32
    %c0_i32_0 = arith.constant 0 : i32
    %c0_i32_1 = arith.constant 0 : i32
    return %c0_i32, %c0_i32_0 : i32, i32
  }
  func.func @transform_7(%arg0: i32) -> (i32, i32) {
    %c0_i32 = arith.constant 0 : i32
    %c0_i32_0 = arith.constant 0 : i32
    %c0_i32_1 = arith.constant 0 : i32
    return %c0_i32, %c0_i32_0 : i32, i32
  }
  func.func @transform_8(%arg0: i32) -> (i32, i32) {
    %c0_i32 = arith.constant 0 : i32
    %c0_i32_0 = arith.constant 0 : i32
    %c0_i32_1 = arith.constant 0 : i32
    return %c0_i32, %c0_i32_0 : i32, i32
  }
  func.func @transform_9(%arg0: i32) -> (i32, i32) {
    %c0_i32 = arith.constant 0 : i32
    %c0_i32_0 = arith.constant 0 : i32
    %c0_i32_1 = arith.constant 0 : i32
    return %c0_i32, %c0_i32_0 : i32, i32
  }
  func.func @transform_10(%arg0: i32) -> (i32, i32) {
    %c0_i32 = arith.constant 0 : i32
    %c0_i32_0 = arith.constant 0 : i32
    %c0_i32_1 = arith.constant 0 : i32
    return %c0_i32, %c0_i32_0 : i32, i32
  }
  func.func @transform_11(%arg0: i32) -> (i32, i32) {
    %c0_i32 = arith.constant 0 : i32
    %c0_i32_0 = arith.constant 0 : i32
    %c0_i32_1 = arith.constant 0 : i32
    return %c0_i32, %c0_i32_0 : i32, i32
  }
  func.func @transform_12(%arg0: i32) -> (i32, i32) {
    %c0_i32 = arith.constant 0 : i32
    %c0_i32_0 = arith.constant 0 : i32
    %c0_i32_1 = arith.constant 0 : i32
    return %c0_i32, %c0_i32_0 : i32, i32
  }
  func.func @transform_13(%arg0: i32) -> (i32, i32) {
    %c0_i32 = arith.constant 0 : i32
    %c0_i32_0 = arith.constant 0 : i32
    %c0_i32_1 = arith.constant 0 : i32
    return %c0_i32, %c0_i32_0 : i32, i32
  }
  func.func @transform_14(%arg0: i32) -> (i32, i32) {
    %c0_i32 = arith.constant 0 : i32
    %c0_i32_0 = arith.constant 0 : i32
    %c0_i32_1 = arith.constant 0 : i32
    return %c0_i32, %c0_i32_0 : i32, i32
  }
  func.func @transform_15(%arg0: i32) -> (i32, i32) {
    %c0_i32 = arith.constant 0 : i32
    %c0_i32_0 = arith.constant 0 : i32
    %c0_i32_1 = arith.constant 0 : i32
    return %c0_i32, %c0_i32_0 : i32, i32
  }
  func.func @transform_16(%arg0: i32) -> (i32, i32) {
    %c0_i32 = arith.constant 0 : i32
    %c0_i32_0 = arith.constant 0 : i32
    %c0_i32_1 = arith.constant 0 : i32
    return %c0_i32, %c0_i32_0 : i32, i32
  }
  func.func @transform_17(%arg0: i32) -> (i32, i32) {
    %c0_i32 = arith.constant 0 : i32
    %c0_i32_0 = arith.constant 0 : i32
    %c0_i32_1 = arith.constant 0 : i32
    return %c0_i32, %c0_i32_0 : i32, i32
  }
  func.func @transform_18(%arg0: i32) -> (i32, i32) {
    %c0_i32 = arith.constant 0 : i32
    %c0_i32_0 = arith.constant 0 : i32
    %c0_i32_1 = arith.constant 0 : i32
    return %c0_i32, %c0_i32_0 : i32, i32
  }
  func.func @transform_19(%arg0: i32) -> (i32, i32) {
    %c0_i32 = arith.constant 0 : i32
    %c0_i32_0 = arith.constant 0 : i32
    %c0_i32_1 = arith.constant 0 : i32
    return %c0_i32, %c0_i32_0 : i32, i32
  }
  func.func @transform_20(%arg0: i32) -> (i32, i32) {
    %c0_i32 = arith.constant 0 : i32
    %c0_i32_0 = arith.constant 0 : i32
    %c0_i32_1 = arith.constant 0 : i32
    return %c0_i32, %c0_i32_0 : i32, i32
  }
  func.func @transform_21(%arg0: i32) -> (i32, i32) {
    %c0_i32 = arith.constant 0 : i32
    %c0_i32_0 = arith.constant 0 : i32
    %c0_i32_1 = arith.constant 0 : i32
    return %c0_i32, %c0_i32_0 : i32, i32
  }
  func.func @transform_22(%arg0: i32) -> (i32, i32, i32) {
    %c0_i32 = arith.constant 0 : i32
    %c0_i32_0 = arith.constant 0 : i32
    %c0_i32_1 = arith.constant 0 : i32
    %c0_i32_2 = arith.constant 0 : i32
    return %c0_i32, %c0_i32_0, %c0_i32_1 : i32, i32, i32
  }
}

</mosaic_0001>

<bundles_post_ra>
// kernel: tpu_custom_call.1
= control target key start
LH: loop header
LB: loop body
LE: loop exit
PB: predicated region body
PF: predicated region fallthrough
CT: control target
= control target key end

     0   :  { %s5251_s0 = inlined_call_operand.vmem [shape: bf16[128,128], index: 0, kind: input, shape index: {}]   ;;  %s5252_s1 = inlined_call_operand.vmem [shape: bf16[128,128], index: 1, kind: input, shape index: {}]   ;;  %s5253_s2 = inlined_call_operand.vmem [shape: bf16[128,128], index: 2, kind: input, shape index: {}]   ;;  %s5254_s3 = inlined_call_operand.hbm [shape: f32[1,128], index: 3, kind: input, shape index: {}]   ;;  %s5255_s4 = inlined_call_operand.hbm [shape: f32[1,128], index: 4, kind: input, shape index: {}]   ;;  %s5256_s5 = inlined_call_operand.hbm [shape: f32[1,128], index: 5, kind: input, shape index: {}]   ;;  %s5257_s6 = inlined_call_operand.hbm [shape: bf16[128,128], index: 6, kind: input, shape index: {}]   ;;  %s5258_s7 = inlined_call_operand.hbm [shape: f32[1,128], index: 7, kind: input, shape index: {}]   ;;  %s5259_s8 = inlined_call_operand.hbm [shape: f32[1,128], index: 8, kind: input, shape index: {}]   ;;  %s5260_s9 = inlined_call_operand.hbm [shape: f32[1,128], index: 9, kind: input, shape index: {}]   ;;  %s5261_s10 = inlined_call_operand.hbm [shape: bf16[128,128], index: 10, kind: input, shape index: {}]   ;;  %s5262_s11 = inlined_call_operand.hbm [shape: f32[1,128], index: 11, kind: input, shape index: {}]   ;;  %s5263_s12 = inlined_call_operand.hbm [shape: f32[1,128], index: 12, kind: input, shape index: {}]   ;;  %s5264_s13 = inlined_call_operand.hbm [shape: f32[1,128], index: 13, kind: input, shape index: {}]   ;;  %s5265_s14 = inlined_call_operand.hbm [shape: bf16[128,128], index: 14, kind: input, shape index: {}]   ;;  %s5266_s15 = inlined_call_operand.hbm [shape: f32[1,128], index: 15, kind: input, shape index: {}]   ;;  %s5267_s16 = inlined_call_operand.hbm [shape: f32[1,128], index: 16, kind: input, shape index: {}]   ;;  %s5268_s17 = inlined_call_operand.hbm [shape: f32[1,128], index: 17, kind: input, shape index: {}]   ;;  %s5269_s18 = inlined_call_operand.vmem [shape: bf16[128,64], index: 18, kind: input, shape index: {}]   ;;  %s5270_s19 = inlined_call_operand.vmem [shape: f32[1,64], index: 19, kind: input, shape index: {}]   ;;  %s5271_s20 = inlined_call_operand.vmem [shape: bf16[128,64], index: 20, kind: input, shape index: {}]   ;;  %s5272_s21 = inlined_call_operand.vmem [shape: f32[1,64], index: 21, kind: input, shape index: {}]   ;;  %s5273_s22 = inlined_call_operand.vmem [shape: f32[2,128,64], index: 22, kind: output, shape index: {}]  }
   0x1   :  { %5282 = sst [smem:[#allocation33_spill]] %s5251_s0 }
   0x2   :  { %5283 = sst [smem:[#allocation34_spill]] %s5252_s1 }
   0x3   :  { %5284 = sst [smem:[#allocation35_spill]] %s5253_s2 }
   0x4   :  { %5285 = sst [smem:[#allocation36_spill]] %s5254_s3 }
   0x5   :  { %5286 = sst [smem:[#allocation37_spill]] %s5255_s4 }
   0x6   :  { %5287 = sst [smem:[#allocation38_spill]] %s5256_s5 }
   0x7   :  { %5288 = sst [smem:[#allocation39_spill]] %s5257_s6 }
   0x8   :  { %5289 = sst [smem:[#allocation40_spill]] %s5272_s21 }
   0x9   :  { %5290 = sst [smem:[#allocation41_spill]] %s5273_s22 }
   0xa   :  { %27 = vsyncpa [#allocation3], 0 }
   0xb   :  { %28 = vsyncpa [#allocation5], 0 }
   0xc   :  { %29 = vsyncpa [#allocation8], 0 }
   0xd   :  { %30 = vsyncpa [#allocation11], 0 }
   0xe   :  { %31 = vsyncpa [#allocation14], 0 }
   0xf   :  { %32 = vsyncpa [#allocation17], 0 }
  0x10   :  { %33 = vsyncpa [#allocation20], 0 }
  0x11   :  { %34 = vsyncpa [#allocation23], 0  ;;  %s3849_s3 = smov [#allocation4]   ;;  %s3850_s29 = smov [#allocation7]  }
  0x12   :  { %s57_s28 = sshll.u32 %s3849_s3, 4  ;;  %s76_s30 = sshll.u32 %s3850_s29, 4  ;;  %s58_s28 = int_to_ptr.vmem [resolvable:$true] %s57_s28  ;;  %s3981_s30 = int_to_ptr.vmem [resolvable:$true] %s76_s30 }
  0x13   :  { %s5291_s23 = sld [smem:[#allocation37_spill]] }
  0x19   :  { %s3503_s1 = scalar_lea.hbm %s5291_s23, 16 }
  0x1a   :  { %p3504_p0 = scmp.ne.s32.totalorder %s5291_s23, %s3503_s1  ;;  %p3507_p1 = scmp.lt.u32.totalorder %s3503_s1, %s5291_s23 }
  0x1c   :  { %p3509_p2 = pnand %p3507_p1, %p3504_p0 }
  0x1e   :  { %3512 = shalt.err (!%p3509_p2)
}
  0x1f   :  { %s3513_s26 = scalar_lea.vmem %s58_s28, 16  ;;  %s3517_s2 = scalar_lea.vmem %s58_s28, 32 }
  0x20   :  { %p3514_p3 = scmp.ne.s32.totalorder %s58_s28, %s3513_s26  ;;  %p3518_p4 = scmp.lt.s32.totalorder %s58_s28, %s58_s28 }
  0x21   :  { %p3519_p5 = scmp.lt.s32.totalorder %s3517_s2, %s3513_s26 }
  0x23   :  { %p3520_p6 = por %p3519_p5, %p3518_p4 }
  0x25   :  { %p3521_p7 = pnand %p3520_p6, %p3514_p3 }
  0x27   :  { %3524 = shalt.err (!%p3521_p7)
}
  0x28   :  { %60 = dma.hbm_to_vmem [thread:$0]  %s5291_s23, 16, %s58_s28, [#allocation5]  }
  0x29   :  { %s5292_s0 = sld [smem:[#allocation39_spill]] }
  0x2f   :  { %s3525_s5 = scalar_lea.hbm %s5292_s0, 1024 }
  0x30   :  { %p3526_p8 = scmp.ne.s32.totalorder %s5292_s0, %s3525_s5  ;;  %p3529_p9 = scmp.lt.u32.totalorder %s3525_s5, %s5292_s0 }
  0x32   :  { %p3531_p10 = pnand %p3529_p9, %p3526_p8 }
  0x34   :  { %3534 = shalt.err (!%p3531_p10)
}
  0x35   :  { %s3535_s26 = scalar_lea.vmem %s3981_s30, 1024  ;;  %p3540_p12 = scmp.lt.s32.totalorder %s3981_s30, %s3981_s30 }
  0x36   :  { %p3536_p11 = scmp.ne.s32.totalorder %s3981_s30, %s3535_s26  ;;  %p3541_p13 = scmp.lt.s32.totalorder %s3535_s26, %s3535_s26 }
  0x38   :  { %p3542_p0 = por %p3541_p13, %p3540_p12 }
  0x3a   :  { %p3543_p1 = pnand %p3542_p0, %p3536_p11 }
  0x3c   :  { %3546 = shalt.err (!%p3543_p1)
}
  0x3d   :  { %s3851_s28 = smov 64   ;;  %s3852_s23 = smov 4  }
  0x3e   :  { %82 = dma.hbm_to_vmem [thread:$0]  %s5292_s0, 1024, %s3981_s30, [#allocation8], %s3851_s28, %s3851_s28, %s3852_s23  }
  0x3f   :  { %s3853_s3 = smov [#allocation10]   ;;  %s3854_s4 = smov [#allocation13]  }
  0x40   :  { %s99_s29 = sshll.u32 %s3853_s3, 4  ;;  %s118_s5 = sshll.u32 %s3854_s4, 4  ;;  %s100_s29 = int_to_ptr.vmem [resolvable:$true] %s99_s29  ;;  %s4015_s5 = int_to_ptr.vmem [resolvable:$true] %s118_s5 }
  0x41   :  { %s3547_s6 = scalar_lea.hbm %s5259_s8, 16 }
  0x42   :  { %p3548_p2 = scmp.ne.s32.totalorder %s5259_s8, %s3547_s6  ;;  %p3551_p3 = scmp.lt.u32.totalorder %s3547_s6, %s5259_s8 }
  0x44   :  { %p3553_p4 = pnand %p3551_p3, %p3548_p2 }
  0x46   :  { %3556 = shalt.err (!%p3553_p4)
}
  0x47   :  { %s3557_s30 = scalar_lea.vmem %s100_s29, 16  ;;  %s3561_s0 = scalar_lea.vmem %s100_s29, 32 }
  0x48   :  { %p3558_p5 = scmp.ne.s32.totalorder %s100_s29, %s3557_s30  ;;  %p3562_p6 = scmp.lt.s32.totalorder %s100_s29, %s100_s29 }
  0x49   :  { %p3563_p7 = scmp.lt.s32.totalorder %s3561_s0, %s3557_s30 }
  0x4b   :  { %p3564_p8 = por %p3563_p7, %p3562_p6 }
  0x4d   :  { %p3565_p9 = pnand %p3564_p8, %p3558_p5 }
  0x4f   :  { %3568 = shalt.err (!%p3565_p9)
}
  0x50   :  { %102 = dma.hbm_to_vmem [thread:$0]  %s5259_s8, 16, %s100_s29, [#allocation11]  }
  0x51   :  { %s3569_s24 = scalar_lea.hbm %s5261_s10, 1024 }
  0x52   :  { %p3570_p10 = scmp.ne.s32.totalorder %s5261_s10, %s3569_s24  ;;  %p3573_p11 = scmp.lt.u32.totalorder %s3569_s24, %s5261_s10 }
  0x54   :  { %p3575_p12 = pnand %p3573_p11, %p3570_p10 }
  0x56   :  { %3578 = shalt.err (!%p3575_p12)
}
  0x57   :  { %s3579_s25 = scalar_lea.vmem %s4015_s5, 1024  ;;  %p3584_p0 = scmp.lt.s32.totalorder %s4015_s5, %s4015_s5 }
  0x58   :  { %p3580_p13 = scmp.ne.s32.totalorder %s4015_s5, %s3579_s25  ;;  %p3585_p1 = scmp.lt.s32.totalorder %s3579_s25, %s3579_s25 }
  0x5a   :  { %p3586_p2 = por %p3585_p1, %p3584_p0 }
  0x5c   :  { %p3587_p3 = pnand %p3586_p2, %p3580_p13 }
  0x5e   :  { %3590 = shalt.err (!%p3587_p3)
}
  0x5f   :  { %124 = dma.hbm_to_vmem [thread:$0]  %s5261_s10, 1024, %s4015_s5, [#allocation14], %s3851_s28, %s3851_s28, %s3852_s23  }
  0x60   :  { %s3855_s26 = smov [#allocation16]   ;;  %s3856_s0 = smov [#allocation19]  }
  0x61   :  { %s141_s30 = sshll.u32 %s3855_s26, 4  ;;  %s160_s2 = sshll.u32 %s3856_s0, 4  ;;  %s142_s30 = int_to_ptr.vmem [resolvable:$true] %s141_s30  ;;  %s4049_s2 = int_to_ptr.vmem [resolvable:$true] %s160_s2 }
  0x62   :  { %s3591_s4 = scalar_lea.hbm %s5263_s12, 16 }
  0x63   :  { %p3592_p4 = scmp.ne.s32.totalorder %s5263_s12, %s3591_s4  ;;  %p3595_p5 = scmp.lt.u32.totalorder %s3591_s4, %s5263_s12 }
  0x65   :  { %p3597_p6 = pnand %p3595_p5, %p3592_p4 }
  0x67   :  { %3600 = shalt.err (!%p3597_p6)
}
  0x68   :  { %s3601_s10 = scalar_lea.vmem %s142_s30, 16  ;;  %s3605_s5 = scalar_lea.vmem %s142_s30, 32 }
  0x69   :  { %p3602_p7 = scmp.ne.s32.totalorder %s142_s30, %s3601_s10  ;;  %p3606_p8 = scmp.lt.s32.totalorder %s142_s30, %s142_s30 }
  0x6a   :  { %p3607_p9 = scmp.lt.s32.totalorder %s3605_s5, %s3601_s10 }
  0x6c   :  { %p3608_p10 = por %p3607_p9, %p3606_p8 }
  0x6e   :  { %p3609_p11 = pnand %p3608_p10, %p3602_p7 }
  0x70   :  { %3612 = shalt.err (!%p3609_p11)
}
  0x71   :  { %144 = dma.hbm_to_vmem [thread:$0]  %s5263_s12, 16, %s142_s30, [#allocation17]  }
  0x72   :  { %s3613_s26 = scalar_lea.hbm %s5265_s14, 1024 }
  0x73   :  { %p3614_p12 = scmp.ne.s32.totalorder %s5265_s14, %s3613_s26  ;;  %p3617_p13 = scmp.lt.u32.totalorder %s3613_s26, %s5265_s14 }
  0x75   :  { %p3619_p0 = pnand %p3617_p13, %p3614_p12 }
  0x77   :  { %3622 = shalt.err (!%p3619_p0)
}
  0x78   :  { %s3623_s24 = scalar_lea.vmem %s4049_s2, 1024  ;;  %p3628_p2 = scmp.lt.s32.totalorder %s4049_s2, %s4049_s2 }
  0x79   :  { %p3624_p1 = scmp.ne.s32.totalorder %s4049_s2, %s3623_s24  ;;  %p3629_p3 = scmp.lt.s32.totalorder %s3623_s24, %s3623_s24 }
  0x7b   :  { %p3630_p4 = por %p3629_p3, %p3628_p2 }
  0x7d   :  { %p3631_p5 = pnand %p3630_p4, %p3624_p1 }
  0x7f   :  { %3634 = shalt.err (!%p3631_p5)
}
  0x80   :  { %166 = dma.hbm_to_vmem [thread:$0]  %s5265_s14, 1024, %s4049_s2, [#allocation20], %s3851_s28, %s3851_s28, %s3852_s23  }
  0x81   :  { %s3857_s21 = smov [#allocation22]   ;;  %s3858_s1 = smov [#allocation2]  }
  0x82   :  { %s183_s22 = sshll.u32 %s3857_s21, 4  ;;  %s47_s10 = sshll.u32 %s3858_s1, 4  ;;  %s184_s22 = int_to_ptr.vmem [resolvable:$true] %s183_s22  ;;  %s48_s10 = int_to_ptr.vmem [resolvable:$true] %s47_s10 }
  0x83   :  { %s3635_s25 = scalar_lea.hbm %s5267_s16, 16 }
  0x84   :  { %p3636_p6 = scmp.ne.s32.totalorder %s5267_s16, %s3635_s25  ;;  %p3639_p7 = scmp.lt.u32.totalorder %s3635_s25, %s5267_s16 }
  0x86   :  { %p3641_p8 = pnand %p3639_p7, %p3636_p6 }
  0x88   :  { %3644 = shalt.err (!%p3641_p8)
}
  0x89   :  { %s3645_s14 = scalar_lea.vmem %s184_s22, 16  ;;  %s3649_s28 = scalar_lea.vmem %s184_s22, 32 }
  0x8a   :  { %p3646_p9 = scmp.ne.s32.totalorder %s184_s22, %s3645_s14  ;;  %p3650_p10 = scmp.lt.s32.totalorder %s184_s22, %s184_s22 }
  0x8b   :  { %p3651_p11 = scmp.lt.s32.totalorder %s3649_s28, %s3645_s14 }
  0x8d   :  { %p3652_p12 = por %p3651_p11, %p3650_p10 }
  0x8f   :  { %p3653_p13 = pnand %p3652_p12, %p3646_p9 }
  0x91   :  { %3656 = shalt.err (!%p3653_p13)
}
  0x92   :  { %186 = dma.hbm_to_vmem [thread:$0]  %s5267_s16, 16, %s184_s22, [#allocation23]  }
  0x93   :  { %s5293_s4 = sld [smem:[#allocation36_spill]] }
  0x99   :  { %s3657_s24 = scalar_lea.hbm %s5293_s4, 16 }
  0x9a   :  { %p3658_p0 = scmp.ne.s32.totalorder %s5293_s4, %s3657_s24  ;;  %p3661_p1 = scmp.lt.u32.totalorder %s3657_s24, %s5293_s4 }
  0x9c   :  { %p3663_p2 = pnand %p3661_p1, %p3658_p0 }
  0x9e   :  { %3666 = shalt.err (!%p3663_p2)
}
  0x9f   :  { %s3667_s5 = scalar_lea.vmem %s48_s10, 16  ;;  %s3671_s6 = scalar_lea.vmem %s48_s10, 32 }
  0xa0   :  { %p3668_p3 = scmp.ne.s32.totalorder %s48_s10, %s3667_s5  ;;  %p3672_p4 = scmp.lt.s32.totalorder %s48_s10, %s48_s10 }
  0xa1   :  { %p3673_p5 = scmp.lt.s32.totalorder %s3671_s6, %s3667_s5 }
  0xa3   :  { %p3674_p6 = por %p3673_p5, %p3672_p4 }
  0xa5   :  { %p3675_p7 = pnand %p3674_p6, %p3668_p3 }
  0xa7   :  { %3678 = shalt.err (!%p3675_p7)
}
  0xa8   :  { %50 = dma.hbm_to_vmem [thread:$0]  %s5293_s4, 16, %s48_s10, [#allocation3]  }
  0xa9   :  { %s3859_s25 = smov [#allocation6]   ;;  %s3860_s29 = smov [#allocation9]  }
  0xaa   :  { %s67_s8 = sshll.u32 %s3859_s25, 4  ;;  %s89_s26 = sshll.u32 %s3860_s29, 4  ;;  %s68_s8 = int_to_ptr.vmem [resolvable:$true] %s67_s8  ;;  %s90_s26 = int_to_ptr.vmem [resolvable:$true] %s89_s26 }
  0xab   :  { %s5294_s28 = sld [smem:[#allocation38_spill]] }
  0xb1   :  { %s3679_s23 = scalar_lea.hbm %s5294_s28, 16 }
  0xb2   :  { %p3680_p8 = scmp.ne.s32.totalorder %s5294_s28, %s3679_s23  ;;  %p3683_p9 = scmp.lt.u32.totalorder %s3679_s23, %s5294_s28 }
  0xb4   :  { %p3685_p10 = pnand %p3683_p9, %p3680_p8 }
  0xb6   :  { %3688 = shalt.err (!%p3685_p10)
}
  0xb7   :  { %s3689_s10 = scalar_lea.vmem %s68_s8, 16  ;;  %s3693_s4 = scalar_lea.vmem %s68_s8, 32 }
  0xb8   :  { %p3690_p11 = scmp.ne.s32.totalorder %s68_s8, %s3689_s10  ;;  %p3694_p12 = scmp.lt.s32.totalorder %s68_s8, %s68_s8 }
  0xb9   :  { %p3695_p13 = scmp.lt.s32.totalorder %s3693_s4, %s3689_s10 }
  0xbb   :  { %p3696_p0 = por %p3695_p13, %p3694_p12 }
  0xbd   :  { %p3697_p1 = pnand %p3696_p0, %p3690_p11 }
  0xbf   :  { %3700 = shalt.err (!%p3697_p1)
}
  0xc0   :  { %70 = dma.hbm_to_vmem [thread:$0]  %s5294_s28, 16, %s68_s8, [#allocation5]  }
  0xc1   :  { %s3701_s5 = scalar_lea.hbm %s5258_s7, 16 }
  0xc2   :  { %p3702_p2 = scmp.ne.s32.totalorder %s5258_s7, %s3701_s5  ;;  %p3705_p3 = scmp.lt.u32.totalorder %s3701_s5, %s5258_s7 }
  0xc4   :  { %p3707_p4 = pnand %p3705_p3, %p3702_p2 }
  0xc6   :  { %3710 = shalt.err (!%p3707_p4)
}
  0xc7   :  { %s3711_s29 = scalar_lea.vmem %s90_s26, 16  ;;  %s3715_s0 = scalar_lea.vmem %s90_s26, 32 }
  0xc8   :  { %p3712_p5 = scmp.ne.s32.totalorder %s90_s26, %s3711_s29  ;;  %p3716_p6 = scmp.lt.s32.totalorder %s90_s26, %s90_s26 }
  0xc9   :  { %p3717_p7 = scmp.lt.s32.totalorder %s3715_s0, %s3711_s29 }
  0xcb   :  { %p3718_p8 = por %p3717_p7, %p3716_p6 }
  0xcd   :  { %p3719_p9 = pnand %p3718_p8, %p3712_p5 }
  0xcf   :  { %3722 = shalt.err (!%p3719_p9)
}
  0xd0   :  { %92 = dma.hbm_to_vmem [thread:$0]  %s5258_s7, 16, %s90_s26, [#allocation8]  }
  0xd1   :  { %s3861_s28 = smov [#allocation12]   ;;  %s3862_s2 = smov [#allocation15]  }
  0xd2   :  { %s109_s23 = sshll.u32 %s3861_s28, 4  ;;  %s131_s27 = sshll.u32 %s3862_s2, 4  ;;  %s110_s23 = int_to_ptr.vmem [resolvable:$true] %s109_s23  ;;  %s132_s27 = int_to_ptr.vmem [resolvable:$true] %s131_s27 }
  0xd3   :  { %s3723_s10 = scalar_lea.hbm %s5260_s9, 16 }
  0xd4   :  { %p3724_p10 = scmp.ne.s32.totalorder %s5260_s9, %s3723_s10  ;;  %p3727_p11 = scmp.lt.u32.totalorder %s3723_s10, %s5260_s9 }
  0xd6   :  { %p3729_p12 = pnand %p3727_p11, %p3724_p10 }
  0xd8   :  { %3732 = shalt.err (!%p3729_p12)
}
  0xd9   :  { %s3733_s7 = scalar_lea.vmem %s110_s23, 16  ;;  %s3737_s26 = scalar_lea.vmem %s110_s23, 32 }
  0xda   :  { %p3734_p13 = scmp.ne.s32.totalorder %s110_s23, %s3733_s7  ;;  %p3738_p0 = scmp.lt.s32.totalorder %s110_s23, %s110_s23 }
  0xdb   :  { %p3739_p1 = scmp.lt.s32.totalorder %s3737_s26, %s3733_s7 }
  0xdd   :  { %p3740_p2 = por %p3739_p1, %p3738_p0 }
  0xdf   :  { %p3741_p3 = pnand %p3740_p2, %p3734_p13 }
  0xe1   :  { %3744 = shalt.err (!%p3741_p3)
}
  0xe2   :  { %112 = dma.hbm_to_vmem [thread:$0]  %s5260_s9, 16, %s110_s23, [#allocation11]  }
  0xe3   :  { %s3745_s22 = scalar_lea.hbm %s5262_s11, 16 }
  0xe4   :  { %p3746_p4 = scmp.ne.s32.totalorder %s5262_s11, %s3745_s22  ;;  %p3749_p5 = scmp.lt.u32.totalorder %s3745_s22, %s5262_s11 }
  0xe6   :  { %p3751_p6 = pnand %p3749_p5, %p3746_p4 }
  0xe8   :  { %3754 = shalt.err (!%p3751_p6)
}
  0xe9   :  { %s3755_s14 = scalar_lea.vmem %s132_s27, 16  ;;  %s3759_s28 = scalar_lea.vmem %s132_s27, 32 }
  0xea   :  { %p3756_p7 = scmp.ne.s32.totalorder %s132_s27, %s3755_s14  ;;  %p3760_p8 = scmp.lt.s32.totalorder %s132_s27, %s132_s27 }
  0xeb   :  { %p3761_p9 = scmp.lt.s32.totalorder %s3759_s28, %s3755_s14 }
  0xed   :  { %p3762_p10 = por %p3761_p9, %p3760_p8 }
  0xef   :  { %p3763_p11 = pnand %p3762_p10, %p3756_p7 }
  0xf1   :  { %3766 = shalt.err (!%p3763_p11)
}
  0xf2   :  { %134 = dma.hbm_to_vmem [thread:$0]  %s5262_s11, 16, %s132_s27, [#allocation14]  }
  0xf3   :  { %s3863_s2 = smov [#allocation18]   ;;  %s3864_s24 = smov [#allocation21]  }
  0xf4   :  { %s151_s3 = sshll.u32 %s3863_s2, 4  ;;  %s173_s10 = sshll.u32 %s3864_s24, 4  ;;  %s152_s3 = int_to_ptr.vmem [resolvable:$true] %s151_s3  ;;  %s174_s10 = int_to_ptr.vmem [resolvable:$true] %s173_s10 }
  0xf5   :  { %s3767_s30 = scalar_lea.hbm %s5264_s13, 16 }
  0xf6   :  { %p3768_p12 = scmp.ne.s32.totalorder %s5264_s13, %s3767_s30  ;;  %p3771_p13 = scmp.lt.u32.totalorder %s3767_s30, %s5264_s13 }
  0xf8   :  { %p3773_p0 = pnand %p3771_p13, %p3768_p12 }
  0xfa   :  { %3776 = shalt.err (!%p3773_p0)
}
  0xfb   :  { %s3777_s11 = scalar_lea.vmem %s152_s3, 16  ;;  %s3781_s27 = scalar_lea.vmem %s152_s3, 32 }
  0xfc   :  { %p3778_p1 = scmp.ne.s32.totalorder %s152_s3, %s3777_s11  ;;  %p3782_p2 = scmp.lt.s32.totalorder %s152_s3, %s152_s3 }
  0xfd   :  { %p3783_p3 = scmp.lt.s32.totalorder %s3781_s27, %s3777_s11 }
  0xff   :  { %p3784_p4 = por %p3783_p3, %p3782_p2 }
 0x101   :  { %p3785_p5 = pnand %p3784_p4, %p3778_p1 }
 0x103   :  { %3788 = shalt.err (!%p3785_p5)
}
 0x104   :  { %154 = dma.hbm_to_vmem [thread:$0]  %s5264_s13, 16, %s152_s3, [#allocation17]  }
 0x105   :  { %s3789_s25 = scalar_lea.hbm %s5266_s15, 16 }
 0x106   :  { %p3790_p6 = scmp.ne.s32.totalorder %s5266_s15, %s3789_s25  ;;  %p3793_p7 = scmp.lt.u32.totalorder %s3789_s25, %s5266_s15 }
 0x108   :  { %p3795_p8 = pnand %p3793_p7, %p3790_p6 }
 0x10a   :  { %3798 = shalt.err (!%p3795_p8)
}
 0x10b   :  { %s3799_s28 = scalar_lea.vmem %s174_s10, 16  ;;  %s3803_s9 = scalar_lea.vmem %s174_s10, 32 }
 0x10c   :  { %p3800_p9 = scmp.ne.s32.totalorder %s174_s10, %s3799_s28  ;;  %p3804_p10 = scmp.lt.s32.totalorder %s174_s10, %s174_s10 }
 0x10d   :  { %p3805_p11 = scmp.lt.s32.totalorder %s3803_s9, %s3799_s28 }
 0x10f   :  { %p3806_p12 = por %p3805_p11, %p3804_p10 }
 0x111   :  { %p3807_p13 = pnand %p3806_p12, %p3800_p9 }
 0x113   :  { %3810 = shalt.err (!%p3807_p13)
}
 0x114   :  { %176 = dma.hbm_to_vmem [thread:$0]  %s5266_s15, 16, %s174_s10, [#allocation20]  }
 0x115   :  { %s3865_s2 = smov [#allocation24]   ;;  %s3811_s12 = scalar_lea.hbm %s5268_s17, 16 }
 0x116   :  { %s193_s3 = sshll.u32 %s3865_s2, 4  ;;  %p3812_p0 = scmp.ne.s32.totalorder %s5268_s17, %s3811_s12  ;;  %s194_s3 = int_to_ptr.vmem [resolvable:$true] %s193_s3 }
 0x117   :  { %p3815_p1 = scmp.lt.u32.totalorder %s3811_s12, %s5268_s17 }
 0x119   :  { %p3817_p2 = pnand %p3815_p1, %p3812_p0 }
 0x11b   :  { %3820 = shalt.err (!%p3817_p2)
}
 0x11c   :  { %s3821_s1 = scalar_lea.vmem %s194_s3, 16  ;;  %s3825_s15 = scalar_lea.vmem %s194_s3, 32 }
 0x11d   :  { %p3822_p3 = scmp.ne.s32.totalorder %s194_s3, %s3821_s1  ;;  %p3826_p4 = scmp.lt.s32.totalorder %s194_s3, %s194_s3 }
 0x11e   :  { %p3827_p5 = scmp.lt.s32.totalorder %s3825_s15, %s3821_s1 }
 0x120   :  { %p3828_p6 = por %p3827_p5, %p3826_p4 }
 0x122   :  { %p3829_p7 = pnand %p3828_p6, %p3822_p3 }
 0x124   :  { %3832 = shalt.err (!%p3829_p7)
}
 0x125   :  { %196 = dma.hbm_to_vmem [thread:$0]  %s5268_s17, 16, %s194_s3, [#allocation23]  }
 0x126   :  { %3833 = dma.done.wait [#allocation3], 16  }
 0x127   :  { %3834 = vsyncadd [#allocation3], 4294967280 }
 0x128   :  { %3835 = dma.done.wait [#allocation5], 32  }
 0x129   :  { %3836 = vsyncadd [#allocation5], 4294967264 }
 0x12a   :  { %3837 = dma.done.wait [#allocation8], 1040  }
 0x12b   :  { %3838 = vsyncadd [#allocation8], 4294966256 }
 0x12c   :  { %3839 = dma.done.wait [#allocation11], 32  }
 0x12d   :  { %3840 = vsyncadd [#allocation11], 4294967264 }
 0x12e   :  { %3841 = dma.done.wait [#allocation14], 1040  }
 0x12f   :  { %3842 = vsyncadd [#allocation14], 4294966256 }
 0x130   :  { %3843 = dma.done.wait [#allocation17], 32  }
 0x131   :  { %3844 = vsyncadd [#allocation17], 4294967264 }
 0x132   :  { %3845 = dma.done.wait [#allocation20], 1040  }
 0x133   :  { %3846 = vsyncadd [#allocation20], 4294966256 }
 0x134   :  { %3847 = dma.done.wait [#allocation23], 32  }
 0x135   :  { %3848 = vsyncadd [#allocation23], 4294967264  ;;  %s5295_s6 = sld [smem:[#allocation35_spill]]  ;;  %s5296_s28 = sld [smem:[#allocation33_spill]]  ;;  %v3439_v48 = vld [vmem:[#allocation7] sm:$0xff]   ;;  %v3440_v49 = vld [vmem:[#allocation7 + $0x8] sm:$0xff]  }
 0x136   :  { %s5297_s0 = sld [smem:[#allocation34_spill]]  ;;  %v3441_v50 = vld [vmem:[#allocation7 + $0x10] sm:$0xff]   ;;  %v3442_v51 = vld [vmem:[#allocation7 + $0x18] sm:$0xff]   ;;  %v3443_v52 = vld [vmem:[#allocation7 + $0x20] sm:$0xff]   ;;  %vm2409_vm0 = vcmask 523264   ;;  %s5298_s22 = sld [smem:[#allocation41_spill]] }
 0x137   :  { %v3444_v53 = vld [vmem:[#allocation7 + $0x28] sm:$0xff]   ;;  %v3445_v54 = vld [vmem:[#allocation7 + $0x30] sm:$0xff]   ;;  %v3446_v55 = vld [vmem:[#allocation7 + $0x38] sm:$0xff]  }
 0x138   :  { %v4288_v56 = vld [vmem:[#allocation2] ss:$0 sm:$0xff] }
 0x13b   :  { %v3415_v0 = vld [vmem:[%s5295_s6] sm:$0xff]   ;;  %v3416_v1 = vld [vmem:[%s5295_s6 + $0x8] sm:$0xff]   ;;  %v3417_v2 = vld [vmem:[%s5295_s6 + $0x10] sm:$0xff]  }
 0x13c   :  { %3014 = vmatprep.subr.bf16.mxu0 %v3415_v0  ;;  %v3418_v3 = vld [vmem:[%s5295_s6 + $0x18] sm:$0xff]   ;;  %v3423_v4 = vld [vmem:[%s5296_s28] sm:$0xff]   ;;  %v3420_v6 = vld [vmem:[%s5295_s6 + $0x28] sm:$0xff]  }
 0x13d   :  { %3015 = vmatpush3.bf16.msra.mxu0 %v3415_v0  ;;  %3030 = vmatprep.mubr.bf16.mxu0 %v3423_v4  ;;  %v3419_v5 = vld [vmem:[%s5295_s6 + $0x20] sm:$0xff]   ;;  %v3421_v7 = vld [vmem:[%s5295_s6 + $0x30] sm:$0xff]   ;;  %v3422_v8 = vld [vmem:[%s5295_s6 + $0x38] sm:$0xff]  }
 0x13e   :  { %3016 = vmatprep.subr.bf16.mxu0 %v3416_v1  ;;  %v3424_v9 = vld [vmem:[%s5296_s28 + $0x8] sm:$0xff]   ;;  %v3425_v10 = vld [vmem:[%s5296_s28 + $0x10] sm:$0xff]   ;;  %v3426_v11 = vld [vmem:[%s5296_s28 + $0x18] sm:$0xff]  }
 0x13f   :  { %v3427_v12 = vld [vmem:[%s5296_s28 + $0x20] sm:$0xff]   ;;  %v3428_v13 = vld [vmem:[%s5296_s28 + $0x28] sm:$0xff]   ;;  %v3429_v14 = vld [vmem:[%s5296_s28 + $0x30] sm:$0xff]  }
 0x140   :  { %v3430_v15 = vld [vmem:[%s5296_s28 + $0x38] sm:$0xff]   ;;  %v4242_v16 = vld [vmem:[%s5297_s0] sm:$0xff]   ;;  %v4248_v41 = vld [vmem:[%s5297_s0 + $0x8] sm:$0xff]  }
 0x141   :  { %3017 = vmatpush3.bf16.msra.mxu0 %v3416_v1  ;;  %3062 = vmatprep.mubr.bf16.mxu1 %v4242_v16  ;;  %v4253_v42 = vld [vmem:[%s5297_s0 + $0x10] sm:$0xff]   ;;  %v4260_v43 = vld [vmem:[%s5297_s0 + $0x18] sm:$0xff]   ;;  %v4265_v44 = vld [vmem:[%s5297_s0 + $0x20] sm:$0xff]  }
 0x142   :  { %3018 = vmatprep.subr.bf16.mxu0 %v3417_v2  ;;  %v4272_v45 = vld [vmem:[%s5297_s0 + $0x28] sm:$0xff]   ;;  %v4277_v46 = vld [vmem:[%s5297_s0 + $0x30] sm:$0xff]   ;;  %v4284_v47 = vld [vmem:[%s5297_s0 + $0x38] sm:$0xff]  }
 0x145   :  { %3019 = vmatpush3.bf16.msra.mxu0 %v3417_v2 }
 0x146   :  { %3020 = vmatprep.subr.bf16.mxu0 %v3418_v3 }
 0x149   :  { %3021 = vmatpush3.bf16.msra.mxu0 %v3418_v3 }
 0x14a   :  { %3022 = vmatprep.subr.bf16.mxu0 %v3419_v5 }
 0x14d   :  { %3023 = vmatpush3.bf16.msra.mxu0 %v3419_v5 }
 0x14e   :  { %3024 = vmatprep.subr.bf16.mxu0 %v3420_v6 }
 0x151   :  { %3025 = vmatpush3.bf16.msra.mxu0 %v3420_v6 }
 0x152   :  { %3026 = vmatprep.subr.bf16.mxu0 %v3421_v7 }
 0x155   :  { %3027 = vmatpush3.bf16.msra.mxu0 %v3421_v7 }
 0x156   :  { %3028 = vmatprep.subr.bf16.mxu0 %v3422_v8 }
 0x159   :  { %3029 = vmatpush3.bf16.msra.mxu0 %v3422_v8 }
 0x15a   :  { %3078 = vmatprep.subr.bf16.mxu0 %v3439_v48 }
 0x15c   :  { %3031 = vmatmul.mubr.bf16.vlgmr.msra.gmra.mrb[0].mxu0 %v3424_v9 }
 0x15d   :  { %3034 = vmatprep.mubr.bf16.mxu0 %v3425_v10  ;;  %3079 = vmatpush3.bf16.msra.mxu0 %v3439_v48 }
 0x15e   :  { %3080 = vmatprep.subr.bf16.mxu0 %v3440_v49 }
 0x161   :  { %3081 = vmatpush3.bf16.msra.mxu0 %v3440_v49 }
 0x162   :  { %3082 = vmatprep.subr.bf16.mxu0 %v3441_v50 }
 0x164   :  { %3035 = vmatmul.mubr.bf16.gmra.mrb[4].mxu0 %v3426_v11 }
 0x165   :  { %3038 = vmatprep.mubr.bf16.mxu0 %v3427_v12  ;;  %3083 = vmatpush3.bf16.msra.mxu0 %v3441_v50 }
 0x166   :  { %3084 = vmatprep.subr.bf16.mxu0 %v3442_v51 }
 0x169   :  { %3085 = vmatpush3.bf16.msra.mxu0 %v3442_v51 }
 0x16a   :  { %3086 = vmatprep.subr.bf16.mxu0 %v3443_v52 }
 0x16c   :  { %3039 = vmatmul.mubr.bf16.gmra.mrb[8].mxu0 %v3428_v13 }
 0x16d   :  { %3042 = vmatprep.mubr.bf16.mxu0 %v3429_v14  ;;  %3087 = vmatpush3.bf16.msra.mxu0 %v3443_v52 }
 0x16e   :  { %3088 = vmatprep.subr.bf16.mxu0 %v3444_v53 }
 0x171   :  { %3089 = vmatpush3.bf16.msra.mxu0 %v3444_v53 }
 0x172   :  { %3090 = vmatprep.subr.bf16.mxu0 %v3445_v54 }
 0x174   :  { %3043 = vmatmul.mubr.bf16.gmra.mrb[12].mxu0 %v3430_v15 }
 0x175   :  { %3091 = vmatpush3.bf16.msra.mxu0 %v3445_v54 }
 0x176   :  { %3092 = vmatprep.subr.bf16.mxu0 %v3446_v55 }
 0x179   :  { %3093 = vmatpush3.bf16.msra.mxu0 %v3446_v55 }
 0x22f   :  { %v3032_v17 = vpop.f32.mrb[0].mxu0 }
 0x230   :  { %v429_v18 = vpop.f32.mrb[1].mxu0 }
 0x231   :  { %v3033_v19 = vpop.f32.mrb[2].mxu0 }
 0x232   :  { %v493_v20 = vpack.c.bf16 %v3033_v19, %v3032_v17  ;;  %v432_v21 = vpop.f32.mrb[3].mxu0 }
 0x233   :  { %v492_v22 = vpack.c.bf16 %v432_v21, %v429_v18 }
 0x235   :  { %3046 = vmatprep.subr.bf16.mxu1 %v492_v22 }
 0x236   :  { %3047 = vmatpush3.bf16.msra.mxu1 %v492_v22 }
 0x237   :  { %v3036_v23 = vpop.f32.mrb[4].mxu0  ;;  %3048 = vmatprep.subr.bf16.mxu1 %v493_v20 }
 0x238   :  { %v445_v24 = vpop.f32.mrb[5].mxu0 }
 0x239   :  { %v3037_v25 = vpop.f32.mrb[6].mxu0 }
 0x23a   :  { %v495_v26 = vpack.c.bf16 %v3037_v25, %v3036_v23  ;;  %v448_v27 = vpop.f32.mrb[7].mxu0  ;;  %3049 = vmatpush3.bf16.msra.mxu1 %v493_v20 }
 0x23b   :  { %v494_v28 = vpack.c.bf16 %v448_v27, %v445_v24 }
 0x23d   :  { %3050 = vmatprep.subr.bf16.mxu1 %v494_v28 }
 0x23e   :  { %3051 = vmatpush3.bf16.msra.mxu1 %v494_v28 }
 0x23f   :  { %v3040_v29 = vpop.f32.mrb[8].mxu0  ;;  %3052 = vmatprep.subr.bf16.mxu1 %v495_v26 }
 0x240   :  { %v461_v30 = vpop.f32.mrb[9].mxu0 }
 0x241   :  { %v3041_v31 = vpop.f32.mrb[10].mxu0 }
 0x242   :  { %v497_v32 = vpack.c.bf16 %v3041_v31, %v3040_v29  ;;  %v464_v33 = vpop.f32.mrb[11].mxu0  ;;  %3053 = vmatpush3.bf16.msra.mxu1 %v495_v26 }
 0x243   :  { %v496_v34 = vpack.c.bf16 %v464_v33, %v461_v30 }
 0x245   :  { %3054 = vmatprep.subr.bf16.mxu1 %v496_v34 }
 0x246   :  { %3055 = vmatpush3.bf16.msra.mxu1 %v496_v34 }
 0x247   :  { %v3044_v35 = vpop.f32.mrb[12].mxu0  ;;  %3056 = vmatprep.subr.bf16.mxu1 %v497_v32 }
 0x248   :  { %v477_v36 = vpop.f32.mrb[13].mxu0 }
 0x249   :  { %v3045_v37 = vpop.f32.mrb[14].mxu0 }
 0x24a   :  { %v499_v38 = vpack.c.bf16 %v3045_v37, %v3044_v35  ;;  %v480_v39 = vpop.f32.mrb[15].mxu0  ;;  %3057 = vmatpush3.bf16.msra.mxu1 %v497_v32 }
 0x24b   :  { %v498_v40 = vpack.c.bf16 %v480_v39, %v477_v36 }
 0x24d   :  { %3058 = vmatprep.subr.bf16.mxu1 %v498_v40 }
 0x24e   :  { %3059 = vmatpush3.bf16.msra.mxu1 %v498_v40 }
 0x24f   :  { %3060 = vmatprep.subr.bf16.mxu1 %v499_v38 }
 0x252   :  { %3061 = vmatpush3.bf16.msra.mxu1 %v499_v38 }
 0x255   :  { %3063 = vmatmul.mubr.bf16.vlgmr.msra.gmra.mrb[0].mxu1 %v4248_v41 }
 0x256   :  { %3066 = vmatprep.mubr.bf16.mxu1 %v4253_v42 }
 0x25d   :  { %3067 = vmatmul.mubr.bf16.gmra.mrb[4].mxu1 %v4260_v43 }
 0x25e   :  { %3070 = vmatprep.mubr.bf16.mxu1 %v4265_v44 }
 0x265   :  { %3071 = vmatmul.mubr.bf16.gmra.mrb[8].mxu1 %v4272_v45 }
 0x266   :  { %3074 = vmatprep.mubr.bf16.mxu1 %v4277_v46 }
 0x26d   :  { %3075 = vmatmul.mubr.bf16.gmra.mrb[12].mxu1 %v4284_v47 }
 0x26e   :  { %3126 = vmatprep.mubr.bf16.mxu1 %v4242_v16 }
 0x328   :  { %v3064_v57 = vpop.f32.mrb[0].mxu1 }
 0x329   :  { %v589_v58 = vpop.f32.mrb[1].mxu1  ;;  %v4294_v62 = vadd.f32 %v3064_v57, %v4288_v56 }
 0x32a   :  { %v4291_v59 = vadd.f32 %v4288_v56, %v589_v58  ;;  %v3065_v60 = vpop.f32.mrb[2].mxu1 }
 0x32b   :  { %v592_v61 = vpop.f32.mrb[3].mxu1  ;;  %v4302_v1 = vadd.f32 %v3065_v60, %v4288_v56  ;;  %v677_v4 = vmul.f32 %v4294_v62, %v4294_v62 }
 0x32c   :  { %v4297_v63 = vadd.f32 %v4288_v56, %v592_v61  ;;  %v675_v0 = vmul.f32 %v4291_v59, %v4291_v59 }
 0x32d   :  { %v678_v9 = vmul.f32 %v4302_v1, %v4302_v1 }
 0x32e   :  { %v652_v2 = vadd.f32 %v4297_v63, %v4291_v59  ;;  %v676_v3 = vmul.f32 %v4297_v63, %v4297_v63 }
 0x330   :  { %v653_v5 = vadd.f32 %v652_v2, %v4294_v62  ;;  %v691_v6 = vadd.f32 %v676_v3, %v675_v0  ;;  %v3068_v7 = vpop.f32.mrb[4].mxu1 }
 0x331   :  { %v605_v8 = vpop.f32.mrb[5].mxu1  ;;  %v4318_v14 = vadd.f32 %v3068_v7, %v4288_v56 }
 0x332   :  { %v692_v10 = vadd.f32 %v691_v6, %v677_v4  ;;  %v4314_v11 = vadd.f32 %v4288_v56, %v605_v8  ;;  %v654_v12 = vadd.f32 %v653_v5, %v4302_v1  ;;  %v3069_v13 = vpop.f32.mrb[6].mxu1 }
 0x333   :  { %v608_v15 = vpop.f32.mrb[7].mxu1  ;;  %v4327_v22 = vadd.f32 %v3069_v13, %v4288_v56  ;;  %v681_v25 = vmul.f32 %v4318_v14, %v4318_v14 }
 0x334   :  { %v655_v17 = vadd.f32 %v654_v12, %v4314_v11  ;;  %v679_v18 = vmul.f32 %v4314_v11, %v4314_v11  ;;  %v693_v19 = vadd.f32 %v692_v10, %v678_v9  ;;  %v4324_v20 = vadd.f32 %v4288_v56, %v608_v15 }
 0x335   :  { %v682_v30 = vmul.f32 %v4327_v22, %v4327_v22 }
 0x336   :  { %v694_v21 = vadd.f32 %v693_v19, %v679_v18  ;;  %v656_v23 = vadd.f32 %v655_v17, %v4324_v20  ;;  %v680_v24 = vmul.f32 %v4324_v20, %v4324_v20 }
 0x338   :  { %v657_v26 = vadd.f32 %v656_v23, %v4318_v14  ;;  %v695_v27 = vadd.f32 %v694_v21, %v680_v24  ;;  %v3072_v28 = vpop.f32.mrb[8].mxu1 }
 0x339   :  { %v621_v29 = vpop.f32.mrb[9].mxu1  ;;  %v4342_v35 = vadd.f32 %v3072_v28, %v4288_v56 }
 0x33a   :  { %v696_v31 = vadd.f32 %v695_v27, %v681_v25  ;;  %v4338_v32 = vadd.f32 %v4288_v56, %v621_v29  ;;  %v658_v33 = vadd.f32 %v657_v26, %v4327_v22  ;;  %v3073_v34 = vpop.f32.mrb[10].mxu1 }
 0x33b   :  { %v624_v36 = vpop.f32.mrb[11].mxu1  ;;  %v4351_v49 = vadd.f32 %v3073_v34, %v4288_v56  ;;  %v685_v52 = vmul.f32 %v4342_v35, %v4342_v35 }
 0x33c   :  { %v659_v37 = vadd.f32 %v658_v33, %v4338_v32  ;;  %v683_v38 = vmul.f32 %v4338_v32, %v4338_v32  ;;  %v697_v39 = vadd.f32 %v696_v31, %v682_v30  ;;  %v4348_v40 = vadd.f32 %v4288_v56, %v624_v36 }
 0x33d   :  { %v686_v58 = vmul.f32 %v4351_v49, %v4351_v49 }
 0x33e   :  { %v698_v48 = vadd.f32 %v697_v39, %v683_v38  ;;  %v660_v50 = vadd.f32 %v659_v37, %v4348_v40  ;;  %v684_v51 = vmul.f32 %v4348_v40, %v4348_v40 }
 0x340   :  { %v661_v53 = vadd.f32 %v660_v50, %v4342_v35  ;;  %v699_v54 = vadd.f32 %v698_v48, %v684_v51  ;;  %v3076_v55 = vpop.f32.mrb[12].mxu1 }
 0x341   :  { %v637_v57 = vpop.f32.mrb[13].mxu1  ;;  %v4366_v3 = vadd.f32 %v3076_v55, %v4288_v56 }
 0x342   :  { %v700_v60 = vadd.f32 %v699_v54, %v685_v52  ;;  %v4362_v61 = vadd.f32 %v4288_v56, %v637_v57  ;;  %v662_v0 = vadd.f32 %v661_v53, %v4351_v49  ;;  %v3077_v2 = vpop.f32.mrb[14].mxu1 }
 0x343   :  { %v640_v4 = vpop.f32.mrb[15].mxu1  ;;  %v4373_v10 = vadd.f32 %v3077_v2, %v4288_v56  ;;  %v689_v15 = vmul.f32 %v4366_v3, %v4366_v3  ;;  %v4416_v2 = vld [vmem:[#allocation4] ss:$0 sm:$0xff] }
 0x344   :  { %v663_v5 = vadd.f32 %v662_v0, %v4362_v61  ;;  %v687_v6 = vmul.f32 %v4362_v61, %v4362_v61  ;;  %v701_v7 = vadd.f32 %v700_v60, %v686_v58  ;;  %v641_v8 = vadd.f32 %v4288_v56, %v640_v4 }
 0x345   :  { %v690_v19 = vmul.f32 %v4373_v10, %v4373_v10 }
 0x346   :  { %v702_v9 = vadd.f32 %v701_v7, %v687_v6  ;;  %v664_v12 = vadd.f32 %v663_v5, %v641_v8  ;;  %v688_v13 = vmul.f32 %v641_v8, %v641_v8  ;;  %v4418_v6 = vld [vmem:[#allocation6] ss:$0 sm:$0xff] }
 0x348   :  { %v665_v17 = vadd.f32 %v664_v12, %v4366_v3  ;;  %v703_v18 = vadd.f32 %v702_v9, %v688_v13 }
 0x34a   :  { %v666_v21 = vadd.f32 %v665_v17, %v4373_v10  ;;  %v704_v23 = vadd.f32 %v703_v18, %v689_v15 }
 0x34c   :  { %v667_v24 = vrot.slane %v666_v21, 4  ;;  %v705_v25 = vadd.f32 %v704_v23, %v690_v19 }
 0x34e   :  { %v668_v26 = vadd.f32 %v667_v24, %v666_v21  ;;  %v706_v27 = vrot.slane %v705_v25, 4 }
 0x350   :  { %v669_v56 = vrot.slane %v668_v26, 2  ;;  %v707_v28 = vadd.f32 %v706_v27, %v705_v25 }
 0x352   :  { %v670_v29 = vadd.f32 %v669_v56, %v668_v26  ;;  %v708_v30 = vrot.slane %v707_v28, 2 }
 0x354   :  { %v671_v31 = vrot.slane %v670_v29, 1  ;;  %v709_v33 = vadd.f32 %v708_v30, %v707_v28 }
 0x356   :  { %v672_v34 = vadd.f32 %v671_v31, %v670_v29  ;;  %v710_v36 = vrot.slane %v709_v33, 1 }
 0x358   :  { %v4381_v37 = vmul.f32 0.0078125, %v672_v34  ;;  %v711_v38 = vadd.f32 %v710_v36, %v709_v33 }
 0x35a   :  { %v712_v39 = vmul.f32 0.0078125, %v711_v38  ;;  %v713_v48 = vmul.f32 %v4381_v37, %v4381_v37  ;;  %v728_v50 = vsub.f32 %v641_v8, %v4381_v37  ;;  %v715_v51 = vsub.f32 %v4291_v59, %v4381_v37 }
 0x35b   :  { %v716_v52 = vsub.f32 %v4297_v63, %v4381_v37  ;;  %v717_v53 = vsub.f32 %v4294_v62, %v4381_v37  ;;  %v718_v54 = vsub.f32 %v4302_v1, %v4381_v37  ;;  %v719_v55 = vsub.f32 %v4314_v11, %v4381_v37 }
 0x35c   :  { %v714_v57 = vsub.f32 %v712_v39, %v713_v48  ;;  %v720_v58 = vsub.f32 %v4324_v20, %v4381_v37  ;;  %v721_v60 = vsub.f32 %v4318_v14, %v4381_v37  ;;  %v722_v59 = vsub.f32 %v4327_v22, %v4381_v37 }
 0x35d   :  { %v723_v63 = vsub.f32 %v4338_v32, %v4381_v37  ;;  %v724_v62 = vsub.f32 %v4348_v40, %v4381_v37  ;;  %v725_v1 = vsub.f32 %v4342_v35, %v4381_v37  ;;  %v726_v11 = vsub.f32 %v4351_v49, %v4381_v37 }
 0x35e   :  { %v731_v0 = vadd.f32 1e-05, %v714_v57  ;;  %v727_v20 = vsub.f32 %v4362_v61, %v4381_v37  ;;  %v729_v14 = vsub.f32 %v4366_v3, %v4381_v37  ;;  %v730_v22 = vsub.f32 %v4373_v10, %v4381_v37 }
 0x360   :  { %3479 = vrsqrt.f32 %v731_v0 }
 0x36a   :  { %v3480_v32 = vpop.eup %3479 }
 0x36b   :  { %v746_v40 = vmul.f32 %v3480_v32, %v728_v50  ;;  %v733_v4 = vmul.f32 %v3480_v32, %v715_v51  ;;  %v734_v35 = vmul.f32 %v3480_v32, %v716_v52  ;;  %v735_v5 = vmul.f32 %v3480_v32, %v717_v53 }
 0x36c   :  { %v736_v49 = vmul.f32 %v3480_v32, %v718_v54  ;;  %v737_v7 = vmul.f32 %v3480_v32, %v719_v55  ;;  %v738_v8 = vmul.f32 %v3480_v32, %v720_v58  ;;  %v739_v61 = vmul.f32 %v3480_v32, %v721_v60 }
 0x36d   :  { %v756_v9 = vmul.f32 %v4416_v2, %v733_v4  ;;  %v757_v3 = vmul.f32 %v4416_v2, %v734_v35  ;;  %v758_v10 = vmul.f32 %v4416_v2, %v735_v5  ;;  %v740_v12 = vmul.f32 %v3480_v32, %v722_v59 }
 0x36e   :  { %v759_v13 = vmul.f32 %v4416_v2, %v736_v49  ;;  %v760_v15 = vmul.f32 %v4416_v2, %v737_v7  ;;  %v761_v17 = vmul.f32 %v4416_v2, %v738_v8  ;;  %v762_v18 = vmul.f32 %v4416_v2, %v739_v61 }
 0x36f   :  { %v779_v19 = vadd.f32 %v4418_v6, %v756_v9  ;;  %v780_v21 = vadd.f32 %v4418_v6, %v757_v3  ;;  %v781_v23 = vadd.f32 %v4418_v6, %v758_v10  ;;  %v763_v24 = vmul.f32 %v4416_v2, %v740_v12 }
 0x370   :  { %v782_v25 = vadd.f32 %v4418_v6, %v759_v13  ;;  %v783_v26 = vadd.f32 %v4418_v6, %v760_v15  ;;  %v784_v27 = vadd.f32 %v4418_v6, %v761_v17  ;;  %v785_v56 = vadd.f32 %v4418_v6, %v762_v18 }
 0x371   :  { %v795_v28 = vmax.f32 %v779_v19, 0.0  ;;  %v796_v29 = vmax.f32 %v780_v21, 0.0  ;;  %v797_v30 = vmax.f32 %v781_v23, 0.0  ;;  %v786_v31 = vadd.f32 %v4418_v6, %v763_v24 }
 0x372   :  { %v798_v33 = vmax.f32 %v782_v25, 0.0  ;;  %v799_v34 = vmax.f32 %v783_v26, 0.0  ;;  %v800_v36 = vmax.f32 %v784_v27, 0.0  ;;  %v801_v37 = vmax.f32 %v785_v56, 0.0 }
 0x373   :  { %v811_v38 = vpack.c.bf16 %v796_v29, %v795_v28  ;;  %v802_v39 = vmax.f32 %v786_v31, 0.0  ;;  %v741_v48 = vmul.f32 %v3480_v32, %v723_v63  ;;  %v742_v50 = vmul.f32 %v3480_v32, %v724_v62 }
 0x374   :  { %v812_v51 = vpack.c.bf16 %v798_v33, %v797_v30  ;;  %v813_v52 = vpack.c.bf16 %v800_v36, %v799_v34  ;;  %v743_v53 = vmul.f32 %v3480_v32, %v725_v1  ;;  %v744_v54 = vmul.f32 %v3480_v32, %v726_v11 }
 0x375   :  { %3094 = vmatprep.mubr.bf16.mxu0 %v811_v38  ;;  %v814_v55 = vpack.c.bf16 %v802_v39, %v801_v37  ;;  %v764_v57 = vmul.f32 %v4416_v2, %v741_v48  ;;  %v765_v58 = vmul.f32 %v4416_v2, %v742_v50  ;;  %v745_v60 = vmul.f32 %v3480_v32, %v727_v20 }
 0x376   :  { %3095 = vmatmul.mubr.bf16.vlgmr.msra.gmra.mrb[16].mxu0 %v812_v51  ;;  %v766_v59 = vmul.f32 %v4416_v2, %v743_v53  ;;  %v767_v0 = vmul.f32 %v4416_v2, %v744_v54  ;;  %v769_v4 = vmul.f32 %v4416_v2, %v746_v40  ;;  %v747_v63 = vmul.f32 %v3480_v32, %v729_v14 }
 0x377   :  { %3098 = vmatprep.mubr.bf16.mxu0 %v813_v52  ;;  %v787_v62 = vadd.f32 %v4418_v6, %v764_v57  ;;  %v788_v1 = vadd.f32 %v4418_v6, %v765_v58  ;;  %v768_v11 = vmul.f32 %v4416_v2, %v745_v60  ;;  %v748_v35 = vmul.f32 %v3480_v32, %v730_v22  ;;  %v3448_v57 = vld [vmem:[#allocation13 + $0x8] sm:$0xff]  }
 0x378   :  { %v789_v5 = vadd.f32 %v4418_v6, %v766_v59  ;;  %v790_v20 = vadd.f32 %v4418_v6, %v767_v0  ;;  %v792_v49 = vadd.f32 %v4418_v6, %v769_v4  ;;  %v770_v7 = vmul.f32 %v4416_v2, %v747_v63 }
 0x379   :  { %v803_v8 = vmax.f32 %v787_v62, 0.0  ;;  %v804_v61 = vmax.f32 %v788_v1, 0.0  ;;  %v791_v14 = vadd.f32 %v4418_v6, %v768_v11  ;;  %v771_v40 = vmul.f32 %v4416_v2, %v748_v35 }
 0x37a   :  { %v805_v9 = vmax.f32 %v789_v5, 0.0  ;;  %v806_v3 = vmax.f32 %v790_v20, 0.0  ;;  %v808_v10 = vmax.f32 %v792_v49, 0.0  ;;  %v793_v12 = vadd.f32 %v4418_v6, %v770_v7 }
 0x37b   :  { %v815_v22 = vpack.c.bf16 %v804_v61, %v803_v8  ;;  %v807_v32 = vmax.f32 %v791_v14, 0.0  ;;  %v794_v13 = vadd.f32 %v4418_v6, %v771_v40 }
 0x37c   :  { %v816_v15 = vpack.c.bf16 %v806_v3, %v805_v9  ;;  %v809_v17 = vmax.f32 %v793_v12, 0.0 }
 0x37d   :  { %v817_v18 = vpack.c.bf16 %v808_v10, %v807_v32  ;;  %v810_v19 = vmax.f32 %v794_v13, 0.0 }
 0x37e   :  { %3099 = vmatmul.mubr.bf16.gmra.mrb[20].mxu0 %v814_v55  ;;  %v3447_v55 = vld [vmem:[#allocation13] sm:$0xff]  }
 0x37f   :  { %3102 = vmatprep.mubr.bf16.mxu0 %v815_v22  ;;  %v818_v21 = vpack.c.bf16 %v810_v19, %v809_v17  ;;  %3142 = vmatprep.subr.bf16.mxu0 %v3447_v55 }
 0x380   :  { %3143 = vmatpush3.bf16.msra.mxu0 %v3447_v55 }
 0x381   :  { %3144 = vmatprep.subr.bf16.mxu0 %v3448_v57 }
 0x384   :  { %3145 = vmatpush3.bf16.msra.mxu0 %v3448_v57 }
 0x386   :  { %3103 = vmatmul.mubr.bf16.gmra.mrb[24].mxu0 %v816_v15 }
 0x387   :  { %3106 = vmatprep.mubr.bf16.mxu0 %v817_v18 }
 0x38e   :  { %3107 = vmatmul.mubr.bf16.gmra.mrb[28].mxu0 %v818_v21 }
 0x449   :  { %v3096_v2 = vpop.f32.mrb[16].mxu0 }
 0x44a   :  { %v917_v23 = vpop.f32.mrb[17].mxu0 }
 0x44b   :  { %v3097_v24 = vpop.f32.mrb[18].mxu0 }
 0x44c   :  { %v981_v25 = vpack.c.bf16 %v3097_v24, %v3096_v2  ;;  %v920_v26 = vpop.f32.mrb[19].mxu0 }
 0x44d   :  { %v980_v27 = vpack.c.bf16 %v920_v26, %v917_v23 }
 0x44f   :  { %3110 = vmatprep.subr.bf16.mxu1 %v980_v27 }
 0x450   :  { %3111 = vmatpush3.bf16.msra.mxu1 %v980_v27 }
 0x451   :  { %v3100_v56 = vpop.f32.mrb[20].mxu0  ;;  %3112 = vmatprep.subr.bf16.mxu1 %v981_v25 }
 0x452   :  { %v933_v6 = vpop.f32.mrb[21].mxu0 }
 0x453   :  { %v3101_v28 = vpop.f32.mrb[22].mxu0 }
 0x454   :  { %v983_v29 = vpack.c.bf16 %v3101_v28, %v3100_v56  ;;  %v936_v30 = vpop.f32.mrb[23].mxu0  ;;  %3113 = vmatpush3.bf16.msra.mxu1 %v981_v25 }
 0x455   :  { %v982_v31 = vpack.c.bf16 %v936_v30, %v933_v6 }
 0x457   :  { %3114 = vmatprep.subr.bf16.mxu1 %v982_v31 }
 0x458   :  { %3115 = vmatpush3.bf16.msra.mxu1 %v982_v31 }
 0x459   :  { %v3104_v33 = vpop.f32.mrb[24].mxu0  ;;  %3116 = vmatprep.subr.bf16.mxu1 %v983_v29 }
 0x45a   :  { %v949_v34 = vpop.f32.mrb[25].mxu0 }
 0x45b   :  { %v3105_v36 = vpop.f32.mrb[26].mxu0 }
 0x45c   :  { %v985_v37 = vpack.c.bf16 %v3105_v36, %v3104_v33  ;;  %v952_v38 = vpop.f32.mrb[27].mxu0  ;;  %3117 = vmatpush3.bf16.msra.mxu1 %v983_v29 }
 0x45d   :  { %v984_v39 = vpack.c.bf16 %v952_v38, %v949_v34 }
 0x45f   :  { %3118 = vmatprep.subr.bf16.mxu1 %v984_v39 }
 0x460   :  { %3119 = vmatpush3.bf16.msra.mxu1 %v984_v39 }
 0x461   :  { %v3108_v48 = vpop.f32.mrb[28].mxu0  ;;  %3120 = vmatprep.subr.bf16.mxu1 %v985_v37 }
 0x462   :  { %v965_v50 = vpop.f32.mrb[29].mxu0 }
 0x463   :  { %v3109_v51 = vpop.f32.mrb[30].mxu0 }
 0x464   :  { %v987_v52 = vpack.c.bf16 %v3109_v51, %v3108_v48  ;;  %v968_v53 = vpop.f32.mrb[31].mxu0  ;;  %3121 = vmatpush3.bf16.msra.mxu1 %v985_v37 }
 0x465   :  { %v986_v54 = vpack.c.bf16 %v968_v53, %v965_v50 }
 0x467   :  { %3122 = vmatprep.subr.bf16.mxu1 %v986_v54 }
 0x468   :  { %3123 = vmatpush3.bf16.msra.mxu1 %v986_v54 }
 0x469   :  { %3124 = vmatprep.subr.bf16.mxu1 %v987_v52 }
 0x46c   :  { %3125 = vmatpush3.bf16.msra.mxu1 %v987_v52 }
 0x46f   :  { %3127 = vmatmul.mubr.bf16.vlgmr.msra.gmra.mrb[16].mxu1 %v4248_v41  ;;  %v3449_v41 = vld [vmem:[#allocation13 + $0x10] sm:$0xff]  }
 0x470   :  { %3130 = vmatprep.mubr.bf16.mxu1 %v4253_v42  ;;  %3146 = vmatprep.subr.bf16.mxu0 %v3449_v41  ;;  %v3450_v42 = vld [vmem:[#allocation13 + $0x18] sm:$0xff]  }
 0x471   :  { %3147 = vmatpush3.bf16.msra.mxu0 %v3449_v41 }
 0x472   :  { %3148 = vmatprep.subr.bf16.mxu0 %v3450_v42 }
 0x475   :  { %3149 = vmatpush3.bf16.msra.mxu0 %v3450_v42 }
 0x477   :  { %3131 = vmatmul.mubr.bf16.gmra.mrb[20].mxu1 %v4260_v43  ;;  %v3451_v43 = vld [vmem:[#allocation13 + $0x20] sm:$0xff]  }
 0x478   :  { %3134 = vmatprep.mubr.bf16.mxu1 %v4265_v44  ;;  %3150 = vmatprep.subr.bf16.mxu0 %v3451_v43  ;;  %v3452_v44 = vld [vmem:[#allocation13 + $0x28] sm:$0xff]  }
 0x479   :  { %3151 = vmatpush3.bf16.msra.mxu0 %v3451_v43 }
 0x47a   :  { %3152 = vmatprep.subr.bf16.mxu0 %v3452_v44 }
 0x47d   :  { %3153 = vmatpush3.bf16.msra.mxu0 %v3452_v44 }
 0x47f   :  { %3135 = vmatmul.mubr.bf16.gmra.mrb[24].mxu1 %v4272_v45  ;;  %v3453_v45 = vld [vmem:[#allocation13 + $0x30] sm:$0xff]  }
 0x480   :  { %3138 = vmatprep.mubr.bf16.mxu1 %v4277_v46  ;;  %3154 = vmatprep.subr.bf16.mxu0 %v3453_v45  ;;  %v4460_v46 = vld [vmem:[#allocation9] ss:$0 sm:$0xff] }
 0x481   :  { %3155 = vmatpush3.bf16.msra.mxu0 %v3453_v45 }
 0x487   :  { %3139 = vmatmul.mubr.bf16.gmra.mrb[28].mxu1 %v4284_v47 }
 0x488   :  { %3190 = vmatprep.mubr.bf16.mxu1 %v4242_v16  ;;  %v3454_v16 = vld [vmem:[#allocation13 + $0x38] sm:$0xff]  }
 0x489   :  { %3156 = vmatprep.subr.bf16.mxu0 %v3454_v16 }
 0x48a   :  { %3157 = vmatpush3.bf16.msra.mxu0 %v3454_v16 }
 0x542   :  { %v3128_v47 = vpop.f32.mrb[16].mxu1 }
 0x543   :  { %v1029_v58 = vpop.f32.mrb[17].mxu1  ;;  %v4466_v4 = vadd.f32 %v3128_v47, %v4460_v46 }
 0x544   :  { %v4463_v60 = vadd.f32 %v4460_v46, %v1029_v58  ;;  %v3129_v59 = vpop.f32.mrb[18].mxu1 }
 0x545   :  { %v1032_v0 = vpop.f32.mrb[19].mxu1  ;;  %v4474_v1 = vadd.f32 %v3129_v59, %v4460_v46  ;;  %v1116_v5 = vmul.f32 %v4466_v4, %v4466_v4 }
 0x546   :  { %v4469_v63 = vadd.f32 %v4460_v46, %v1032_v0  ;;  %v1114_v62 = vmul.f32 %v4463_v60, %v4463_v60 }
 0x547   :  { %v1117_v61 = vmul.f32 %v4474_v1, %v4474_v1 }
 0x548   :  { %v1092_v11 = vadd.f32 %v4469_v63, %v4463_v60  ;;  %v1115_v35 = vmul.f32 %v4469_v63, %v4469_v63 }
 0x54a   :  { %v1093_v20 = vadd.f32 %v1092_v11, %v4466_v4  ;;  %v1130_v49 = vadd.f32 %v1115_v35, %v1114_v62  ;;  %v3132_v7 = vpop.f32.mrb[20].mxu1 }
 0x54b   :  { %v1045_v8 = vpop.f32.mrb[21].mxu1  ;;  %v4490_v10 = vadd.f32 %v3132_v7, %v4460_v46 }
 0x54c   :  { %v1131_v14 = vadd.f32 %v1130_v49, %v1116_v5  ;;  %v4486_v40 = vadd.f32 %v4460_v46, %v1045_v8  ;;  %v1094_v9 = vadd.f32 %v1093_v20, %v4474_v1  ;;  %v3133_v3 = vpop.f32.mrb[22].mxu1 }
 0x54d   :  { %v1048_v12 = vpop.f32.mrb[23].mxu1  ;;  %v4499_v18 = vadd.f32 %v3133_v3, %v4460_v46  ;;  %v1120_v2 = vmul.f32 %v4490_v10, %v4490_v10 }
 0x54e   :  { %v1095_v22 = vadd.f32 %v1094_v9, %v4486_v40  ;;  %v1118_v32 = vmul.f32 %v4486_v40, %v4486_v40  ;;  %v1132_v13 = vadd.f32 %v1131_v14, %v1117_v61  ;;  %v4496_v15 = vadd.f32 %v4460_v46, %v1048_v12 }
 0x54f   :  { %v1121_v27 = vmul.f32 %v4499_v18, %v4499_v18 }
 0x550   :  { %v1133_v17 = vadd.f32 %v1132_v13, %v1118_v32  ;;  %v1096_v19 = vadd.f32 %v1095_v22, %v4496_v15  ;;  %v1119_v21 = vmul.f32 %v4496_v15, %v4496_v15 }
 0x552   :  { %v1097_v23 = vadd.f32 %v1096_v19, %v4490_v10  ;;  %v1134_v24 = vadd.f32 %v1133_v17, %v1119_v21  ;;  %v3136_v25 = vpop.f32.mrb[24].mxu1 }
 0x553   :  { %v1061_v26 = vpop.f32.mrb[25].mxu1  ;;  %v4514_v30 = vadd.f32 %v3136_v25, %v4460_v46 }
 0x554   :  { %v1135_v56 = vadd.f32 %v1134_v24, %v1120_v2  ;;  %v4510_v6 = vadd.f32 %v4460_v46, %v1061_v26  ;;  %v1098_v28 = vadd.f32 %v1097_v23, %v4499_v18  ;;  %v3137_v29 = vpop.f32.mrb[26].mxu1 }
 0x555   :  { %v1064_v31 = vpop.f32.mrb[27].mxu1  ;;  %v4523_v39 = vadd.f32 %v3137_v29, %v4460_v46  ;;  %v1124_v51 = vmul.f32 %v4514_v30, %v4514_v30 }
 0x556   :  { %v1099_v33 = vadd.f32 %v1098_v28, %v4510_v6  ;;  %v1122_v34 = vmul.f32 %v4510_v6, %v4510_v6  ;;  %v1136_v36 = vadd.f32 %v1135_v56, %v1121_v27  ;;  %v4520_v37 = vadd.f32 %v4460_v46, %v1064_v31 }
 0x557   :  { %v1125_v57 = vmul.f32 %v4523_v39, %v4523_v39 }
 0x558   :  { %v1137_v38 = vadd.f32 %v1136_v36, %v1122_v34  ;;  %v1100_v48 = vadd.f32 %v1099_v33, %v4520_v37  ;;  %v1123_v50 = vmul.f32 %v4520_v37, %v4520_v37 }
 0x55a   :  { %v1101_v52 = vadd.f32 %v1100_v48, %v4514_v30  ;;  %v1138_v53 = vadd.f32 %v1137_v38, %v1123_v50  ;;  %v3140_v54 = vpop.f32.mrb[28].mxu1 }
 0x55b   :  { %v1077_v55 = vpop.f32.mrb[29].mxu1  ;;  %v4538_v45 = vadd.f32 %v3140_v54, %v4460_v46  ;;  %v4590_v54 = vld [vmem:[#allocation12] ss:$0 sm:$0xff] }
 0x55c   :  { %v1139_v41 = vadd.f32 %v1138_v53, %v1124_v51  ;;  %v4534_v42 = vadd.f32 %v4460_v46, %v1077_v55  ;;  %v1102_v43 = vadd.f32 %v1101_v52, %v4523_v39  ;;  %v3141_v44 = vpop.f32.mrb[30].mxu1  ;;  %v4588_v51 = vld [vmem:[#allocation10] ss:$0 sm:$0xff] }
 0x55d   :  { %v1080_v16 = vpop.f32.mrb[31].mxu1  ;;  %v4545_v11 = vadd.f32 %v3141_v44, %v4460_v46  ;;  %v1128_v20 = vmul.f32 %v4538_v45, %v4538_v45 }
 0x55e   :  { %v1103_v47 = vadd.f32 %v1102_v43, %v4534_v42  ;;  %v1126_v58 = vmul.f32 %v4534_v42, %v4534_v42  ;;  %v1140_v59 = vadd.f32 %v1139_v41, %v1125_v57  ;;  %v1081_v0 = vadd.f32 %v4460_v46, %v1080_v16 }
 0x55f   :  { %v1129_v8 = vmul.f32 %v4545_v11, %v4545_v11 }
 0x560   :  { %v1141_v62 = vadd.f32 %v1140_v59, %v1126_v58  ;;  %v1104_v35 = vadd.f32 %v1103_v47, %v1081_v0  ;;  %v1127_v5 = vmul.f32 %v1081_v0, %v1081_v0 }
 0x562   :  { %v1105_v49 = vadd.f32 %v1104_v35, %v4538_v45  ;;  %v1142_v7 = vadd.f32 %v1141_v62, %v1127_v5 }
 0x564   :  { %v1106_v61 = vadd.f32 %v1105_v49, %v4545_v11  ;;  %v1143_v14 = vadd.f32 %v1142_v7, %v1128_v20 }
 0x566   :  { %v1107_v9 = vrot.slane %v1106_v61, 4  ;;  %v1144_v3 = vadd.f32 %v1143_v14, %v1129_v8 }
 0x568   :  { %v1108_v12 = vadd.f32 %v1107_v9, %v1106_v61  ;;  %v1145_v22 = vrot.slane %v1144_v3, 4 }
 0x56a   :  { %v1109_v46 = vrot.slane %v1108_v12, 2  ;;  %v1146_v32 = vadd.f32 %v1145_v22, %v1144_v3 }
 0x56c   :  { %v1110_v13 = vadd.f32 %v1109_v46, %v1108_v12  ;;  %v1147_v17 = vrot.slane %v1146_v32, 2 }
 0x56e   :  { %v1111_v19 = vrot.slane %v1110_v13, 1  ;;  %v1148_v21 = vadd.f32 %v1147_v17, %v1146_v32 }
 0x570   :  { %v1112_v2 = vadd.f32 %v1111_v19, %v1110_v13  ;;  %v1149_v23 = vrot.slane %v1148_v21, 1 }
 0x572   :  { %v4553_v24 = vmul.f32 0.0078125, %v1112_v2  ;;  %v1150_v25 = vadd.f32 %v1149_v23, %v1148_v21 }
 0x574   :  { %v1151_v26 = vmul.f32 0.0078125, %v1150_v25  ;;  %v1152_v27 = vmul.f32 %v4553_v24, %v4553_v24  ;;  %v1167_v56 = vsub.f32 %v1081_v0, %v4553_v24  ;;  %v1154_v28 = vsub.f32 %v4463_v60, %v4553_v24 }
 0x575   :  { %v1155_v29 = vsub.f32 %v4469_v63, %v4553_v24  ;;  %v1156_v31 = vsub.f32 %v4466_v4, %v4553_v24  ;;  %v1157_v33 = vsub.f32 %v4474_v1, %v4553_v24  ;;  %v1158_v34 = vsub.f32 %v4486_v40, %v4553_v24 }
 0x576   :  { %v1153_v36 = vsub.f32 %v1151_v26, %v1152_v27  ;;  %v1159_v38 = vsub.f32 %v4496_v15, %v4553_v24  ;;  %v1160_v48 = vsub.f32 %v4490_v10, %v4553_v24  ;;  %v1161_v60 = vsub.f32 %v4499_v18, %v4553_v24 }
 0x577   :  { %v1162_v63 = vsub.f32 %v4510_v6, %v4553_v24  ;;  %v1163_v4 = vsub.f32 %v4520_v37, %v4553_v24  ;;  %v1164_v1 = vsub.f32 %v4514_v30, %v4553_v24  ;;  %v1165_v40 = vsub.f32 %v4523_v39, %v4553_v24 }
 0x578   :  { %v1170_v50 = vadd.f32 1e-05, %v1153_v36  ;;  %v1166_v15 = vsub.f32 %v4534_v42, %v4553_v24  ;;  %v1168_v10 = vsub.f32 %v4538_v45, %v4553_v24  ;;  %v1169_v18 = vsub.f32 %v4545_v11, %v4553_v24 }
 0x57a   :  { %3481 = vrsqrt.f32 %v1170_v50 }
 0x584   :  { %v3482_v6 = vpop.eup %3481 }
 0x585   :  { %v1185_v37 = vmul.f32 %v3482_v6, %v1167_v56  ;;  %v1172_v52 = vmul.f32 %v3482_v6, %v1154_v28  ;;  %v1173_v30 = vmul.f32 %v3482_v6, %v1155_v29  ;;  %v1174_v53 = vmul.f32 %v3482_v6, %v1156_v31 }
 0x586   :  { %v1175_v39 = vmul.f32 %v3482_v6, %v1157_v33  ;;  %v1176_v55 = vmul.f32 %v3482_v6, %v1158_v34  ;;  %v1177_v57 = vmul.f32 %v3482_v6, %v1159_v38  ;;  %v1178_v41 = vmul.f32 %v3482_v6, %v1160_v48 }
 0x587   :  { %v1195_v42 = vmul.f32 %v4588_v51, %v1172_v52  ;;  %v1196_v43 = vmul.f32 %v4588_v51, %v1173_v30  ;;  %v1197_v44 = vmul.f32 %v4588_v51, %v1174_v53  ;;  %v1179_v45 = vmul.f32 %v3482_v6, %v1161_v60 }
 0x588   :  { %v1198_v16 = vmul.f32 %v4588_v51, %v1175_v39  ;;  %v1199_v47 = vmul.f32 %v4588_v51, %v1176_v55  ;;  %v1200_v58 = vmul.f32 %v4588_v51, %v1177_v57  ;;  %v1201_v59 = vmul.f32 %v4588_v51, %v1178_v41 }
 0x589   :  { %v1218_v0 = vadd.f32 %v4590_v54, %v1195_v42  ;;  %v1219_v62 = vadd.f32 %v4590_v54, %v1196_v43  ;;  %v1220_v11 = vadd.f32 %v4590_v54, %v1197_v44  ;;  %v1202_v35 = vmul.f32 %v4588_v51, %v1179_v45 }
 0x58a   :  { %v1221_v5 = vadd.f32 %v4590_v54, %v1198_v16  ;;  %v1222_v20 = vadd.f32 %v4590_v54, %v1199_v47  ;;  %v1223_v49 = vadd.f32 %v4590_v54, %v1200_v58  ;;  %v1224_v7 = vadd.f32 %v4590_v54, %v1201_v59 }
 0x58b   :  { %v1234_v8 = vmax.f32 %v1218_v0, 0.0  ;;  %v1235_v61 = vmax.f32 %v1219_v62, 0.0  ;;  %v1236_v14 = vmax.f32 %v1220_v11, 0.0  ;;  %v1225_v9 = vadd.f32 %v4590_v54, %v1202_v35 }
 0x58c   :  { %v1237_v3 = vmax.f32 %v1221_v5, 0.0  ;;  %v1238_v12 = vmax.f32 %v1222_v20, 0.0  ;;  %v1239_v22 = vmax.f32 %v1223_v49, 0.0  ;;  %v1240_v46 = vmax.f32 %v1224_v7, 0.0 }
 0x58d   :  { %v1250_v32 = vpack.c.bf16 %v1235_v61, %v1234_v8  ;;  %v1241_v13 = vmax.f32 %v1225_v9, 0.0  ;;  %v1180_v17 = vmul.f32 %v3482_v6, %v1162_v63  ;;  %v1181_v19 = vmul.f32 %v3482_v6, %v1163_v4 }
 0x58e   :  { %v1251_v21 = vpack.c.bf16 %v1237_v3, %v1236_v14  ;;  %v1252_v2 = vpack.c.bf16 %v1239_v22, %v1238_v12  ;;  %v1182_v23 = vmul.f32 %v3482_v6, %v1164_v1  ;;  %v1183_v24 = vmul.f32 %v3482_v6, %v1165_v40 }
 0x58f   :  { %3158 = vmatprep.mubr.bf16.mxu0 %v1250_v32  ;;  %v1253_v25 = vpack.c.bf16 %v1241_v13, %v1240_v46  ;;  %v1203_v26 = vmul.f32 %v4588_v51, %v1180_v17  ;;  %v1204_v27 = vmul.f32 %v4588_v51, %v1181_v19  ;;  %v1184_v56 = vmul.f32 %v3482_v6, %v1166_v15  ;;  %v4627_v32 = vld [vmem:[%s5297_s0 + $0x8] sm:$0xff]   ;;  %v4633_v13 = vld [vmem:[%s5297_s0 + $0x10] sm:$0xff]   ;;  %v4639_v17 = vld [vmem:[%s5297_s0 + $0x18] sm:$0xff]  }
 0x590   :  { %3159 = vmatmul.mubr.bf16.vlgmr.msra.gmra.mrb[32].mxu0 %v1251_v21  ;;  %v1205_v28 = vmul.f32 %v4588_v51, %v1182_v23  ;;  %v1206_v29 = vmul.f32 %v4588_v51, %v1183_v24  ;;  %v1208_v31 = vmul.f32 %v4588_v51, %v1185_v37  ;;  %v1186_v33 = vmul.f32 %v3482_v6, %v1168_v10  ;;  %v4645_v19 = vld [vmem:[%s5297_s0 + $0x20] sm:$0xff]   ;;  %v4651_v21 = vld [vmem:[%s5297_s0 + $0x28] sm:$0xff]   ;;  %v4663_v23 = vld [vmem:[%s5297_s0 + $0x38] sm:$0xff]  }
 0x591   :  { %3162 = vmatprep.mubr.bf16.mxu0 %v1252_v2  ;;  %v1226_v34 = vadd.f32 %v4590_v54, %v1203_v26  ;;  %v1227_v36 = vadd.f32 %v4590_v54, %v1204_v27  ;;  %v1207_v38 = vmul.f32 %v4588_v51, %v1184_v56  ;;  %v1187_v48 = vmul.f32 %v3482_v6, %v1169_v18  ;;  %v4657_v2 = vld [vmem:[%s5297_s0 + $0x30] sm:$0xff]   ;;  %v4669_v24 = vld [vmem:[%s5297_s0] sm:$0xff]  }
 0x592   :  { %v1228_v60 = vadd.f32 %v4590_v54, %v1205_v28  ;;  %v1229_v63 = vadd.f32 %v4590_v54, %v1206_v29  ;;  %v1231_v4 = vadd.f32 %v4590_v54, %v1208_v31  ;;  %v1209_v1 = vmul.f32 %v4588_v51, %v1186_v33  ;;  %v3456_v26 = vld [vmem:[#allocation19 + $0x8] sm:$0xff]   ;;  %v3457_v27 = vld [vmem:[#allocation19 + $0x10] sm:$0xff]   ;;  %v3458_v56 = vld [vmem:[#allocation19 + $0x18] sm:$0xff]  }
 0x593   :  { %v1242_v40 = vmax.f32 %v1226_v34, 0.0  ;;  %v1243_v50 = vmax.f32 %v1227_v36, 0.0  ;;  %v1230_v15 = vadd.f32 %v4590_v54, %v1207_v38  ;;  %v1210_v10 = vmul.f32 %v4588_v51, %v1187_v48  ;;  %v3459_v28 = vld [vmem:[#allocation19 + $0x20] sm:$0xff]   ;;  %v3460_v29 = vld [vmem:[#allocation19 + $0x28] sm:$0xff]   ;;  %v3461_v31 = vld [vmem:[#allocation19 + $0x30] sm:$0xff]  }
 0x594   :  { %v1244_v37 = vmax.f32 %v1228_v60, 0.0  ;;  %v1245_v52 = vmax.f32 %v1229_v63, 0.0  ;;  %v1247_v30 = vmax.f32 %v1231_v4, 0.0  ;;  %v1232_v53 = vadd.f32 %v4590_v54, %v1209_v1  ;;  %v3462_v33 = vld [vmem:[#allocation19 + $0x38] sm:$0xff]  }
 0x595   :  { %v1254_v18 = vpack.c.bf16 %v1243_v50, %v1242_v40  ;;  %v1246_v6 = vmax.f32 %v1230_v15, 0.0  ;;  %v1233_v39 = vadd.f32 %v4590_v54, %v1210_v10  ;;  %v4672_v34 = vld [vmem:[#allocation15] ss:$0 sm:$0xff] }
 0x596   :  { %v1255_v55 = vpack.c.bf16 %v1245_v52, %v1244_v37  ;;  %v1248_v57 = vmax.f32 %v1232_v53, 0.0 }
 0x597   :  { %v1256_v41 = vpack.c.bf16 %v1247_v30, %v1246_v6  ;;  %v1249_v42 = vmax.f32 %v1233_v39, 0.0 }
 0x598   :  { %3163 = vmatmul.mubr.bf16.gmra.mrb[36].mxu0 %v1253_v25  ;;  %v3455_v25 = vld [vmem:[#allocation19] sm:$0xff]  }
 0x599   :  { %3166 = vmatprep.mubr.bf16.mxu0 %v1254_v18  ;;  %v1257_v43 = vpack.c.bf16 %v1249_v42, %v1248_v57  ;;  %3206 = vmatprep.subr.bf16.mxu0 %v3455_v25 }
 0x59a   :  { %3207 = vmatpush3.bf16.msra.mxu0 %v3455_v25 }
 0x59b   :  { %3208 = vmatprep.subr.bf16.mxu0 %v3456_v26 }
 0x59e   :  { %3209 = vmatpush3.bf16.msra.mxu0 %v3456_v26 }
 0x59f   :  { %3210 = vmatprep.subr.bf16.mxu0 %v3457_v27 }
 0x5a0   :  { %3167 = vmatmul.mubr.bf16.gmra.mrb[40].mxu0 %v1255_v55 }
 0x5a1   :  { %3170 = vmatprep.mubr.bf16.mxu0 %v1256_v41 }
 0x5a2   :  { %3211 = vmatpush3.bf16.msra.mxu0 %v3457_v27 }
 0x5a3   :  { %3212 = vmatprep.subr.bf16.mxu0 %v3458_v56 }
 0x5a6   :  { %3213 = vmatpush3.bf16.msra.mxu0 %v3458_v56 }
 0x5a7   :  { %3214 = vmatprep.subr.bf16.mxu0 %v3459_v28 }
 0x5a8   :  { %3171 = vmatmul.mubr.bf16.gmra.mrb[44].mxu0 %v1257_v43 }
 0x5aa   :  { %3215 = vmatpush3.bf16.msra.mxu0 %v3459_v28 }
 0x5ab   :  { %3216 = vmatprep.subr.bf16.mxu0 %v3460_v29 }
 0x5ae   :  { %3217 = vmatpush3.bf16.msra.mxu0 %v3460_v29 }
 0x5af   :  { %3218 = vmatprep.subr.bf16.mxu0 %v3461_v31 }
 0x5b2   :  { %3219 = vmatpush3.bf16.msra.mxu0 %v3461_v31 }
 0x5b3   :  { %3220 = vmatprep.subr.bf16.mxu0 %v3462_v33 }
 0x5b6   :  { %3221 = vmatpush3.bf16.msra.mxu0 %v3462_v33 }
 0x663   :  { %v3160_v51 = vpop.f32.mrb[32].mxu0 }
 0x664   :  { %v1356_v44 = vpop.f32.mrb[33].mxu0 }
 0x665   :  { %v3161_v45 = vpop.f32.mrb[34].mxu0 }
 0x666   :  { %v1420_v16 = vpack.c.bf16 %v3161_v45, %v3160_v51  ;;  %v1359_v47 = vpop.f32.mrb[35].mxu0 }
 0x667   :  { %v1419_v58 = vpack.c.bf16 %v1359_v47, %v1356_v44 }
 0x669   :  { %3174 = vmatprep.subr.bf16.mxu1 %v1419_v58 }
 0x66a   :  { %3175 = vmatpush3.bf16.msra.mxu1 %v1419_v58 }
 0x66b   :  { %v3164_v59 = vpop.f32.mrb[36].mxu0  ;;  %3176 = vmatprep.subr.bf16.mxu1 %v1420_v16 }
 0x66c   :  { %v1372_v54 = vpop.f32.mrb[37].mxu0 }
 0x66d   :  { %v3165_v0 = vpop.f32.mrb[38].mxu0 }
 0x66e   :  { %v1422_v62 = vpack.c.bf16 %v3165_v0, %v3164_v59  ;;  %v1375_v11 = vpop.f32.mrb[39].mxu0  ;;  %3177 = vmatpush3.bf16.msra.mxu1 %v1420_v16 }
 0x66f   :  { %v1421_v35 = vpack.c.bf16 %v1375_v11, %v1372_v54 }
 0x671   :  { %3178 = vmatprep.subr.bf16.mxu1 %v1421_v35 }
 0x672   :  { %3179 = vmatpush3.bf16.msra.mxu1 %v1421_v35 }
 0x673   :  { %v3168_v5 = vpop.f32.mrb[40].mxu0  ;;  %3180 = vmatprep.subr.bf16.mxu1 %v1422_v62 }
 0x674   :  { %v1388_v20 = vpop.f32.mrb[41].mxu0 }
 0x675   :  { %v3169_v49 = vpop.f32.mrb[42].mxu0 }
 0x676   :  { %v1424_v7 = vpack.c.bf16 %v3169_v49, %v3168_v5  ;;  %v1391_v8 = vpop.f32.mrb[43].mxu0  ;;  %3181 = vmatpush3.bf16.msra.mxu1 %v1422_v62 }
 0x677   :  { %v1423_v61 = vpack.c.bf16 %v1391_v8, %v1388_v20 }
 0x679   :  { %3182 = vmatprep.subr.bf16.mxu1 %v1423_v61 }
 0x67a   :  { %3183 = vmatpush3.bf16.msra.mxu1 %v1423_v61 }
 0x67b   :  { %v3172_v14 = vpop.f32.mrb[44].mxu0  ;;  %3184 = vmatprep.subr.bf16.mxu1 %v1424_v7 }
 0x67c   :  { %v1404_v9 = vpop.f32.mrb[45].mxu0 }
 0x67d   :  { %v3173_v3 = vpop.f32.mrb[46].mxu0 }
 0x67e   :  { %v1426_v12 = vpack.c.bf16 %v3173_v3, %v3172_v14  ;;  %v1407_v22 = vpop.f32.mrb[47].mxu0  ;;  %3185 = vmatpush3.bf16.msra.mxu1 %v1424_v7 }
 0x67f   :  { %v1425_v46 = vpack.c.bf16 %v1407_v22, %v1404_v9 }
 0x681   :  { %3186 = vmatprep.subr.bf16.mxu1 %v1425_v46 }
 0x682   :  { %3187 = vmatpush3.bf16.msra.mxu1 %v1425_v46 }
 0x683   :  { %3188 = vmatprep.subr.bf16.mxu1 %v1426_v12 }
 0x686   :  { %3189 = vmatpush3.bf16.msra.mxu1 %v1426_v12 }
 0x689   :  { %3191 = vmatmul.mubr.bf16.vlgmr.msra.gmra.mrb[32].mxu1 %v4627_v32 }
 0x68a   :  { %3194 = vmatprep.mubr.bf16.mxu1 %v4633_v13 }
 0x691   :  { %3195 = vmatmul.mubr.bf16.gmra.mrb[36].mxu1 %v4639_v17 }
 0x692   :  { %3198 = vmatprep.mubr.bf16.mxu1 %v4645_v19 }
 0x699   :  { %3199 = vmatmul.mubr.bf16.gmra.mrb[40].mxu1 %v4651_v21 }
 0x69a   :  { %3202 = vmatprep.mubr.bf16.mxu1 %v4657_v2 }
 0x6a1   :  { %3203 = vmatmul.mubr.bf16.gmra.mrb[44].mxu1 %v4663_v23 }
 0x6a2   :  { %3254 = vmatprep.mubr.bf16.mxu1 %v4669_v24 }
 0x75c   :  { %v3192_v36 = vpop.f32.mrb[32].mxu1 }
 0x75d   :  { %v1468_v38 = vpop.f32.mrb[33].mxu1  ;;  %v4678_v4 = vadd.f32 %v3192_v36, %v4672_v34 }
 0x75e   :  { %v4675_v48 = vadd.f32 %v4672_v34, %v1468_v38  ;;  %v3193_v60 = vpop.f32.mrb[34].mxu1 }
 0x75f   :  { %v1471_v63 = vpop.f32.mrb[35].mxu1  ;;  %v4686_v50 = vadd.f32 %v3193_v60, %v4672_v34  ;;  %v1555_v37 = vmul.f32 %v4678_v4, %v4678_v4 }
 0x760   :  { %v4681_v1 = vadd.f32 %v4672_v34, %v1471_v63  ;;  %v1553_v40 = vmul.f32 %v4675_v48, %v4675_v48 }
 0x761   :  { %v1556_v6 = vmul.f32 %v4686_v50, %v4686_v50 }
 0x762   :  { %v1531_v15 = vadd.f32 %v4681_v1, %v4675_v48  ;;  %v1554_v10 = vmul.f32 %v4681_v1, %v4681_v1 }
 0x764   :  { %v1532_v52 = vadd.f32 %v1531_v15, %v4678_v4  ;;  %v1569_v30 = vadd.f32 %v1554_v10, %v1553_v40  ;;  %v3196_v53 = vpop.f32.mrb[36].mxu1 }
 0x765   :  { %v1484_v18 = vpop.f32.mrb[37].mxu1  ;;  %v4702_v42 = vadd.f32 %v3196_v53, %v4672_v34 }
 0x766   :  { %v1570_v39 = vadd.f32 %v1569_v30, %v1555_v37  ;;  %v4698_v55 = vadd.f32 %v4672_v34, %v1484_v18  ;;  %v1533_v57 = vadd.f32 %v1532_v52, %v4686_v50  ;;  %v3197_v41 = vpop.f32.mrb[38].mxu1 }
 0x767   :  { %v1487_v43 = vpop.f32.mrb[39].mxu1  ;;  %v4711_v58 = vadd.f32 %v3197_v41, %v4672_v34  ;;  %v1559_v0 = vmul.f32 %v4702_v42, %v4702_v42 }
 0x768   :  { %v1534_v51 = vadd.f32 %v1533_v57, %v4698_v55  ;;  %v1557_v44 = vmul.f32 %v4698_v55, %v4698_v55  ;;  %v1571_v45 = vadd.f32 %v1570_v39, %v1556_v6  ;;  %v4708_v16 = vadd.f32 %v4672_v34, %v1487_v43 }
 0x769   :  { %v1560_v20 = vmul.f32 %v4711_v58, %v4711_v58 }
 0x76a   :  { %v1572_v47 = vadd.f32 %v1571_v45, %v1557_v44  ;;  %v1535_v59 = vadd.f32 %v1534_v51, %v4708_v16  ;;  %v1558_v54 = vmul.f32 %v4708_v16, %v4708_v16 }
 0x76c   :  { %v1536_v62 = vadd.f32 %v1535_v59, %v4702_v42  ;;  %v1573_v11 = vadd.f32 %v1572_v47, %v1558_v54  ;;  %v3200_v35 = vpop.f32.mrb[40].mxu1 }
 0x76d   :  { %v1500_v5 = vpop.f32.mrb[41].mxu1  ;;  %v4726_v14 = vadd.f32 %v3200_v35, %v4672_v34 }
 0x76e   :  { %v1574_v49 = vadd.f32 %v1573_v11, %v1559_v0  ;;  %v4722_v7 = vadd.f32 %v4672_v34, %v1500_v5  ;;  %v1537_v8 = vadd.f32 %v1536_v62, %v4711_v58  ;;  %v3201_v61 = vpop.f32.mrb[42].mxu1 }
 0x76f   :  { %v1503_v9 = vpop.f32.mrb[43].mxu1  ;;  %v4735_v26 = vadd.f32 %v3201_v61, %v4672_v34  ;;  %v1563_v28 = vmul.f32 %v4726_v14, %v4726_v14 }
 0x770   :  { %v1538_v3 = vadd.f32 %v1537_v8, %v4722_v7  ;;  %v1561_v12 = vmul.f32 %v4722_v7, %v4722_v7  ;;  %v1575_v22 = vadd.f32 %v1574_v49, %v1560_v20  ;;  %v4732_v46 = vadd.f32 %v4672_v34, %v1503_v9 }
 0x771   :  { %v1564_v38 = vmul.f32 %v4735_v26, %v4735_v26 }
 0x772   :  { %v1576_v25 = vadd.f32 %v1575_v22, %v1561_v12  ;;  %v1539_v27 = vadd.f32 %v1538_v3, %v4732_v46  ;;  %v1562_v56 = vmul.f32 %v4732_v46, %v4732_v46 }
 0x774   :  { %v1540_v29 = vadd.f32 %v1539_v27, %v4726_v14  ;;  %v1577_v31 = vadd.f32 %v1576_v25, %v1562_v56  ;;  %v3204_v33 = vpop.f32.mrb[44].mxu1 }
 0x775   :  { %v1516_v36 = vpop.f32.mrb[45].mxu1  ;;  %v4750_v10 = vadd.f32 %v3204_v33, %v4672_v34 }
 0x776   :  { %v1578_v60 = vadd.f32 %v1577_v31, %v1563_v28  ;;  %v4746_v63 = vadd.f32 %v4672_v34, %v1516_v36  ;;  %v1541_v40 = vadd.f32 %v1540_v29, %v4735_v26  ;;  %v3205_v15 = vpop.f32.mrb[46].mxu1 }
 0x777   :  { %v1519_v37 = vpop.f32.mrb[47].mxu1  ;;  %v4757_v39 = vadd.f32 %v3205_v15, %v4672_v34  ;;  %v1567_v43 = vmul.f32 %v4750_v10, %v4750_v10  ;;  %v4800_v15 = vld [vmem:[#allocation16] ss:$0 sm:$0xff] }
 0x778   :  { %v1542_v52 = vadd.f32 %v1541_v40, %v4746_v63  ;;  %v1565_v30 = vmul.f32 %v4746_v63, %v4746_v63  ;;  %v1579_v53 = vadd.f32 %v1578_v60, %v1564_v38  ;;  %v1520_v18 = vadd.f32 %v4672_v34, %v1519_v37 }
 0x779   :  { %v1568_v45 = vmul.f32 %v4757_v39, %v4757_v39 }
 0x77a   :  { %v1580_v6 = vadd.f32 %v1579_v53, %v1565_v30  ;;  %v1543_v57 = vadd.f32 %v1542_v52, %v1520_v18  ;;  %v1566_v41 = vmul.f32 %v1520_v18, %v1520_v18  ;;  %v4802_v30 = vld [vmem:[#allocation18] ss:$0 sm:$0xff] }
 0x77c   :  { %v1544_v51 = vadd.f32 %v1543_v57, %v4750_v10  ;;  %v1581_v44 = vadd.f32 %v1580_v6, %v1566_v41 }
 0x77e   :  { %v1545_v47 = vadd.f32 %v1544_v51, %v4757_v39  ;;  %v1582_v59 = vadd.f32 %v1581_v44, %v1567_v43 }
 0x780   :  { %v1546_v54 = vrot.slane %v1545_v47, 4  ;;  %v1583_v0 = vadd.f32 %v1582_v59, %v1568_v45 }
 0x782   :  { %v1547_v62 = vadd.f32 %v1546_v54, %v1545_v47  ;;  %v1584_v11 = vrot.slane %v1583_v0, 4 }
 0x784   :  { %v1548_v34 = vrot.slane %v1547_v62, 2  ;;  %v1585_v35 = vadd.f32 %v1584_v11, %v1583_v0 }
 0x786   :  { %v1549_v5 = vadd.f32 %v1548_v34, %v1547_v62  ;;  %v1586_v20 = vrot.slane %v1585_v35, 2 }
 0x788   :  { %v1550_v49 = vrot.slane %v1549_v5, 1  ;;  %v1587_v8 = vadd.f32 %v1586_v20, %v1585_v35 }
 0x78a   :  { %v1551_v61 = vadd.f32 %v1550_v49, %v1549_v5  ;;  %v1588_v9 = vrot.slane %v1587_v8, 1 }
 0x78c   :  { %v4765_v3 = vmul.f32 0.0078125, %v1551_v61  ;;  %v1589_v12 = vadd.f32 %v1588_v9, %v1587_v8 }
 0x78e   :  { %v1590_v22 = vmul.f32 0.0078125, %v1589_v12  ;;  %v1591_v25 = vmul.f32 %v4765_v3, %v4765_v3  ;;  %v1606_v27 = vsub.f32 %v1520_v18, %v4765_v3  ;;  %v1593_v56 = vsub.f32 %v4675_v48, %v4765_v3 }
 0x78f   :  { %v1594_v28 = vsub.f32 %v4681_v1, %v4765_v3  ;;  %v1595_v29 = vsub.f32 %v4678_v4, %v4765_v3  ;;  %v1596_v31 = vsub.f32 %v4686_v50, %v4765_v3  ;;  %v1597_v33 = vsub.f32 %v4698_v55, %v4765_v3 }
 0x790   :  { %v1592_v36 = vsub.f32 %v1590_v22, %v1591_v25  ;;  %v1598_v38 = vsub.f32 %v4708_v16, %v4765_v3  ;;  %v1599_v60 = vsub.f32 %v4702_v42, %v4765_v3  ;;  %v1600_v48 = vsub.f32 %v4711_v58, %v4765_v3 }
 0x791   :  { %v1601_v1 = vsub.f32 %v4722_v7, %v4765_v3  ;;  %v1602_v4 = vsub.f32 %v4732_v46, %v4765_v3  ;;  %v1603_v50 = vsub.f32 %v4726_v14, %v4765_v3  ;;  %v1604_v55 = vsub.f32 %v4735_v26, %v4765_v3 }
 0x792   :  { %v1609_v40 = vadd.f32 1e-05, %v1592_v36  ;;  %v1605_v16 = vsub.f32 %v4746_v63, %v4765_v3  ;;  %v1607_v42 = vsub.f32 %v4750_v10, %v4765_v3  ;;  %v1608_v58 = vsub.f32 %v4757_v39, %v4765_v3 }
 0x794   :  { %3483 = vrsqrt.f32 %v1609_v40 }
 0x79e   :  { %v3484_v7 = vpop.eup %3483 }
 0x79f   :  { %v1624_v46 = vmul.f32 %v3484_v7, %v1606_v27  ;;  %v1611_v37 = vmul.f32 %v3484_v7, %v1593_v56  ;;  %v1612_v14 = vmul.f32 %v3484_v7, %v1594_v28  ;;  %v1613_v52 = vmul.f32 %v3484_v7, %v1595_v29 }
 0x7a0   :  { %v1614_v26 = vmul.f32 %v3484_v7, %v1596_v31  ;;  %v1615_v53 = vmul.f32 %v3484_v7, %v1597_v33  ;;  %v1616_v18 = vmul.f32 %v3484_v7, %v1598_v38  ;;  %v1617_v63 = vmul.f32 %v3484_v7, %v1599_v60 }
 0x7a1   :  { %v1634_v6 = vmul.f32 %v4800_v15, %v1611_v37  ;;  %v1635_v10 = vmul.f32 %v4800_v15, %v1612_v14  ;;  %v1636_v39 = vmul.f32 %v4800_v15, %v1613_v52  ;;  %v1618_v57 = vmul.f32 %v3484_v7, %v1600_v48 }
 0x7a2   :  { %v1637_v41 = vmul.f32 %v4800_v15, %v1614_v26  ;;  %v1638_v43 = vmul.f32 %v4800_v15, %v1615_v53  ;;  %v1639_v51 = vmul.f32 %v4800_v15, %v1616_v18  ;;  %v1640_v44 = vmul.f32 %v4800_v15, %v1617_v63 }
 0x7a3   :  { %v1657_v45 = vadd.f32 %v4802_v30, %v1634_v6  ;;  %v1658_v47 = vadd.f32 %v4802_v30, %v1635_v10  ;;  %v1659_v59 = vadd.f32 %v4802_v30, %v1636_v39  ;;  %v1641_v54 = vmul.f32 %v4800_v15, %v1618_v57 }
 0x7a4   :  { %v1660_v0 = vadd.f32 %v4802_v30, %v1637_v41  ;;  %v1661_v62 = vadd.f32 %v4802_v30, %v1638_v43  ;;  %v1662_v11 = vadd.f32 %v4802_v30, %v1639_v51  ;;  %v1663_v34 = vadd.f32 %v4802_v30, %v1640_v44 }
 0x7a5   :  { %v1673_v35 = vmax.f32 %v1657_v45, 0.0  ;;  %v1674_v5 = vmax.f32 %v1658_v47, 0.0  ;;  %v1675_v20 = vmax.f32 %v1659_v59, 0.0  ;;  %v1664_v49 = vadd.f32 %v4802_v30, %v1641_v54 }
 0x7a6   :  { %v1676_v8 = vmax.f32 %v1660_v0, 0.0  ;;  %v1677_v61 = vmax.f32 %v1661_v62, 0.0  ;;  %v1678_v9 = vmax.f32 %v1662_v11, 0.0  ;;  %v1679_v3 = vmax.f32 %v1663_v34, 0.0 }
 0x7a7   :  { %v1689_v12 = vpack.c.bf16 %v1674_v5, %v1673_v35  ;;  %v1680_v22 = vmax.f32 %v1664_v49, 0.0  ;;  %v1619_v25 = vmul.f32 %v3484_v7, %v1601_v1  ;;  %v1620_v27 = vmul.f32 %v3484_v7, %v1602_v4 }
 0x7a8   :  { %v1690_v56 = vpack.c.bf16 %v1676_v8, %v1675_v20  ;;  %v1691_v28 = vpack.c.bf16 %v1678_v9, %v1677_v61  ;;  %v1621_v29 = vmul.f32 %v3484_v7, %v1603_v50  ;;  %v1622_v31 = vmul.f32 %v3484_v7, %v1604_v55 }
 0x7a9   :  { %3222 = vmatprep.mubr.bf16.mxu0 %v1689_v12  ;;  %v1692_v33 = vpack.c.bf16 %v1680_v22, %v1679_v3  ;;  %v1642_v36 = vmul.f32 %v4800_v15, %v1619_v25  ;;  %v1643_v38 = vmul.f32 %v4800_v15, %v1620_v27  ;;  %v1623_v60 = vmul.f32 %v3484_v7, %v1605_v16 }
 0x7aa   :  { %3223 = vmatmul.mubr.bf16.vlgmr.msra.gmra.mrb[48].mxu0 %v1690_v56  ;;  %v1644_v48 = vmul.f32 %v4800_v15, %v1621_v29  ;;  %v1645_v40 = vmul.f32 %v4800_v15, %v1622_v31  ;;  %v1647_v37 = vmul.f32 %v4800_v15, %v1624_v46  ;;  %v1625_v1 = vmul.f32 %v3484_v7, %v1607_v42 }
 0x7ab   :  { %3226 = vmatprep.mubr.bf16.mxu0 %v1691_v28  ;;  %v1665_v4 = vadd.f32 %v4802_v30, %v1642_v36  ;;  %v1666_v50 = vadd.f32 %v4802_v30, %v1643_v38  ;;  %v1646_v55 = vmul.f32 %v4800_v15, %v1623_v60  ;;  %v1626_v14 = vmul.f32 %v3484_v7, %v1608_v58  ;;  %v4874_v36 = vld [vmem:[#allocation21] ss:$0 sm:$0xff] }
 0x7ac   :  { %v1667_v52 = vadd.f32 %v4802_v30, %v1644_v48  ;;  %v1668_v16 = vadd.f32 %v4802_v30, %v1645_v40  ;;  %v1670_v26 = vadd.f32 %v4802_v30, %v1647_v37  ;;  %v1648_v53 = vmul.f32 %v4800_v15, %v1625_v1 }
 0x7ad   :  { %v1681_v18 = vmax.f32 %v1665_v4, 0.0  ;;  %v1682_v63 = vmax.f32 %v1666_v50, 0.0  ;;  %v1669_v42 = vadd.f32 %v4802_v30, %v1646_v55  ;;  %v1649_v46 = vmul.f32 %v4800_v15, %v1626_v14 }
 0x7ae   :  { %v1683_v6 = vmax.f32 %v1667_v52, 0.0  ;;  %v1684_v10 = vmax.f32 %v1668_v16, 0.0  ;;  %v1686_v39 = vmax.f32 %v1670_v26, 0.0  ;;  %v1671_v57 = vadd.f32 %v4802_v30, %v1648_v53 }
 0x7af   :  { %v1693_v58 = vpack.c.bf16 %v1682_v63, %v1681_v18  ;;  %v1685_v7 = vmax.f32 %v1669_v42, 0.0  ;;  %v1672_v41 = vadd.f32 %v4802_v30, %v1649_v46 }
 0x7b0   :  { %v1694_v43 = vpack.c.bf16 %v1684_v10, %v1683_v6  ;;  %v1687_v51 = vmax.f32 %v1671_v57, 0.0 }
 0x7b1   :  { %v1695_v44 = vpack.c.bf16 %v1686_v39, %v1685_v7  ;;  %v1688_v45 = vmax.f32 %v1672_v41, 0.0 }
 0x7b2   :  { %3227 = vmatmul.mubr.bf16.gmra.mrb[52].mxu0 %v1692_v33  ;;  %v3463_v33 = vld [vmem:[%s5269_s18] sm:$0xff]  }
 0x7b3   :  { %3230 = vmatprep.mubr.bf16.mxu0 %v1693_v58  ;;  %v1696_v47 = vpack.c.bf16 %v1688_v45, %v1687_v51  ;;  %3270 = vmatprep.subr.bf16.mxu0 %v3463_v33 }
 0x7b4   :  { %3271 = vmatpush3.bf16.msra.mxu0 %v3463_v33 }
 0x7ba   :  { %3231 = vmatmul.mubr.bf16.gmra.mrb[56].mxu0 %v1694_v43 }
 0x7bb   :  { %3234 = vmatprep.mubr.bf16.mxu0 %v1695_v44 }
 0x7c2   :  { %3235 = vmatmul.mubr.bf16.gmra.mrb[60].mxu0 %v1696_v47 }
 0x87d   :  { %v3224_v15 = vpop.f32.mrb[48].mxu0 }
 0x87e   :  { %v1795_v59 = vpop.f32.mrb[49].mxu0 }
 0x87f   :  { %v3225_v54 = vpop.f32.mrb[50].mxu0 }
 0x880   :  { %v1859_v0 = vpack.c.bf16 %v3225_v54, %v3224_v15  ;;  %v1798_v62 = vpop.f32.mrb[51].mxu0 }
 0x881   :  { %v1858_v11 = vpack.c.bf16 %v1798_v62, %v1795_v59 }
 0x883   :  { %3238 = vmatprep.subr.bf16.mxu1 %v1858_v11 }
 0x884   :  { %3239 = vmatpush3.bf16.msra.mxu1 %v1858_v11 }
 0x885   :  { %v3228_v34 = vpop.f32.mrb[52].mxu0  ;;  %3240 = vmatprep.subr.bf16.mxu1 %v1859_v0 }
 0x886   :  { %v1811_v30 = vpop.f32.mrb[53].mxu0 }
 0x887   :  { %v3229_v35 = vpop.f32.mrb[54].mxu0 }
 0x888   :  { %v1861_v5 = vpack.c.bf16 %v3229_v35, %v3228_v34  ;;  %v1814_v20 = vpop.f32.mrb[55].mxu0  ;;  %3241 = vmatpush3.bf16.msra.mxu1 %v1859_v0 }
 0x889   :  { %v1860_v49 = vpack.c.bf16 %v1814_v20, %v1811_v30 }
 0x88b   :  { %3242 = vmatprep.subr.bf16.mxu1 %v1860_v49 }
 0x88c   :  { %3243 = vmatpush3.bf16.msra.mxu1 %v1860_v49 }
 0x88d   :  { %v3232_v8 = vpop.f32.mrb[56].mxu0  ;;  %3244 = vmatprep.subr.bf16.mxu1 %v1861_v5 }
 0x88e   :  { %v1827_v61 = vpop.f32.mrb[57].mxu0 }
 0x88f   :  { %v3233_v9 = vpop.f32.mrb[58].mxu0 }
 0x890   :  { %v1863_v3 = vpack.c.bf16 %v3233_v9, %v3232_v8  ;;  %v1830_v12 = vpop.f32.mrb[59].mxu0  ;;  %3245 = vmatpush3.bf16.msra.mxu1 %v1861_v5 }
 0x891   :  { %v1862_v22 = vpack.c.bf16 %v1830_v12, %v1827_v61 }
 0x893   :  { %3246 = vmatprep.subr.bf16.mxu1 %v1862_v22 }
 0x894   :  { %3247 = vmatpush3.bf16.msra.mxu1 %v1862_v22 }
 0x895   :  { %v3236_v25 = vpop.f32.mrb[60].mxu0  ;;  %3248 = vmatprep.subr.bf16.mxu1 %v1863_v3 }
 0x896   :  { %v1843_v27 = vpop.f32.mrb[61].mxu0 }
 0x897   :  { %v3237_v56 = vpop.f32.mrb[62].mxu0 }
 0x898   :  { %v1865_v28 = vpack.c.bf16 %v3237_v56, %v3236_v25  ;;  %v1846_v29 = vpop.f32.mrb[63].mxu0  ;;  %3249 = vmatpush3.bf16.msra.mxu1 %v1863_v3 }
 0x899   :  { %v1864_v31 = vpack.c.bf16 %v1846_v29, %v1843_v27 }
 0x89b   :  { %3250 = vmatprep.subr.bf16.mxu1 %v1864_v31 }
 0x89c   :  { %3251 = vmatpush3.bf16.msra.mxu1 %v1864_v31 }
 0x89d   :  { %3252 = vmatprep.subr.bf16.mxu1 %v1865_v28 }
 0x8a0   :  { %3253 = vmatpush3.bf16.msra.mxu1 %v1865_v28 }
 0x8a3   :  { %3255 = vmatmul.mubr.bf16.vlgmr.msra.gmra.mrb[48].mxu1 %v4627_v32  ;;  %v3464_v32 = vld [vmem:[%s5269_s18 + $0x8] sm:$0xff]  }
 0x8a4   :  { %3258 = vmatprep.mubr.bf16.mxu1 %v4633_v13  ;;  %3272 = vmatprep.subr.bf16.mxu0 %v3464_v32  ;;  %v3465_v13 = vld [vmem:[%s5269_s18 + $0x10] sm:$0xff]  }
 0x8a5   :  { %3273 = vmatpush3.bf16.msra.mxu0 %v3464_v32 }
 0x8a6   :  { %3274 = vmatprep.subr.bf16.mxu0 %v3465_v13 }
 0x8a9   :  { %3275 = vmatpush3.bf16.msra.mxu0 %v3465_v13 }
 0x8ab   :  { %3259 = vmatmul.mubr.bf16.gmra.mrb[52].mxu1 %v4639_v17  ;;  %v3466_v17 = vld [vmem:[%s5269_s18 + $0x18] sm:$0xff]  }
 0x8ac   :  { %3262 = vmatprep.mubr.bf16.mxu1 %v4645_v19  ;;  %v3467_v19 = vld [vmem:[%s5269_s18 + $0x20] sm:$0xff]   ;;  %3276 = vmatprep.subr.bf16.mxu0 %v3466_v17 }
 0x8ad   :  { %3277 = vmatpush3.bf16.msra.mxu0 %v3466_v17 }
 0x8ae   :  { %3278 = vmatprep.subr.bf16.mxu0 %v3467_v19 }
 0x8b1   :  { %3279 = vmatpush3.bf16.msra.mxu0 %v3467_v19 }
 0x8b3   :  { %3263 = vmatmul.mubr.bf16.gmra.mrb[56].mxu1 %v4651_v21  ;;  %v3468_v21 = vld [vmem:[%s5269_s18 + $0x28] sm:$0xff]  }
 0x8b4   :  { %3266 = vmatprep.mubr.bf16.mxu1 %v4657_v2  ;;  %3280 = vmatprep.subr.bf16.mxu0 %v3468_v21  ;;  %v3469_v2 = vld [vmem:[%s5269_s18 + $0x30] sm:$0xff]  }
 0x8b5   :  { %3281 = vmatpush3.bf16.msra.mxu0 %v3468_v21 }
 0x8b6   :  { %3282 = vmatprep.subr.bf16.mxu0 %v3469_v2 }
 0x8b9   :  { %3283 = vmatpush3.bf16.msra.mxu0 %v3469_v2 }
 0x8bb   :  { %3267 = vmatmul.mubr.bf16.gmra.mrb[60].mxu1 %v4663_v23  ;;  %v3470_v23 = vld [vmem:[%s5269_s18 + $0x38] sm:$0xff]  }
 0x8bc   :  { %3318 = vmatprep.mubr.bf16.mxu1 %v4669_v24  ;;  %3284 = vmatprep.subr.bf16.mxu0 %v3470_v23  ;;  %v4871_v24 = vld [vmem:[%s5271_s20] sm:$0xff]  }
 0x8bd   :  { %3285 = vmatpush3.bf16.msra.mxu0 %v3470_v23 }
 0x8be   :  { %3334 = vmatprep.subr.bf16.mxu0 %v4871_v24 }
 0x976   :  { %v3256_v38 = vpop.f32.mrb[48].mxu1 }
 0x977   :  { %v1907_v60 = vpop.f32.mrb[49].mxu1  ;;  %v4880_v1 = vadd.f32 %v3256_v38, %v4874_v36 }
 0x978   :  { %v4877_v48 = vadd.f32 %v4874_v36, %v1907_v60  ;;  %v3257_v40 = vpop.f32.mrb[50].mxu1 }
 0x979   :  { %v1910_v37 = vpop.f32.mrb[51].mxu1  ;;  %v4888_v55 = vadd.f32 %v3257_v40, %v4874_v36  ;;  %v1994_v16 = vmul.f32 %v4880_v1, %v4880_v1 }
 0x97a   :  { %v4883_v4 = vadd.f32 %v4874_v36, %v1910_v37  ;;  %v1992_v50 = vmul.f32 %v4877_v48, %v4877_v48 }
 0x97b   :  { %v1995_v42 = vmul.f32 %v4888_v55, %v4888_v55 }
 0x97c   :  { %v1970_v14 = vadd.f32 %v4883_v4, %v4877_v48  ;;  %v1993_v52 = vmul.f32 %v4883_v4, %v4883_v4 }
 0x97e   :  { %v1971_v26 = vadd.f32 %v1970_v14, %v4880_v1  ;;  %v2008_v53 = vadd.f32 %v1993_v52, %v1992_v50  ;;  %v3260_v18 = vpop.f32.mrb[52].mxu1 }
 0x97f   :  { %v1923_v63 = vpop.f32.mrb[53].mxu1  ;;  %v4904_v57 = vadd.f32 %v3260_v18, %v4874_v36 }
 0x980   :  { %v2009_v46 = vadd.f32 %v2008_v53, %v1994_v16  ;;  %v4900_v6 = vadd.f32 %v4874_v36, %v1923_v63  ;;  %v1972_v10 = vadd.f32 %v1971_v26, %v4888_v55  ;;  %v3261_v39 = vpop.f32.mrb[54].mxu1 }
 0x981   :  { %v1926_v58 = vpop.f32.mrb[55].mxu1  ;;  %v4913_v45 = vadd.f32 %v3261_v39, %v4874_v36  ;;  %v1998_v59 = vmul.f32 %v4904_v57, %v4904_v57 }
 0x982   :  { %v1973_v7 = vadd.f32 %v1972_v10, %v4900_v6  ;;  %v1996_v41 = vmul.f32 %v4900_v6, %v4900_v6  ;;  %v2010_v43 = vadd.f32 %v2009_v46, %v1995_v42  ;;  %v4910_v51 = vadd.f32 %v4874_v36, %v1926_v58 }
 0x983   :  { %v1999_v34 = vmul.f32 %v4913_v45, %v4913_v45 }
 0x984   :  { %v2011_v44 = vadd.f32 %v2010_v43, %v1996_v41  ;;  %v1974_v47 = vadd.f32 %v1973_v7, %v4910_v51  ;;  %v1997_v15 = vmul.f32 %v4910_v51, %v4910_v51 }
 0x986   :  { %v1975_v54 = vadd.f32 %v1974_v47, %v4904_v57  ;;  %v2012_v0 = vadd.f32 %v2011_v44, %v1997_v15  ;;  %v3264_v62 = vpop.f32.mrb[56].mxu1 }
 0x987   :  { %v1939_v11 = vpop.f32.mrb[57].mxu1  ;;  %v4928_v49 = vadd.f32 %v3264_v62, %v4874_v36 }
 0x988   :  { %v2013_v30 = vadd.f32 %v2012_v0, %v1998_v59  ;;  %v4924_v35 = vadd.f32 %v4874_v36, %v1939_v11  ;;  %v1976_v5 = vadd.f32 %v1975_v54, %v4913_v45  ;;  %v3265_v20 = vpop.f32.mrb[58].mxu1 }
 0x989   :  { %v1942_v8 = vpop.f32.mrb[59].mxu1  ;;  %v4937_v25 = vadd.f32 %v3265_v20, %v4874_v36  ;;  %v2002_v28 = vmul.f32 %v4928_v49, %v4928_v49 }
 0x98a   :  { %v1977_v61 = vadd.f32 %v1976_v5, %v4924_v35  ;;  %v2000_v9 = vmul.f32 %v4924_v35, %v4924_v35  ;;  %v2014_v3 = vadd.f32 %v2013_v30, %v1999_v34  ;;  %v4934_v12 = vadd.f32 %v4874_v36, %v1942_v8 }
 0x98b   :  { %v2003_v13 = vmul.f32 %v4937_v25, %v4937_v25 }
 0x98c   :  { %v2015_v22 = vadd.f32 %v2014_v3, %v2000_v9  ;;  %v1978_v27 = vadd.f32 %v1977_v61, %v4934_v12  ;;  %v2001_v56 = vmul.f32 %v4934_v12, %v4934_v12 }
 0x98e   :  { %v1979_v29 = vadd.f32 %v1978_v27, %v4928_v49  ;;  %v2016_v31 = vadd.f32 %v2015_v22, %v2001_v56  ;;  %v3268_v33 = vpop.f32.mrb[60].mxu1 }
 0x98f   :  { %v1955_v32 = vpop.f32.mrb[61].mxu1  ;;  %v4952_v23 = vadd.f32 %v3268_v33, %v4874_v36  ;;  %v5010_v33 = vld [vmem:[#allocation24] ss:$0 sm:$0xff] }
 0x990   :  { %v2017_v17 = vadd.f32 %v2016_v31, %v2002_v28  ;;  %v4948_v19 = vadd.f32 %v4874_v36, %v1955_v32  ;;  %v1980_v21 = vadd.f32 %v1979_v29, %v4937_v25  ;;  %v3269_v2 = vpop.f32.mrb[62].mxu1 }
 0x991   :  { %v1958_v38 = vpop.f32.mrb[63].mxu1  ;;  %v4959_v52 = vadd.f32 %v3269_v2, %v4874_v36  ;;  %v2006_v53 = vmul.f32 %v4952_v23, %v4952_v23 }
 0x992   :  { %v1981_v60 = vadd.f32 %v1980_v21, %v4948_v19  ;;  %v2004_v40 = vmul.f32 %v4948_v19, %v4948_v19  ;;  %v2018_v37 = vadd.f32 %v2017_v17, %v2003_v13  ;;  %v1959_v50 = vadd.f32 %v4874_v36, %v1958_v38 }
 0x993   :  { %v2007_v42 = vmul.f32 %v4959_v52, %v4959_v52 }
 0x994   :  { %v2019_v14 = vadd.f32 %v2018_v37, %v2004_v40  ;;  %v1982_v16 = vadd.f32 %v1981_v60, %v1959_v50  ;;  %v2005_v26 = vmul.f32 %v1959_v50, %v1959_v50 }
 0x996   :  { %v1983_v18 = vadd.f32 %v1982_v16, %v4952_v23  ;;  %v2020_v63 = vadd.f32 %v2019_v14, %v2005_v26 }
 0x998   :  { %v1984_v46 = vadd.f32 %v1983_v18, %v4959_v52  ;;  %v2021_v10 = vadd.f32 %v2020_v63, %v2006_v53 }
 0x99a   :  { %v1985_v39 = vrot.slane %v1984_v46, 4  ;;  %v2022_v58 = vadd.f32 %v2021_v10, %v2007_v42 }
 0x99c   :  { %v1986_v7 = vadd.f32 %v1985_v39, %v1984_v46  ;;  %v2023_v41 = vrot.slane %v2022_v58, 4 }
 0x99e   :  { %v1987_v36 = vrot.slane %v1986_v7, 2  ;;  %v2024_v43 = vadd.f32 %v2023_v41, %v2022_v58 }
 0x9a0   :  { %v1988_v44 = vadd.f32 %v1987_v36, %v1986_v7  ;;  %v2025_v47 = vrot.slane %v2024_v43, 2 }
 0x9a2   :  { %v1989_v15 = vrot.slane %v1988_v44, 1  ;;  %v2026_v59 = vadd.f32 %v2025_v47, %v2024_v43 }
 0x9a4   :  { %v1990_v54 = vadd.f32 %v1989_v15, %v1988_v44  ;;  %v2027_v0 = vrot.slane %v2026_v59, 1 }
 0x9a6   :  { %v4967_v62 = vmul.f32 0.0078125, %v1990_v54  ;;  %v2028_v11 = vadd.f32 %v2027_v0, %v2026_v59 }
 0x9a8   :  { %v2029_v34 = vmul.f32 0.0078125, %v2028_v11  ;;  %v2030_v30 = vmul.f32 %v4967_v62, %v4967_v62  ;;  %v2045_v5 = vsub.f32 %v1959_v50, %v4967_v62  ;;  %v2032_v20 = vsub.f32 %v4877_v48, %v4967_v62 }
 0x9a9   :  { %v2033_v8 = vsub.f32 %v4883_v4, %v4967_v62  ;;  %v2034_v61 = vsub.f32 %v4880_v1, %v4967_v62  ;;  %v2035_v9 = vsub.f32 %v4888_v55, %v4967_v62  ;;  %v2036_v3 = vsub.f32 %v4900_v6, %v4967_v62 }
 0x9aa   :  { %v2031_v22 = vsub.f32 %v2029_v34, %v2030_v30  ;;  %v2037_v27 = vsub.f32 %v4910_v51, %v4967_v62  ;;  %v2038_v56 = vsub.f32 %v4904_v57, %v4967_v62  ;;  %v2039_v48 = vsub.f32 %v4913_v45, %v4967_v62  ;;  %v3472_v34 = vld [vmem:[%s5271_s20 + $0x8] sm:$0xff]  }
 0x9ab   :  { %v2040_v4 = vsub.f32 %v4924_v35, %v4967_v62  ;;  %v2041_v1 = vsub.f32 %v4934_v12, %v4967_v62  ;;  %v2042_v55 = vsub.f32 %v4928_v49, %v4967_v62  ;;  %v2043_v6 = vsub.f32 %v4937_v25, %v4967_v62  ;;  %v5004_v12 = vld [vmem:[#allocation22] ss:$0 sm:$0xff] }
 0x9ac   :  { %v2048_v28 = vadd.f32 1e-05, %v2031_v22  ;;  %v2044_v51 = vsub.f32 %v4948_v19, %v4967_v62  ;;  %v2046_v57 = vsub.f32 %v4952_v23, %v4967_v62  ;;  %v2047_v45 = vsub.f32 %v4959_v52, %v4967_v62  ;;  %v3474_v52 = vld [vmem:[%s5271_s20 + $0x18] sm:$0xff]  }
 0x9ae   :  { %3485 = vrsqrt.f32 %v2048_v28 }
 0x9b8   :  { %v5002_v35 = vpop.eup %3485 }
 0x9b9   :  { %v2063_v49 = vmul.f32 %v5002_v35, %v2045_v5  ;;  %v2050_v29 = vmul.f32 %v5002_v35, %v2032_v20  ;;  %v2051_v25 = vmul.f32 %v5002_v35, %v2033_v8  ;;  %v2052_v31 = vmul.f32 %v5002_v35, %v2034_v61 }
 0x9ba   :  { %v2053_v32 = vmul.f32 %v5002_v35, %v2035_v9  ;;  %v2054_v13 = vmul.f32 %v5002_v35, %v2036_v3  ;;  %v2055_v17 = vmul.f32 %v5002_v35, %v2037_v27  ;;  %v2056_v19 = vmul.f32 %v5002_v35, %v2038_v56 }
 0x9bb   :  { %v2073_v21 = vmul.f32 %v5004_v12, %v2050_v29  ;;  %v2074_v2 = vmul.f32 %v5004_v12, %v2051_v25  ;;  %v2075_v23 = vmul.f32 %v5004_v12, %v2052_v31  ;;  %v2057_v38 = vmul.f32 %v5002_v35, %v2039_v48 }
 0x9bc   :  { %v2076_v60 = vmul.f32 %v5004_v12, %v2053_v32  ;;  %v2077_v40 = vmul.f32 %v5004_v12, %v2054_v13  ;;  %v2078_v37 = vmul.f32 %v5004_v12, %v2055_v17  ;;  %v2079_v50 = vmul.f32 %v5004_v12, %v2056_v19 }
 0x9bd   :  { %v2096_v14 = vadd.f32 %v5010_v33, %v2073_v21  ;;  %v2097_v16 = vadd.f32 %v5010_v33, %v2074_v2  ;;  %v2098_v26 = vadd.f32 %v5010_v33, %v2075_v23  ;;  %v2080_v53 = vmul.f32 %v5004_v12, %v2057_v38 }
 0x9be   :  { %v2099_v18 = vadd.f32 %v5010_v33, %v2076_v60  ;;  %v2100_v63 = vadd.f32 %v5010_v33, %v2077_v40  ;;  %v2101_v42 = vadd.f32 %v5010_v33, %v2078_v37  ;;  %v2102_v46 = vadd.f32 %v5010_v33, %v2079_v50  ;;  %v3476_v40 = vld [vmem:[%s5271_s20 + $0x28] sm:$0xff]   ;;  %v3478_v37 = vld [vmem:[%s5271_s20 + $0x38] sm:$0xff]  }
 0x9bf   :  { %v2112_v10 = vmax.f32 %v2096_v14, 0.0  ;;  %v2113_v39 = vmax.f32 %v2097_v16, 0.0  ;;  %v2114_v58 = vmax.f32 %v2098_v26, 0.0  ;;  %v2103_v7 = vadd.f32 %v5010_v33, %v2080_v53 }
 0x9c0   :  { %v2115_v41 = vmax.f32 %v2099_v18, 0.0  ;;  %v2116_v36 = vmax.f32 %v2100_v63, 0.0  ;;  %v2117_v43 = vmax.f32 %v2101_v42, 0.0  ;;  %v2118_v44 = vmax.f32 %v2102_v46, 0.0 }
 0x9c1   :  { %v5033_v47 = vpack.c.bf16 %v2113_v39, %v2112_v10  ;;  %v2119_v15 = vmax.f32 %v2103_v7, 0.0  ;;  %v2058_v59 = vmul.f32 %v5002_v35, %v2040_v4  ;;  %v2059_v54 = vmul.f32 %v5002_v35, %v2041_v1 }
 0x9c2   :  { %v5037_v0 = vpack.c.bf16 %v2115_v41, %v2114_v58  ;;  %v5039_v11 = vpack.c.bf16 %v2117_v43, %v2116_v36  ;;  %v2060_v30 = vmul.f32 %v5002_v35, %v2042_v55  ;;  %v2061_v5 = vmul.f32 %v5002_v35, %v2043_v6  ;;  %v3473_v55 = vld [vmem:[%s5271_s20 + $0x10] sm:$0xff]  }
 0x9c3   :  { %3286 = vmatprep.mubr.bf16.mxu0 %v5033_v47  ;;  %v2131_v20 = vpack.c.bf16 %v2119_v15, %v2118_v44  ;;  %v2081_v8 = vmul.f32 %v5004_v12, %v2058_v59  ;;  %v2082_v61 = vmul.f32 %v5004_v12, %v2059_v54  ;;  %v2062_v9 = vmul.f32 %v5002_v35, %v2044_v51 }
 0x9c4   :  { %3287 = vmatmul.mubr.bf16.vlgmr.msra.gmra.mrb[64].mxu0 %v5037_v0  ;;  %v2083_v3 = vmul.f32 %v5004_v12, %v2060_v30  ;;  %v2084_v22 = vmul.f32 %v5004_v12, %v2061_v5  ;;  %v2086_v27 = vmul.f32 %v5004_v12, %v2063_v49  ;;  %v2064_v56 = vmul.f32 %v5002_v35, %v2046_v57 }
 0x9c5   :  { %3290 = vmatprep.mubr.bf16.mxu0 %v5039_v11  ;;  %3335 = vmatpush3.bf16.msra.mxu0 %v4871_v24  ;;  %v2104_v48 = vadd.f32 %v5010_v33, %v2081_v8  ;;  %v2105_v4 = vadd.f32 %v5010_v33, %v2082_v61  ;;  %v2085_v1 = vmul.f32 %v5004_v12, %v2062_v9 }
 0x9c6   :  { %3336 = vmatprep.subr.bf16.mxu0 %v3472_v34  ;;  %v2106_v6 = vadd.f32 %v5010_v33, %v2083_v3  ;;  %v2107_v28 = vadd.f32 %v5010_v33, %v2084_v22  ;;  %v2109_v51 = vadd.f32 %v5010_v33, %v2086_v27  ;;  %v2065_v24 = vmul.f32 %v5002_v35, %v2047_v45  ;;  %v3495_v3 = vld [vmem:[%s5297_s0 + $0x8] sm:$0xff]   ;;  %v3496_v22 = vld [vmem:[%s5297_s0 + $0x10] sm:$0xff]  }
 0x9c7   :  { %v2120_v57 = vmax.f32 %v2104_v48, 0.0  ;;  %v2121_v49 = vmax.f32 %v2105_v4, 0.0  ;;  %v2108_v29 = vadd.f32 %v5010_v33, %v2085_v1  ;;  %v2087_v25 = vmul.f32 %v5004_v12, %v2064_v56 }
 0x9c8   :  { %v2122_v31 = vmax.f32 %v2106_v6, 0.0  ;;  %v2123_v32 = vmax.f32 %v2107_v28, 0.0  ;;  %v2125_v13 = vmax.f32 %v2109_v51, 0.0  ;;  %v2088_v17 = vmul.f32 %v5004_v12, %v2065_v24  ;;  %v3475_v12 = vld [vmem:[%s5271_s20 + $0x20] sm:$0xff]   ;;  %v3497_v6 = vld [vmem:[%s5297_s0 + $0x18] sm:$0xff]  }
 0x9c9   :  { %3337 = vmatpush3.bf16.msra.mxu0 %v3472_v34  ;;  %v2132_v19 = vpack.c.bf16 %v2121_v49, %v2120_v57  ;;  %v2124_v21 = vmax.f32 %v2108_v29, 0.0  ;;  %v2110_v2 = vadd.f32 %v5010_v33, %v2087_v25  ;;  %v3498_v28 = vld [vmem:[%s5297_s0 + $0x20] sm:$0xff]  }
 0x9ca   :  { %3338 = vmatprep.subr.bf16.mxu0 %v3473_v55  ;;  %v2133_v62 = vpack.c.bf16 %v2123_v32, %v2122_v31  ;;  %v2111_v45 = vadd.f32 %v5010_v33, %v2088_v17  ;;  %v3477_v33 = vld [vmem:[%s5271_s20 + $0x30] sm:$0xff]   ;;  %v3499_v31 = vld [vmem:[%s5297_s0 + $0x28] sm:$0xff]  }
 0x9cb   :  { %v2134_v35 = vpack.c.bf16 %v2125_v13, %v2124_v21  ;;  %v2126_v23 = vmax.f32 %v2110_v2, 0.0  ;;  %v3500_v32 = vld [vmem:[%s5297_s0 + $0x30] sm:$0xff]  }
 0x9cc   :  { %3291 = vmatmul.mubr.bf16.gmra.mrb[68].mxu0 %v2131_v20  ;;  %v2127_v38 = vmax.f32 %v2111_v45, 0.0  ;;  %v3502_v45 = vld [vmem:[%s5297_s0] sm:$0xff]  }
 0x9cd   :  { %3294 = vmatprep.mubr.bf16.mxu0 %v2132_v19  ;;  %3339 = vmatpush3.bf16.msra.mxu0 %v3473_v55 }
 0x9ce   :  { %3340 = vmatprep.subr.bf16.mxu0 %v3474_v52  ;;  %v2135_v60 = vpack.c.bf16 %v2127_v38, %v2126_v23 }
 0x9d1   :  { %3341 = vmatpush3.bf16.msra.mxu0 %v3474_v52 }
 0x9d2   :  { %3342 = vmatprep.subr.bf16.mxu0 %v3475_v12 }
 0x9d4   :  { %3295 = vmatmul.mubr.bf16.gmra.mrb[72].mxu0 %v2133_v62 }
 0x9d5   :  { %3298 = vmatprep.mubr.bf16.mxu0 %v2134_v35  ;;  %3343 = vmatpush3.bf16.msra.mxu0 %v3475_v12 }
 0x9d6   :  { %3344 = vmatprep.subr.bf16.mxu0 %v3476_v40 }
 0x9d9   :  { %3345 = vmatpush3.bf16.msra.mxu0 %v3476_v40 }
 0x9da   :  { %3346 = vmatprep.subr.bf16.mxu0 %v3477_v33 }
 0x9dc   :  { %3299 = vmatmul.mubr.bf16.gmra.mrb[76].mxu0 %v2135_v60 }
 0x9dd   :  { %3347 = vmatpush3.bf16.msra.mxu0 %v3477_v33  ;;  %3350 = vmatprep.mubr.bf16.mxu0 %v5033_v47 }
 0x9de   :  { %3348 = vmatprep.subr.bf16.mxu0 %v3478_v37 }
 0x9e1   :  { %3349 = vmatpush3.bf16.msra.mxu0 %v3478_v37 }
 0x9e4   :  { %3351 = vmatmul.mubr.bf16.vlgmr.msra.gmra.mrb[80].mxu0 %v5037_v0 }
 0x9e5   :  { %3354 = vmatprep.mubr.bf16.mxu0 %v5039_v11 }
 0x9ec   :  { %3355 = vmatmul.mubr.bf16.gmra.mrb[84].mxu0 %v2131_v20 }
 0x9ed   :  { %3358 = vmatprep.mubr.bf16.mxu0 %v2132_v19 }
 0x9f4   :  { %3359 = vmatmul.mubr.bf16.gmra.mrb[88].mxu0 %v2133_v62  ;;  %v3501_v62 = vld [vmem:[%s5297_s0 + $0x38] sm:$0xff]  }
 0x9f5   :  { %3362 = vmatprep.mubr.bf16.mxu0 %v2134_v35  ;;  %v2796_v35 = vld [vmem:[%s5270_s19] ss:$0 sm:$0xff]  ;;  %s5299_s19 = sld [smem:[#allocation40_spill]] }
 0x9fc   :  { %3363 = vmatmul.mubr.bf16.gmra.mrb[92].mxu0 %v2135_v60 }
 0xa97   :  { %v3288_v50 = vpop.f32.mrb[64].mxu0 }
 0xa98   :  { %v2234_v14 = vpop.f32.mrb[65].mxu0 }
 0xa99   :  { %v3289_v16 = vpop.f32.mrb[66].mxu0 }
 0xa9a   :  { %v2298_v26 = vpack.c.bf16 %v3289_v16, %v3288_v50  ;;  %v2237_v53 = vpop.f32.mrb[67].mxu0 }
 0xa9b   :  { %v2297_v18 = vpack.c.bf16 %v2237_v53, %v2234_v14 }
 0xa9d   :  { %3302 = vmatprep.subr.bf16.mxu1 %v2297_v18 }
 0xa9e   :  { %3303 = vmatpush3.bf16.msra.mxu1 %v2297_v18 }
 0xa9f   :  { %v3292_v63 = vpop.f32.mrb[68].mxu0  ;;  %3304 = vmatprep.subr.bf16.mxu1 %v2298_v26 }
 0xaa0   :  { %v2250_v42 = vpop.f32.mrb[69].mxu0 }
 0xaa1   :  { %v3293_v46 = vpop.f32.mrb[70].mxu0 }
 0xaa2   :  { %v2300_v10 = vpack.c.bf16 %v3293_v46, %v3292_v63  ;;  %v2253_v39 = vpop.f32.mrb[71].mxu0  ;;  %3305 = vmatpush3.bf16.msra.mxu1 %v2298_v26 }
 0xaa3   :  { %v2299_v58 = vpack.c.bf16 %v2253_v39, %v2250_v42 }
 0xaa5   :  { %3306 = vmatprep.subr.bf16.mxu1 %v2299_v58 }
 0xaa6   :  { %3307 = vmatpush3.bf16.msra.mxu1 %v2299_v58 }
 0xaa7   :  { %v3296_v7 = vpop.f32.mrb[72].mxu0  ;;  %3308 = vmatprep.subr.bf16.mxu1 %v2300_v10 }
 0xaa8   :  { %v2266_v41 = vpop.f32.mrb[73].mxu0 }
 0xaa9   :  { %v3297_v36 = vpop.f32.mrb[74].mxu0 }
 0xaaa   :  { %v2302_v43 = vpack.c.bf16 %v3297_v36, %v3296_v7  ;;  %v2269_v44 = vpop.f32.mrb[75].mxu0  ;;  %3309 = vmatpush3.bf16.msra.mxu1 %v2300_v10 }
 0xaab   :  { %v2301_v47 = vpack.c.bf16 %v2269_v44, %v2266_v41 }
 0xaad   :  { %3310 = vmatprep.subr.bf16.mxu1 %v2301_v47 }
 0xaae   :  { %3311 = vmatpush3.bf16.msra.mxu1 %v2301_v47 }
 0xaaf   :  { %v3300_v15 = vpop.f32.mrb[76].mxu0  ;;  %3312 = vmatprep.subr.bf16.mxu1 %v2302_v43 }
 0xab0   :  { %v2282_v59 = vpop.f32.mrb[77].mxu0 }
 0xab1   :  { %v3301_v54 = vpop.f32.mrb[78].mxu0 }
 0xab2   :  { %v2304_v0 = vpack.c.bf16 %v3301_v54, %v3300_v15  ;;  %v2285_v11 = vpop.f32.mrb[79].mxu0  ;;  %3313 = vmatpush3.bf16.msra.mxu1 %v2302_v43 }
 0xab3   :  { %v2303_v34 = vpack.c.bf16 %v2285_v11, %v2282_v59 }
 0xab5   :  { %3314 = vmatprep.subr.bf16.mxu1 %v2303_v34 }
 0xab6   :  { %3315 = vmatpush3.bf16.msra.mxu1 %v2303_v34 }
 0xab7   :  { %3316 = vmatprep.subr.bf16.mxu1 %v2304_v0  ;;  %v3352_v30 = vpop.f32.mrb[80].mxu0 }
 0xab8   :  { %v2524_v5 = vpop.f32.mrb[81].mxu0 }
 0xab9   :  { %v3353_v20 = vpop.f32.mrb[82].mxu0 }
 0xaba   :  { %v2588_v8 = vpack.c.bf16 %v3353_v20, %v3352_v30  ;;  %3317 = vmatpush3.bf16.msra.mxu1 %v2304_v0  ;;  %v2527_v61 = vpop.f32.mrb[83].mxu0 }
 0xabb   :  { %v2587_v9 = vpack.c.bf16 %v2527_v61, %v2524_v5  ;;  %v2805_v5 = vld [vmem:[%s5299_s19] ss:$0 sm:$0xff] }
 0xabd   :  { %3319 = vmatmul.mubr.bf16.vlgmr.msra.gmra.mrb[64].mxu1 %v3495_v3  ;;  %3366 = vmatprep.subr.bf16.mxu1 %v2587_v9 }
 0xabe   :  { %3367 = vmatpush3.bf16.msra.mxu1 %v2587_v9  ;;  %3322 = vmatprep.mubr.bf16.mxu1 %v3496_v22 }
 0xabf   :  { %v3356_v27 = vpop.f32.mrb[84].mxu0  ;;  %3368 = vmatprep.subr.bf16.mxu1 %v2588_v8 }
 0xac0   :  { %v2540_v56 = vpop.f32.mrb[85].mxu0 }
 0xac1   :  { %v3357_v48 = vpop.f32.mrb[86].mxu0 }
 0xac2   :  { %v2590_v4 = vpack.c.bf16 %v3357_v48, %v3356_v27  ;;  %v2543_v1 = vpop.f32.mrb[87].mxu0  ;;  %3369 = vmatpush3.bf16.msra.mxu1 %v2588_v8 }
 0xac3   :  { %v2589_v55 = vpack.c.bf16 %v2543_v1, %v2540_v56 }
 0xac5   :  { %3323 = vmatmul.mubr.bf16.gmra.mrb[68].mxu1 %v3497_v6  ;;  %3370 = vmatprep.subr.bf16.mxu1 %v2589_v55 }
 0xac6   :  { %3371 = vmatpush3.bf16.msra.mxu1 %v2589_v55  ;;  %3326 = vmatprep.mubr.bf16.mxu1 %v3498_v28 }
 0xac7   :  { %v3360_v51 = vpop.f32.mrb[88].mxu0  ;;  %3372 = vmatprep.subr.bf16.mxu1 %v2590_v4 }
 0xac8   :  { %v2556_v24 = vpop.f32.mrb[89].mxu0 }
 0xac9   :  { %v3361_v57 = vpop.f32.mrb[90].mxu0 }
 0xaca   :  { %v2592_v49 = vpack.c.bf16 %v3361_v57, %v3360_v51  ;;  %v2559_v29 = vpop.f32.mrb[91].mxu0  ;;  %3373 = vmatpush3.bf16.msra.mxu1 %v2590_v4 }
 0xacb   :  { %v2591_v25 = vpack.c.bf16 %v2559_v29, %v2556_v24 }
 0xacd   :  { %3327 = vmatmul.mubr.bf16.gmra.mrb[72].mxu1 %v3499_v31  ;;  %3374 = vmatprep.subr.bf16.mxu1 %v2591_v25 }
 0xace   :  { %3375 = vmatpush3.bf16.msra.mxu1 %v2591_v25  ;;  %3330 = vmatprep.mubr.bf16.mxu1 %v3500_v32 }
 0xacf   :  { %v3364_v13 = vpop.f32.mrb[92].mxu0  ;;  %3376 = vmatprep.subr.bf16.mxu1 %v2592_v49 }
 0xad0   :  { %v2572_v17 = vpop.f32.mrb[93].mxu0 }
 0xad1   :  { %v3365_v19 = vpop.f32.mrb[94].mxu0 }
 0xad2   :  { %v2594_v21 = vpack.c.bf16 %v3365_v19, %v3364_v13  ;;  %v2575_v2 = vpop.f32.mrb[95].mxu0  ;;  %3377 = vmatpush3.bf16.msra.mxu1 %v2592_v49 }
 0xad3   :  { %v2593_v52 = vpack.c.bf16 %v2575_v2, %v2572_v17 }
 0xad5   :  { %3331 = vmatmul.mubr.bf16.gmra.mrb[76].mxu1 %v3501_v62  ;;  %3378 = vmatprep.subr.bf16.mxu1 %v2593_v52 }
 0xad6   :  { %3379 = vmatpush3.bf16.msra.mxu1 %v2593_v52  ;;  %3382 = vmatprep.mubr.bf16.mxu1 %v3502_v45 }
 0xad7   :  { %3380 = vmatprep.subr.bf16.mxu1 %v2594_v21 }
 0xada   :  { %3381 = vmatpush3.bf16.msra.mxu1 %v2594_v21 }
 0xadd   :  { %3383 = vmatmul.mubr.bf16.vlgmr.msra.gmra.mrb[80].mxu1 %v3495_v3 }
 0xade   :  { %3386 = vmatprep.mubr.bf16.mxu1 %v3496_v22 }
 0xae5   :  { %3387 = vmatmul.mubr.bf16.gmra.mrb[84].mxu1 %v3497_v6 }
 0xae6   :  { %3390 = vmatprep.mubr.bf16.mxu1 %v3498_v28 }
 0xaed   :  { %3391 = vmatmul.mubr.bf16.gmra.mrb[88].mxu1 %v3499_v31 }
 0xaee   :  { %3394 = vmatprep.mubr.bf16.mxu1 %v3500_v32 }
 0xaf5   :  { %3395 = vmatmul.mubr.bf16.gmra.mrb[92].mxu1 %v3501_v62 }
 0xb90   :  { %v3320_v23 = vpop.f32.mrb[64].mxu1 }
 0xb91   :  { %v2355_v38 = vadd.f32 %v3320_v23, %v2796_v35  ;;  %v2346_v12 = vpop.f32.mrb[65].mxu1 }
 0xb92   :  { %v2347_v60 = vadd.f32 %v2796_v35, %v2346_v12  ;;  %v3321_v40 = vpop.f32.mrb[66].mxu1 }
 0xb93   :  { %2412 = vst.msk [vmem:[%s5298_s22 + $0x10] sm:$0xff] %vm2409_vm0, %v2355_v38  ;;  %v2358_v33 = vadd.f32 %v3321_v40, %v2796_v35  ;;  %v2349_v37 = vpop.f32.mrb[67].mxu1 }
 0xb94   :  { %2410 = vst.msk [vmem:[%s5298_s22] sm:$0xff] %vm2409_vm0, %v2347_v60  ;;  %v2350_v50 = vadd.f32 %v2796_v35, %v2349_v37 }
 0xb95   :  { %2413 = vst.msk [vmem:[%s5298_s22 + $0x18] sm:$0xff] %vm2409_vm0, %v2358_v33 }
 0xb96   :  { %2411 = vst.msk [vmem:[%s5298_s22 + $0x8] sm:$0xff] %vm2409_vm0, %v2350_v50 }
 0xb98   :  { %v3324_v14 = vpop.f32.mrb[68].mxu1 }
 0xb99   :  { %v2371_v16 = vadd.f32 %v3324_v14, %v2796_v35  ;;  %v2362_v26 = vpop.f32.mrb[69].mxu1 }
 0xb9a   :  { %v2363_v53 = vadd.f32 %v2796_v35, %v2362_v26  ;;  %v3325_v18 = vpop.f32.mrb[70].mxu1 }
 0xb9b   :  { %2416 = vst.msk [vmem:[%s5298_s22 + $0x30] sm:$0xff] %vm2409_vm0, %v2371_v16  ;;  %v2374_v63 = vadd.f32 %v3325_v18, %v2796_v35  ;;  %v2365_v42 = vpop.f32.mrb[71].mxu1 }
 0xb9c   :  { %2414 = vst.msk [vmem:[%s5298_s22 + $0x20] sm:$0xff] %vm2409_vm0, %v2363_v53  ;;  %v2366_v46 = vadd.f32 %v2796_v35, %v2365_v42 }
 0xb9d   :  { %2417 = vst.msk [vmem:[%s5298_s22 + $0x38] sm:$0xff] %vm2409_vm0, %v2374_v63 }
 0xb9e   :  { %2415 = vst.msk [vmem:[%s5298_s22 + $0x28] sm:$0xff] %vm2409_vm0, %v2366_v46 }
 0xba0   :  { %v3328_v10 = vpop.f32.mrb[72].mxu1 }
 0xba1   :  { %v2387_v39 = vadd.f32 %v3328_v10, %v2796_v35  ;;  %v2378_v58 = vpop.f32.mrb[73].mxu1 }
 0xba2   :  { %v2379_v7 = vadd.f32 %v2796_v35, %v2378_v58  ;;  %v3329_v41 = vpop.f32.mrb[74].mxu1 }
 0xba3   :  { %2420 = vst.msk [vmem:[%s5298_s22 + $0x50] sm:$0xff] %vm2409_vm0, %v2387_v39  ;;  %v2390_v36 = vadd.f32 %v3329_v41, %v2796_v35  ;;  %v2381_v43 = vpop.f32.mrb[75].mxu1 }
 0xba4   :  { %2418 = vst.msk [vmem:[%s5298_s22 + $0x40] sm:$0xff] %vm2409_vm0, %v2379_v7  ;;  %v2382_v44 = vadd.f32 %v2796_v35, %v2381_v43 }
 0xba5   :  { %2421 = vst.msk [vmem:[%s5298_s22 + $0x58] sm:$0xff] %vm2409_vm0, %v2390_v36 }
 0xba6   :  { %2419 = vst.msk [vmem:[%s5298_s22 + $0x48] sm:$0xff] %vm2409_vm0, %v2382_v44 }
 0xba8   :  { %v3332_v47 = vpop.f32.mrb[76].mxu1 }
 0xba9   :  { %v2403_v15 = vadd.f32 %v3332_v47, %v2796_v35  ;;  %v2394_v59 = vpop.f32.mrb[77].mxu1 }
 0xbaa   :  { %v2395_v54 = vadd.f32 %v2796_v35, %v2394_v59  ;;  %v3333_v0 = vpop.f32.mrb[78].mxu1 }
 0xbab   :  { %2424 = vst.msk [vmem:[%s5298_s22 + $0x70] sm:$0xff] %vm2409_vm0, %v2403_v15  ;;  %v2406_v11 = vadd.f32 %v3333_v0, %v2796_v35  ;;  %v2397_v34 = vpop.f32.mrb[79].mxu1 }
 0xbac   :  { %2422 = vst.msk [vmem:[%s5298_s22 + $0x60] sm:$0xff] %vm2409_vm0, %v2395_v54  ;;  %v2398_v30 = vadd.f32 %v2796_v35, %v2397_v34 }
 0xbad   :  { %2425 = vst.msk [vmem:[%s5298_s22 + $0x78] sm:$0xff] %vm2409_vm0, %v2406_v11 }
 0xbae   :  { %2423 = vst.msk [vmem:[%s5298_s22 + $0x68] sm:$0xff] %vm2409_vm0, %v2398_v30 }
 0xbb0   :  { %v3384_v20 = vpop.f32.mrb[80].mxu1 }
 0xbb1   :  { %v2645_v8 = vadd.f32 %v3384_v20, %v2805_v5  ;;  %v2636_v61 = vpop.f32.mrb[81].mxu1 }
 0xbb2   :  { %v2637_v9 = vadd.f32 %v2805_v5, %v2636_v61  ;;  %v3385_v3 = vpop.f32.mrb[82].mxu1 }
 0xbb3   :  { %2808 = vst.msk [vmem:[%s5298_s22 + $0x90] sm:$0xff] %vm2409_vm0, %v2645_v8  ;;  %v2648_v22 = vadd.f32 %v3385_v3, %v2805_v5  ;;  %v2639_v27 = vpop.f32.mrb[83].mxu1 }
 0xbb4   :  { %2806 = vst.msk [vmem:[%s5298_s22 + $0x80] sm:$0xff] %vm2409_vm0, %v2637_v9  ;;  %v2640_v56 = vadd.f32 %v2805_v5, %v2639_v27 }
 0xbb5   :  { %2809 = vst.msk [vmem:[%s5298_s22 + $0x98] sm:$0xff] %vm2409_vm0, %v2648_v22 }
 0xbb6   :  { %2807 = vst.msk [vmem:[%s5298_s22 + $0x88] sm:$0xff] %vm2409_vm0, %v2640_v56 }
 0xbb8   :  { %v3388_v48 = vpop.f32.mrb[84].mxu1 }
 0xbb9   :  { %v2661_v4 = vadd.f32 %v3388_v48, %v2805_v5  ;;  %v2652_v1 = vpop.f32.mrb[85].mxu1 }
 0xbba   :  { %v2653_v55 = vadd.f32 %v2805_v5, %v2652_v1  ;;  %v3389_v6 = vpop.f32.mrb[86].mxu1 }
 0xbbb   :  { %2812 = vst.msk [vmem:[%s5298_s22 + $0xb0] sm:$0xff] %vm2409_vm0, %v2661_v4  ;;  %v2664_v28 = vadd.f32 %v3389_v6, %v2805_v5  ;;  %v2655_v51 = vpop.f32.mrb[87].mxu1 }
 0xbbc   :  { %2810 = vst.msk [vmem:[%s5298_s22 + $0xa0] sm:$0xff] %vm2409_vm0, %v2653_v55  ;;  %v2656_v24 = vadd.f32 %v2805_v5, %v2655_v51 }
 0xbbd   :  { %2813 = vst.msk [vmem:[%s5298_s22 + $0xb8] sm:$0xff] %vm2409_vm0, %v2664_v28 }
 0xbbe   :  { %2811 = vst.msk [vmem:[%s5298_s22 + $0xa8] sm:$0xff] %vm2409_vm0, %v2656_v24 }
 0xbc0   :  { %v3392_v57 = vpop.f32.mrb[88].mxu1 }
 0xbc1   :  { %v2677_v49 = vadd.f32 %v3392_v57, %v2805_v5  ;;  %v2668_v29 = vpop.f32.mrb[89].mxu1 }
 0xbc2   :  { %v2669_v25 = vadd.f32 %v2805_v5, %v2668_v29  ;;  %v3393_v31 = vpop.f32.mrb[90].mxu1 }
 0xbc3   :  { %2816 = vst.msk [vmem:[%s5298_s22 + $0xd0] sm:$0xff] %vm2409_vm0, %v2677_v49  ;;  %v2680_v32 = vadd.f32 %v3393_v31, %v2805_v5  ;;  %v2671_v13 = vpop.f32.mrb[91].mxu1 }
 0xbc4   :  { %2814 = vst.msk [vmem:[%s5298_s22 + $0xc0] sm:$0xff] %vm2409_vm0, %v2669_v25  ;;  %v2672_v17 = vadd.f32 %v2805_v5, %v2671_v13 }
 0xbc5   :  { %2817 = vst.msk [vmem:[%s5298_s22 + $0xd8] sm:$0xff] %vm2409_vm0, %v2680_v32 }
 0xbc6   :  { %2815 = vst.msk [vmem:[%s5298_s22 + $0xc8] sm:$0xff] %vm2409_vm0, %v2672_v17 }
 0xbc8   :  { %v3396_v19 = vpop.f32.mrb[92].mxu1 }
 0xbc9   :  { %v2693_v21 = vadd.f32 %v3396_v19, %v2805_v5  ;;  %v2684_v2 = vpop.f32.mrb[93].mxu1 }
 0xbca   :  { %v2685_v52 = vadd.f32 %v2805_v5, %v2684_v2  ;;  %v3397_v62 = vpop.f32.mrb[94].mxu1 }
 0xbcb   :  { %2820 = vst.msk [vmem:[%s5298_s22 + $0xf0] sm:$0xff] %vm2409_vm0, %v2693_v21  ;;  %v2696_v45 = vadd.f32 %v3397_v62, %v2805_v5  ;;  %v2687_v35 = vpop.f32.mrb[95].mxu1 }
 0xbcc   :  { %2818 = vst.msk [vmem:[%s5298_s22 + $0xe0] sm:$0xff] %vm2409_vm0, %v2685_v52  ;;  %v2688_v23 = vadd.f32 %v2805_v5, %v2687_v35 }
 0xbcd   :  { %2821 = vst.msk [vmem:[%s5298_s22 + $0xf8] sm:$0xff] %vm2409_vm0, %v2696_v45 }
 0xbce   :  { %2819 = vst.msk [vmem:[%s5298_s22 + $0xe8] sm:$0xff] %vm2409_vm0, %v2688_v23 }
 0xbcf   :  { %2720 = vsyncpa [#allocation3], 1 }
 0xbd0   :  { %2721 = vsyncpa [#allocation5], 1 }
 0xbd1   :  { %2722 = vsyncpa [#allocation8], 1 }
 0xbd2   :  { %2723 = vsyncpa [#allocation11], 1 }
 0xbd3   :  { %2724 = vsyncpa [#allocation14], 1 }
 0xbd4   :  { %2725 = vsyncpa [#allocation17], 1 }
 0xbd5   :  { %2726 = vsyncpa [#allocation20], 1 }
 0xbd6   :  { %2727 = vsyncpa [#allocation23], 1 }

</bundles_post_ra>
